<compile_context>
chip_gen: v5e
topology: v5e:2x2
jax: 0.10.0
libtpu: 0.0.40
codegen_flags: <defaults>
</compile_context>

<pallas_src>
import functools

import jax
import jax.numpy as jnp
from jax import lax
from jax.experimental import pallas as pl
from jax.experimental.pallas import tpu as pltpu

# Module hyperparameters (from model.py)
N_EMBD = 384
BLOCK_SIZE = 128  # max context; T <= BLOCK_SIZE


# ---------------------------------------------------------------------------
# Fused kernel: QKV projection + per-head causal attention + output projection.
# grid = (B,). Each program handles one batch row on the full (T, C) slab.
# ---------------------------------------------------------------------------
def _mha_fused_kernel(x_ref, wqkv_ref, wp_ref, bp_ref, out_ref, *,
                      num_heads, head_size):
    x = x_ref[0]                      # (T, C) bf16
    t = x.shape[0]
    hdh = num_heads * head_size

    # Single wide QKV matmul: (T, C) @ (C, 3*H*Dh), f32 accumulation.
    qkv = jnp.dot(x, wqkv_ref[...], preferred_element_type=jnp.float32)
    qkv_b = qkv.astype(jnp.bfloat16)  # bf16 operands for the attention matmuls

    scale = head_size ** -0.5
    row_ids = lax.broadcasted_iota(jnp.int32, (t, t), 0)
    col_ids = lax.broadcasted_iota(jnp.int32, (t, t), 1)
    causal = col_ids <= row_ids

    head_outs = []
    for h in range(num_heads):
        q = qkv_b[:, h * head_size:(h + 1) * head_size]                    # (T, Dh)
        k = qkv_b[:, hdh + h * head_size:hdh + (h + 1) * head_size]        # (T, Dh)
        v = qkv_b[:, 2 * hdh + h * head_size:2 * hdh + (h + 1) * head_size]

        # q @ k^T without an explicit transpose (contract the last dims).
        wei = lax.dot_general(
            q, k, dimension_numbers=(((1,), (1,)), ((), ())),
            preferred_element_type=jnp.float32) * scale                    # (T, T)

        # Causal mask + numerically stable softmax (f32).
        wei = jnp.where(causal, wei, -jnp.inf)
        wei = wei - jnp.max(wei, axis=-1, keepdims=True)
        p = jnp.exp(wei)
        p = p * pl.reciprocal(jnp.sum(p, axis=-1, keepdims=True), approx=False)

        head_outs.append(
            jnp.dot(p.astype(jnp.bfloat16), v, preferred_element_type=jnp.float32))

    # Concat-layout head slab (T, H*Dh) built in VMEM — no HBM round trip.
    slab = jnp.concatenate(head_outs, axis=-1)

    # Fused output projection; lane-dense (T, C=384) store.
    y = jnp.dot(slab.astype(jnp.bfloat16), wp_ref[...],
                preferred_element_type=jnp.float32)
    out_ref[0] = (y + bp_ref[...]).astype(out_ref.dtype)


def multi_head_attention(x, wq, wk, wv, wp, bp):
    """x: (B, T, C); wq/wk/wv: (H, C, Dh); wp: (H*Dh, C); bp: (C,)."""
    B, T, C = x.shape
    H, _, Dh = wq.shape
    hdh = H * Dh

    # Stack per-head weights into one (C, 3*H*Dh) QKV matrix so column block h
    # of each third equals the corresponding per-head weight (done once, on
    # weights only — tiny XLA-side op).
    def _stack(w):  # (H, C, Dh) -> (C, H*Dh)
        return jnp.transpose(w, (1, 0, 2)).reshape(C, hdh)

    wqkv = jnp.concatenate([_stack(wq), _stack(wk), _stack(wv)], axis=1)

    # bf16 matmul operands (MXU-native on v6e/v7x); accumulation stays f32.
    x_b = x.astype(jnp.bfloat16)
    wqkv_b = wqkv.astype(jnp.bfloat16)
    wp_b = wp.astype(jnp.bfloat16)
    bp2 = bp.reshape(1, C).astype(jnp.float32)

    flops = B * (2 * T * C * (3 * hdh)        # QKV projection
                 + H * 2 * (2 * T * T * Dh)   # q@k^T and p@v per head
                 + 2 * T * hdh * C)           # output projection
    bytes_accessed = (x_b.size * 2 + wqkv_b.size * 2 + wp_b.size * 2
                      + bp2.size * 4 + B * T * C * 4)
    cost = pl.CostEstimate(flops=flops,
                           transcendentals=B * H * T * T,
                           bytes_accessed=bytes_accessed)

    return pl.pallas_call(
        functools.partial(_mha_fused_kernel, num_heads=H, head_size=Dh),
        out_shape=jax.ShapeDtypeStruct((B, T, C), jnp.float32),
        grid_spec=pltpu.PrefetchScalarGridSpec(
            num_scalar_prefetch=0,
            grid=(B,),
            in_specs=[
                pl.BlockSpec((1, T, C), lambda b: (b, 0, 0)),
                pl.BlockSpec((C, 3 * hdh), lambda b: (0, 0)),
                pl.BlockSpec((hdh, C), lambda b: (0, 0)),
                pl.BlockSpec((1, C), lambda b: (0, 0)),
            ],
            out_specs=pl.BlockSpec((1, T, C), lambda b: (b, 0, 0)),
        ),
        compiler_params=pltpu.CompilerParams(
            dimension_semantics=("parallel",)),
        cost_estimate=cost,
    )(x_b, wqkv_b, wp_b, bp2)


# ---------------------------------------------------------------------------
# Pure-JAX (f32) reference for a sanity check.
# ---------------------------------------------------------------------------
def _reference(x, wq, wk, wv, wp, bp):
    B, T, C = x.shape
    H, _, Dh = wq.shape
    outs = []
    for h in range(H):
        q = x @ wq[h]
        k = x @ wk[h]
        v = x @ wv[h]
        wei = (q @ jnp.swapaxes(k, -2, -1)) * (Dh ** -0.5)
        mask = jnp.tril(jnp.ones((T, T), dtype=bool))
        wei = jnp.where(mask, wei, -jnp.inf)
        wei = jax.nn.softmax(wei, axis=-1)
        outs.append(wei @ v)
    cat = jnp.concatenate(outs, axis=-1)
    return cat @ wp + bp


if __name__ == "__main__":
    # Small shapes consistent with the module: C = n_embd = 384, T <= block_size.
    B, T, C = 2, 16, N_EMBD
    num_heads, head_size = 6, 64  # num_heads * head_size == n_embd

    key = jax.random.PRNGKey(0)
    kx, kq, kk, kv, kp, kb = jax.random.split(key, 6)

    x = jax.random.normal(kx, (B, T, C), dtype=jnp.float32)
    wq = jax.random.normal(kq, (num_heads, C, head_size), dtype=jnp.float32) * 0.02
    wk = jax.random.normal(kk, (num_heads, C, head_size), dtype=jnp.float32) * 0.02
    wv = jax.random.normal(kv, (num_heads, C, head_size), dtype=jnp.float32) * 0.02
    wp = jax.random.normal(kp, (num_heads * head_size, C), dtype=jnp.float32) * 0.02
    bp = jax.random.normal(kb, (C,), dtype=jnp.float32) * 0.02

    out = multi_head_attention(x, wq, wk, wv, wp, bp)
    out = jax.block_until_ready(out)

    ref = _reference(x, wq, wk, wv, wp, bp)
    assert out.shape == (B, T, C), out.shape
    # bf16 matmul operands (f32 accumulation) -> looser tolerance vs f32 reference.
    assert jnp.allclose(out, ref, atol=2e-2, rtol=2e-2), "mismatch vs reference"

    print("KERNEL_OK")
</pallas_src>

<mosaic_0001>
module attributes {stable_mosaic.version = 11 : i64} {
  func.func @_mha_fused_kernel(%arg0: i32, %arg1: memref<1x16x384xbf16, #tpu.memory_space<vmem>>, %arg2: memref<384x1152xbf16, #tpu.memory_space<vmem>>, %arg3: memref<384x384xbf16, #tpu.memory_space<vmem>>, %arg4: memref<1x384xf32, #tpu.memory_space<vmem>>, %arg5: memref<1x16x384xf32, #tpu.memory_space<vmem>>) attributes {dimension_semantics = [#tpu.dimension_semantics<parallel>], iteration_bounds = array<i64: 2>, scalar_prefetch = 0 : i64, scratch_operands = 0 : i64, tpu.core_type = #tpu.core_type<tc>, window_params = [{transform_indices = @transform_0, window_bounds = array<i64: 1, 16, 384>}, {pipeline_mode = #tpu.pipeline_mode<synchronous>, transform_indices = @transform_1, window_bounds = array<i64: 384, 1152>}, {pipeline_mode = #tpu.pipeline_mode<synchronous>, transform_indices = @transform_2, window_bounds = array<i64: 384, 384>}, {pipeline_mode = #tpu.pipeline_mode<synchronous>, transform_indices = @transform_3, window_bounds = array<i64: 1, 384>}, {transform_indices = @transform_4, window_bounds = array<i64: 1, 16, 384>}]} {
    %c0 = arith.constant 0 : index
    %c0_0 = arith.constant 0 : index
    %c0_1 = arith.constant 0 : index
    %0 = vector.load %arg1[%c0, %c0_0, %c0_1] : memref<1x16x384xbf16, #tpu.memory_space<vmem>>, vector<1x16x384xbf16>
    %1 = vector.shape_cast %0 : vector<1x16x384xbf16> to vector<16x384xbf16>
    %c0_2 = arith.constant 0 : index
    %c0_3 = arith.constant 0 : index
    %2 = vector.load %arg2[%c0_2, %c0_3] : memref<384x1152xbf16, #tpu.memory_space<vmem>>, vector<384x1152xbf16>
    %cst = arith.constant dense<0.000000e+00> : vector<16x1152xf32>
    %3 = tpu.matmul %1, %2, %cst {dimension_numbers = #tpu.dot_dimension_numbers<[1], [0], [0], [1], [0, 0, 1, 1], [], []>} : vector<16x384xbf16>, vector<384x1152xbf16>, vector<16x1152xf32> -> vector<16x1152xf32>
    %4 = arith.truncf %3 : vector<16x1152xf32> to vector<16x1152xbf16>
    %5 = tpu.iota {dimensions = array<i32: 0>} : vector<16x16xi32>
    %6 = tpu.iota {dimensions = array<i32: 1>} : vector<16x16xi32>
    %7 = arith.cmpi sle, %6, %5 : vector<16x16xi32>
    %8 = vector.extract_strided_slice %4 {offsets = [0, 0], sizes = [16, 64], strides = [1, 1]} : vector<16x1152xbf16> to vector<16x64xbf16>
    %9 = vector.extract_strided_slice %4 {offsets = [0, 384], sizes = [16, 64], strides = [1, 1]} : vector<16x1152xbf16> to vector<16x64xbf16>
    %10 = vector.extract_strided_slice %4 {offsets = [0, 768], sizes = [16, 64], strides = [1, 1]} : vector<16x1152xbf16> to vector<16x64xbf16>
    %cst_4 = arith.constant dense<0.000000e+00> : vector<16x16xf32>
    %11 = tpu.matmul %8, %9, %cst_4 {dimension_numbers = #tpu.dot_dimension_numbers<[1], [1], [0], [0], [0, 0, 1, 0], [], []>} : vector<16x64xbf16>, vector<16x64xbf16>, vector<16x16xf32> -> vector<16x16xf32>
    %cst_5 = arith.constant 1.250000e-01 : f32
    %12 = vector.broadcast %cst_5 : f32 to vector<16x16xf32>
    %13 = arith.mulf %11, %12 : vector<16x16xf32>
    %cst_6 = arith.constant 0xFF800000 : f32
    %14 = vector.broadcast %cst_6 : f32 to vector<16x16xf32>
    %15 = arith.select %7, %13, %14 : vector<16x16xi1>, vector<16x16xf32>
    %cst_7 = arith.constant dense<0xFF800000> : vector<16xf32>
    %16 = vector.multi_reduction <maximumf>, %15, %cst_7 [1] : vector<16x16xf32> to vector<16xf32>
    %17 = vector.shape_cast %16 : vector<16xf32> to vector<16x1xf32>
    %18 = vector.broadcast %17 : vector<16x1xf32> to vector<16x16xf32>
    %19 = arith.subf %15, %18 : vector<16x16xf32>
    %20 = math.exp %19 : vector<16x16xf32>
    %cst_8 = arith.constant dense<0.000000e+00> : vector<16xf32>
    %21 = vector.multi_reduction <add>, %20, %cst_8 [1] : vector<16x16xf32> to vector<16xf32>
    %22 = vector.shape_cast %21 : vector<16xf32> to vector<16x1xf32>
    %23 = tpu.reciprocal %22 : vector<16x1xf32> -> vector<16x1xf32>
    %24 = vector.broadcast %23 : vector<16x1xf32> to vector<16x16xf32>
    %25 = arith.mulf %20, %24 : vector<16x16xf32>
    %26 = arith.truncf %25 : vector<16x16xf32> to vector<16x16xbf16>
    %cst_9 = arith.constant dense<0.000000e+00> : vector<16x64xf32>
    %27 = tpu.matmul %26, %10, %cst_9 {dimension_numbers = #tpu.dot_dimension_numbers<[1], [0], [0], [1], [0, 0, 1, 1], [], []>} : vector<16x16xbf16>, vector<16x64xbf16>, vector<16x64xf32> -> vector<16x64xf32>
    %28 = vector.extract_strided_slice %4 {offsets = [0, 64], sizes = [16, 64], strides = [1, 1]} : vector<16x1152xbf16> to vector<16x64xbf16>
    %29 = vector.extract_strided_slice %4 {offsets = [0, 448], sizes = [16, 64], strides = [1, 1]} : vector<16x1152xbf16> to vector<16x64xbf16>
    %30 = vector.extract_strided_slice %4 {offsets = [0, 832], sizes = [16, 64], strides = [1, 1]} : vector<16x1152xbf16> to vector<16x64xbf16>
    %cst_10 = arith.constant dense<0.000000e+00> : vector<16x16xf32>
    %31 = tpu.matmul %28, %29, %cst_10 {dimension_numbers = #tpu.dot_dimension_numbers<[1], [1], [0], [0], [0, 0, 1, 0], [], []>} : vector<16x64xbf16>, vector<16x64xbf16>, vector<16x16xf32> -> vector<16x16xf32>
    %cst_11 = arith.constant 1.250000e-01 : f32
    %32 = vector.broadcast %cst_11 : f32 to vector<16x16xf32>
    %33 = arith.mulf %31, %32 : vector<16x16xf32>
    %cst_12 = arith.constant 0xFF800000 : f32
    %34 = vector.broadcast %cst_12 : f32 to vector<16x16xf32>
    %35 = arith.select %7, %33, %34 : vector<16x16xi1>, vector<16x16xf32>
    %cst_13 = arith.constant dense<0xFF800000> : vector<16xf32>
    %36 = vector.multi_reduction <maximumf>, %35, %cst_13 [1] : vector<16x16xf32> to vector<16xf32>
    %37 = vector.shape_cast %36 : vector<16xf32> to vector<16x1xf32>
    %38 = vector.broadcast %37 : vector<16x1xf32> to vector<16x16xf32>
    %39 = arith.subf %35, %38 : vector<16x16xf32>
    %40 = math.exp %39 : vector<16x16xf32>
    %cst_14 = arith.constant dense<0.000000e+00> : vector<16xf32>
    %41 = vector.multi_reduction <add>, %40, %cst_14 [1] : vector<16x16xf32> to vector<16xf32>
    %42 = vector.shape_cast %41 : vector<16xf32> to vector<16x1xf32>
    %43 = tpu.reciprocal %42 : vector<16x1xf32> -> vector<16x1xf32>
    %44 = vector.broadcast %43 : vector<16x1xf32> to vector<16x16xf32>
    %45 = arith.mulf %40, %44 : vector<16x16xf32>
    %46 = arith.truncf %45 : vector<16x16xf32> to vector<16x16xbf16>
    %cst_15 = arith.constant dense<0.000000e+00> : vector<16x64xf32>
    %47 = tpu.matmul %46, %30, %cst_15 {dimension_numbers = #tpu.dot_dimension_numbers<[1], [0], [0], [1], [0, 0, 1, 1], [], []>} : vector<16x16xbf16>, vector<16x64xbf16>, vector<16x64xf32> -> vector<16x64xf32>
    %48 = vector.extract_strided_slice %4 {offsets = [0, 128], sizes = [16, 64], strides = [1, 1]} : vector<16x1152xbf16> to vector<16x64xbf16>
    %49 = vector.extract_strided_slice %4 {offsets = [0, 512], sizes = [16, 64], strides = [1, 1]} : vector<16x1152xbf16> to vector<16x64xbf16>
    %50 = vector.extract_strided_slice %4 {offsets = [0, 896], sizes = [16, 64], strides = [1, 1]} : vector<16x1152xbf16> to vector<16x64xbf16>
    %cst_16 = arith.constant dense<0.000000e+00> : vector<16x16xf32>
    %51 = tpu.matmul %48, %49, %cst_16 {dimension_numbers = #tpu.dot_dimension_numbers<[1], [1], [0], [0], [0, 0, 1, 0], [], []>} : vector<16x64xbf16>, vector<16x64xbf16>, vector<16x16xf32> -> vector<16x16xf32>
    %cst_17 = arith.constant 1.250000e-01 : f32
    %52 = vector.broadcast %cst_17 : f32 to vector<16x16xf32>
    %53 = arith.mulf %51, %52 : vector<16x16xf32>
    %cst_18 = arith.constant 0xFF800000 : f32
    %54 = vector.broadcast %cst_18 : f32 to vector<16x16xf32>
    %55 = arith.select %7, %53, %54 : vector<16x16xi1>, vector<16x16xf32>
    %cst_19 = arith.constant dense<0xFF800000> : vector<16xf32>
    %56 = vector.multi_reduction <maximumf>, %55, %cst_19 [1] : vector<16x16xf32> to vector<16xf32>
    %57 = vector.shape_cast %56 : vector<16xf32> to vector<16x1xf32>
    %58 = vector.broadcast %57 : vector<16x1xf32> to vector<16x16xf32>
    %59 = arith.subf %55, %58 : vector<16x16xf32>
    %60 = math.exp %59 : vector<16x16xf32>
    %cst_20 = arith.constant dense<0.000000e+00> : vector<16xf32>
    %61 = vector.multi_reduction <add>, %60, %cst_20 [1] : vector<16x16xf32> to vector<16xf32>
    %62 = vector.shape_cast %61 : vector<16xf32> to vector<16x1xf32>
    %63 = tpu.reciprocal %62 : vector<16x1xf32> -> vector<16x1xf32>
    %64 = vector.broadcast %63 : vector<16x1xf32> to vector<16x16xf32>
    %65 = arith.mulf %60, %64 : vector<16x16xf32>
    %66 = arith.truncf %65 : vector<16x16xf32> to vector<16x16xbf16>
    %cst_21 = arith.constant dense<0.000000e+00> : vector<16x64xf32>
    %67 = tpu.matmul %66, %50, %cst_21 {dimension_numbers = #tpu.dot_dimension_numbers<[1], [0], [0], [1], [0, 0, 1, 1], [], []>} : vector<16x16xbf16>, vector<16x64xbf16>, vector<16x64xf32> -> vector<16x64xf32>
    %68 = vector.extract_strided_slice %4 {offsets = [0, 192], sizes = [16, 64], strides = [1, 1]} : vector<16x1152xbf16> to vector<16x64xbf16>
    %69 = vector.extract_strided_slice %4 {offsets = [0, 576], sizes = [16, 64], strides = [1, 1]} : vector<16x1152xbf16> to vector<16x64xbf16>
    %70 = vector.extract_strided_slice %4 {offsets = [0, 960], sizes = [16, 64], strides = [1, 1]} : vector<16x1152xbf16> to vector<16x64xbf16>
    %cst_22 = arith.constant dense<0.000000e+00> : vector<16x16xf32>
    %71 = tpu.matmul %68, %69, %cst_22 {dimension_numbers = #tpu.dot_dimension_numbers<[1], [1], [0], [0], [0, 0, 1, 0], [], []>} : vector<16x64xbf16>, vector<16x64xbf16>, vector<16x16xf32> -> vector<16x16xf32>
    %cst_23 = arith.constant 1.250000e-01 : f32
    %72 = vector.broadcast %cst_23 : f32 to vector<16x16xf32>
    %73 = arith.mulf %71, %72 : vector<16x16xf32>
    %cst_24 = arith.constant 0xFF800000 : f32
    %74 = vector.broadcast %cst_24 : f32 to vector<16x16xf32>
    %75 = arith.select %7, %73, %74 : vector<16x16xi1>, vector<16x16xf32>
    %cst_25 = arith.constant dense<0xFF800000> : vector<16xf32>
    %76 = vector.multi_reduction <maximumf>, %75, %cst_25 [1] : vector<16x16xf32> to vector<16xf32>
    %77 = vector.shape_cast %76 : vector<16xf32> to vector<16x1xf32>
    %78 = vector.broadcast %77 : vector<16x1xf32> to vector<16x16xf32>
    %79 = arith.subf %75, %78 : vector<16x16xf32>
    %80 = math.exp %79 : vector<16x16xf32>
    %cst_26 = arith.constant dense<0.000000e+00> : vector<16xf32>
    %81 = vector.multi_reduction <add>, %80, %cst_26 [1] : vector<16x16xf32> to vector<16xf32>
    %82 = vector.shape_cast %81 : vector<16xf32> to vector<16x1xf32>
    %83 = tpu.reciprocal %82 : vector<16x1xf32> -> vector<16x1xf32>
    %84 = vector.broadcast %83 : vector<16x1xf32> to vector<16x16xf32>
    %85 = arith.mulf %80, %84 : vector<16x16xf32>
    %86 = arith.truncf %85 : vector<16x16xf32> to vector<16x16xbf16>
    %cst_27 = arith.constant dense<0.000000e+00> : vector<16x64xf32>
    %87 = tpu.matmul %86, %70, %cst_27 {dimension_numbers = #tpu.dot_dimension_numbers<[1], [0], [0], [1], [0, 0, 1, 1], [], []>} : vector<16x16xbf16>, vector<16x64xbf16>, vector<16x64xf32> -> vector<16x64xf32>
    %88 = vector.extract_strided_slice %4 {offsets = [0, 256], sizes = [16, 64], strides = [1, 1]} : vector<16x1152xbf16> to vector<16x64xbf16>
    %89 = vector.extract_strided_slice %4 {offsets = [0, 640], sizes = [16, 64], strides = [1, 1]} : vector<16x1152xbf16> to vector<16x64xbf16>
    %90 = vector.extract_strided_slice %4 {offsets = [0, 1024], sizes = [16, 64], strides = [1, 1]} : vector<16x1152xbf16> to vector<16x64xbf16>
    %cst_28 = arith.constant dense<0.000000e+00> : vector<16x16xf32>
    %91 = tpu.matmul %88, %89, %cst_28 {dimension_numbers = #tpu.dot_dimension_numbers<[1], [1], [0], [0], [0, 0, 1, 0], [], []>} : vector<16x64xbf16>, vector<16x64xbf16>, vector<16x16xf32> -> vector<16x16xf32>
    %cst_29 = arith.constant 1.250000e-01 : f32
    %92 = vector.broadcast %cst_29 : f32 to vector<16x16xf32>
    %93 = arith.mulf %91, %92 : vector<16x16xf32>
    %cst_30 = arith.constant 0xFF800000 : f32
    %94 = vector.broadcast %cst_30 : f32 to vector<16x16xf32>
    %95 = arith.select %7, %93, %94 : vector<16x16xi1>, vector<16x16xf32>
    %cst_31 = arith.constant dense<0xFF800000> : vector<16xf32>
    %96 = vector.multi_reduction <maximumf>, %95, %cst_31 [1] : vector<16x16xf32> to vector<16xf32>
    %97 = vector.shape_cast %96 : vector<16xf32> to vector<16x1xf32>
    %98 = vector.broadcast %97 : vector<16x1xf32> to vector<16x16xf32>
    %99 = arith.subf %95, %98 : vector<16x16xf32>
    %100 = math.exp %99 : vector<16x16xf32>
    %cst_32 = arith.constant dense<0.000000e+00> : vector<16xf32>
    %101 = vector.multi_reduction <add>, %100, %cst_32 [1] : vector<16x16xf32> to vector<16xf32>
    %102 = vector.shape_cast %101 : vector<16xf32> to vector<16x1xf32>
    %103 = tpu.reciprocal %102 : vector<16x1xf32> -> vector<16x1xf32>
    %104 = vector.broadcast %103 : vector<16x1xf32> to vector<16x16xf32>
    %105 = arith.mulf %100, %104 : vector<16x16xf32>
    %106 = arith.truncf %105 : vector<16x16xf32> to vector<16x16xbf16>
    %cst_33 = arith.constant dense<0.000000e+00> : vector<16x64xf32>
    %107 = tpu.matmul %106, %90, %cst_33 {dimension_numbers = #tpu.dot_dimension_numbers<[1], [0], [0], [1], [0, 0, 1, 1], [], []>} : vector<16x16xbf16>, vector<16x64xbf16>, vector<16x64xf32> -> vector<16x64xf32>
    %108 = vector.extract_strided_slice %4 {offsets = [0, 320], sizes = [16, 64], strides = [1, 1]} : vector<16x1152xbf16> to vector<16x64xbf16>
    %109 = vector.extract_strided_slice %4 {offsets = [0, 704], sizes = [16, 64], strides = [1, 1]} : vector<16x1152xbf16> to vector<16x64xbf16>
    %110 = vector.extract_strided_slice %4 {offsets = [0, 1088], sizes = [16, 64], strides = [1, 1]} : vector<16x1152xbf16> to vector<16x64xbf16>
    %cst_34 = arith.constant dense<0.000000e+00> : vector<16x16xf32>
    %111 = tpu.matmul %108, %109, %cst_34 {dimension_numbers = #tpu.dot_dimension_numbers<[1], [1], [0], [0], [0, 0, 1, 0], [], []>} : vector<16x64xbf16>, vector<16x64xbf16>, vector<16x16xf32> -> vector<16x16xf32>
    %cst_35 = arith.constant 1.250000e-01 : f32
    %112 = vector.broadcast %cst_35 : f32 to vector<16x16xf32>
    %113 = arith.mulf %111, %112 : vector<16x16xf32>
    %cst_36 = arith.constant 0xFF800000 : f32
    %114 = vector.broadcast %cst_36 : f32 to vector<16x16xf32>
    %115 = arith.select %7, %113, %114 : vector<16x16xi1>, vector<16x16xf32>
    %cst_37 = arith.constant dense<0xFF800000> : vector<16xf32>
    %116 = vector.multi_reduction <maximumf>, %115, %cst_37 [1] : vector<16x16xf32> to vector<16xf32>
    %117 = vector.shape_cast %116 : vector<16xf32> to vector<16x1xf32>
    %118 = vector.broadcast %117 : vector<16x1xf32> to vector<16x16xf32>
    %119 = arith.subf %115, %118 : vector<16x16xf32>
    %120 = math.exp %119 : vector<16x16xf32>
    %cst_38 = arith.constant dense<0.000000e+00> : vector<16xf32>
    %121 = vector.multi_reduction <add>, %120, %cst_38 [1] : vector<16x16xf32> to vector<16xf32>
    %122 = vector.shape_cast %121 : vector<16xf32> to vector<16x1xf32>
    %123 = tpu.reciprocal %122 : vector<16x1xf32> -> vector<16x1xf32>
    %124 = vector.broadcast %123 : vector<16x1xf32> to vector<16x16xf32>
    %125 = arith.mulf %120, %124 : vector<16x16xf32>
    %126 = arith.truncf %125 : vector<16x16xf32> to vector<16x16xbf16>
    %cst_39 = arith.constant dense<0.000000e+00> : vector<16x64xf32>
    %127 = tpu.matmul %126, %110, %cst_39 {dimension_numbers = #tpu.dot_dimension_numbers<[1], [0], [0], [1], [0, 0, 1, 1], [], []>} : vector<16x16xbf16>, vector<16x64xbf16>, vector<16x64xf32> -> vector<16x64xf32>
    %128 = tpu.concatenate %27, %47, %67, %87, %107, %127 in 1 : vector<16x64xf32>, vector<16x64xf32>, vector<16x64xf32>, vector<16x64xf32>, vector<16x64xf32>, vector<16x64xf32> -> vector<16x384xf32>
    %129 = arith.truncf %128 : vector<16x384xf32> to vector<16x384xbf16>
    %c0_40 = arith.constant 0 : index
    %c0_41 = arith.constant 0 : index
    %130 = vector.load %arg3[%c0_40, %c0_41] : memref<384x384xbf16, #tpu.memory_space<vmem>>, vector<384x384xbf16>
    %cst_42 = arith.constant dense<0.000000e+00> : vector<16x384xf32>
    %131 = tpu.matmul %129, %130, %cst_42 {dimension_numbers = #tpu.dot_dimension_numbers<[1], [0], [0], [1], [0, 0, 1, 1], [], []>} : vector<16x384xbf16>, vector<384x384xbf16>, vector<16x384xf32> -> vector<16x384xf32>
    %c0_43 = arith.constant 0 : index
    %c0_44 = arith.constant 0 : index
    %132 = vector.load %arg4[%c0_43, %c0_44] : memref<1x384xf32, #tpu.memory_space<vmem>>, vector<1x384xf32>
    %133 = vector.broadcast %132 : vector<1x384xf32> to vector<16x384xf32>
    %134 = arith.addf %131, %133 : vector<16x384xf32>
    %c0_45 = arith.constant 0 : index
    %c0_46 = arith.constant 0 : index
    %c0_47 = arith.constant 0 : index
    %135 = vector.load %arg5[%c0_45, %c0_46, %c0_47] : memref<1x16x384xf32, #tpu.memory_space<vmem>>, vector<1x16x384xf32>
    %136 = vector.shape_cast %135 : vector<1x16x384xf32> to vector<16x384xf32>
    %137 = vector.shape_cast %134 : vector<16x384xf32> to vector<1x16x384xf32>
    tpu.vector_store %arg5[%c0_45, %c0_46, %c0_47], %137 {strides = array<i32>} : memref<1x16x384xf32, #tpu.memory_space<vmem>>, vector<1x16x384xf32>,
    return
  }
  func.func @transform_0(%arg0: i32) -> (i32, i32, i32) {
    %c0_i32 = arith.constant 0 : i32
    %c0_i32_0 = arith.constant 0 : i32
    %c0_i32_1 = arith.constant 0 : i32
    return %arg0, %c0_i32, %c0_i32_0 : i32, i32, i32
  }
  func.func @transform_1(%arg0: i32) -> (i32, i32) {
    %c0_i32 = arith.constant 0 : i32
    %c0_i32_0 = arith.constant 0 : i32
    %c0_i32_1 = arith.constant 0 : i32
    return %c0_i32, %c0_i32_0 : i32, i32
  }
  func.func @transform_2(%arg0: i32) -> (i32, i32) {
    %c0_i32 = arith.constant 0 : i32
    %c0_i32_0 = arith.constant 0 : i32
    %c0_i32_1 = arith.constant 0 : i32
    return %c0_i32, %c0_i32_0 : i32, i32
  }
  func.func @transform_3(%arg0: i32) -> (i32, i32) {
    %c0_i32 = arith.constant 0 : i32
    %c0_i32_0 = arith.constant 0 : i32
    %c0_i32_1 = arith.constant 0 : i32
    return %c0_i32, %c0_i32_0 : i32, i32
  }
  func.func @transform_4(%arg0: i32) -> (i32, i32, i32) {
    %c0_i32 = arith.constant 0 : i32
    %c0_i32_0 = arith.constant 0 : i32
    %c0_i32_1 = arith.constant 0 : i32
    return %arg0, %c0_i32, %c0_i32_0 : i32, i32, i32
  }
}

</mosaic_0001>

<bundles_post_ra>
// kernel: tpu_custom_call.1
= control target key start
LH: loop header
LB: loop body
LE: loop exit
PB: predicated region body
PF: predicated region fallthrough
CT: control target
= control target key end

     0   :  { %9 = vsyncpa [#allocation3], 0  ;;  %s5695_s0 = inlined_call_operand.hbm [shape: bf16[2,16,384], index: 0, kind: input, shape index: {}]   ;;  %s5696_s1 = inlined_call_operand.hbm [shape: bf16[384,1152], index: 1, kind: input, shape index: {}]   ;;  %s5697_s2 = inlined_call_operand.hbm [shape: bf16[384,384], index: 2, kind: input, shape index: {}]   ;;  %s5698_s3 = inlined_call_operand.hbm [shape: f32[1,384], index: 3, kind: input, shape index: {}]   ;;  %s5699_s4 = inlined_call_operand.hbm [shape: f32[2,16,384], index: 4, kind: output, shape index: {}]  }
   0x1   :  { %11 = vsyncpa [#allocation3 + $0x1], 0 }
   0x2   :  { %12 = vsyncpa [#allocation6], 0 }
   0x3   :  { %13 = vsyncpa [#allocation9], 0 }
   0x4   :  { %14 = vsyncpa [#allocation4], 0 }
   0x5   :  { %16 = vsyncpa [#allocation4 + $0x1], 0  ;;  %s5264_s15 = smov 0   ;;  %s5266_s16 = smov 0  }
   0x6   :  { %s5268_s17 = smov 0   ;;  %s5270_s18 = smov 0  }
   0x7 LB: > { %s5285_s19 = sadd.s32 4294967295, %s5227_s18   ;;  %s3400_s20 = sadd.s32 4294967294, %s5227_s18   ;;  %s5227_s18 = sphi %s5270_s18, %s5720_s18   ;;  %s5223_s17 = sphi %s5268_s17, %s5719_s17   ;;  %s5219_s16 = sphi %s5266_s16, %s5718_s16   ;;  %s5215_s15 = sphi %s5264_s15, %s5717_s15  }
   0x8   : > { %p42_p0 = scmp.ne.s32.totalorder %s5219_s16, %s5215_s15  ;;  %p43_p1 = scmp.eq.s32.totalorder %s5285_s19, 0 }
   0x9   : > { %p129_p2 = scmp.eq.s32.totalorder %s5285_s19, 1  ;;  %p135_p3 = scmp.eq.s32.totalorder %s3400_s20, 1 }
   0xa   : > { %p5294_p4 = por %p43_p1, %p42_p0  ;;  %p3401_p5 = scmp.ge.s32.totalorder %s5227_s18, 1 }
   0xb   : > { %p5299_p6 = por %p135_p3, %p42_p0  ;;  %p142_p7 = scmp.lt.s32.totalorder %s5227_s18, 3 }
   0xc   : > { %s153_s25 = sshll.u32 %s5696_s1, 4  ;;  %s5229_s27 = smov [#allocation5]   ;;  %s154_s25 = int_to_ptr.hbm [resolvable:$true] %s153_s25 }
   0xd   : > { %p5307_p8 = pnand %p3401_p5, %p142_p7  ;;  %s155_s28 = sshll.u32 %s5229_s27, 4  ;;  %s156_s28 = int_to_ptr.vmem [resolvable:$true] %s155_s28 }
   0xe   : > { %s167_s6 = sshll.u32 %s5697_s2, 4  ;;  %s5230_s7 = smov 576   ;;  %s168_s6 = int_to_ptr.hbm [resolvable:$true] %s167_s6 }
   0xf   : > { %p4902_p9 = pneg %p5307_p8  ;;  %s5231_s8 = smov 36  }
  0x10   : > { %s5232_s9 = smov [#allocation7]   ;;  %s5700_s11 = smov 192  }
  0x11   : > { %p5315_p10 = pnand %p4902_p9, %p43_p1  ;;  %s169_s10 = sshll.u32 %s5232_s9, 4  ;;  %s170_s10 = int_to_ptr.vmem [resolvable:$true] %s169_s10 }
  0x12   : > { %s5701_s12 = smov 12   ;;  %s182_s20 = sshll.u32 %s5698_s3, 4  ;;  %s183_s20 = int_to_ptr.hbm [resolvable:$true] %s182_s20 }
  0x13   : > { %4905 = dma.hbm_to_vmem [thread:$0]  (!%p5315_p10), %s154_s25, 27648, %s156_s28, [#allocation6], %s5230_s7, %s5230_s7, %s5231_s8  }
  0x14   : > { %4908 = dma.hbm_to_vmem [thread:$0]  (!%p5315_p10), %s168_s6, 9216, %s170_s10, [#allocation6], %s5700_s11, %s5700_s11, %s5701_s12  }
  0x15   : > { %s5235_s23 = smov [#allocation8]   ;;  %s5336_s25 = sadd.s32 1, %s5227_s18  }
  0x16   : > { %s184_s24 = sshll.u32 %s5235_s23, 4  ;;  %s26_s27 = ssub.s32 %s5227_s18, %s5336_s25  ;;  %s185_s24 = int_to_ptr.vmem [resolvable:$true] %s184_s24 }
  0x17   : > { %4911 = dma.hbm_to_vmem [thread:$0]  (!%p5315_p10), %s183_s20, 48, %s185_s24, [#allocation9]  }
  0x18   : > { %s29_s28 = sadd.s32 1, %s5223_s17  ;;  %p27_p12 = scmp.eq.s32.totalorder %s26_s27, 0 }
  0x19   : > { %p36_p13 = scmp.ne.s32.totalorder %s5223_s17, %s5219_s16  ;;  %p37_p0 = scmp.eq.s32.totalorder %s5227_s18, 0 }
  0x1a   : > { %p4923_p3 = scmp.lt.s32.totalorder %s5227_s18, 2  ;;  %s195_s6 = sand.u32 1, %s5223_s17  }
  0x1b   : > { %s5346_s30 = scalar_select %p27_p12, %s5223_s17, %s29_s28  }
  0x1c   : > { %p38_p5 = por %p37_p0, %p36_p13  ;;  %p5350_p7 = por %p129_p2, %p36_p13 }
  0x1d   : > { %s4882_s29 = smul.u32 24, %s5227_s18  ;;  %s196_s24 = scalar_lea.sflag [#allocation3], %s195_s6 }
  0x1e   : > { %s4881_s7 = smul.u32 24, %s195_s6  ;;  %p5359_p9 = pnand %p4923_p3, %p38_p5 }
  0x1f   : > { %s204_s10 = scalar_lea.hbm %s5695_s0, %s4882_s29  ;;  %s5130_s9 = scalar_lea.hbm %s5695_s0, 48 }
  0x20   : > { %s205_s14 = sshll.u32 %s204_s10, 4  ;;  %s199_s20 = scalar_lea.vmem [#allocation2], %s4881_s7  ;;  %s206_s14 = int_to_ptr.hbm [resolvable:$true] %s205_s14 }
  0x21   : > { %s207_s23 = sshll.u32 %s199_s20, 4  ;;  %s5123_s27 = sshra.s32 %s206_s14, 4  ;;  %s208_s23 = int_to_ptr.vmem [resolvable:$true] %s207_s23  ;;  %s5124_s27 = int_to_ptr.hbm [resolvable:$true] %s5123_s27 }
  0x22   : > { %s5125_s28 = scalar_lea.hbm %s5124_s27, 24  ;;  %p5127_p10 = pneg %p5359_p9 }
  0x23   : > { %p5126_p2 = scmp.ne.s32.totalorder %s5124_s27, %s5125_s28  ;;  %p5131_p0 = scmp.lt.s32.totalorder %s5124_s27, %s5695_s0 }
  0x24   : > { %p5132_p3 = scmp.lt.s32.totalorder %s5130_s9, %s5125_s28 }
  0x25   : > { %p5128_p12 = pnand %p5127_p10, %p5126_p2 }
  0x26   : > { %p5133_p5 = por %p5132_p3, %p5131_p0 }
  0x27   : > { %p5129_p13 = pneg %p5128_p12 }
  0x29   : > { %p5134_p11 = pnand %p5133_p5, %p5129_p13 }
  0x2b   : > { %5137 = shalt.err (!%p5134_p11)
}
  0x2c   : > { %s5708_s6 = smov 12   ;;  %s5709_s7 = smov 192  }
  0x2d   : > { %4915 = dma.hbm_to_vmem [thread:$0]  (!%p5359_p9), %s206_s14, 384, %s208_s23, %s196_s24, %s5709_s7, %s5709_s7, %s5708_s6  }
  0x2e   : > { %219 = sbr.rel (%p5307_p8) target bundleno = 1551 (0x60f), region = 36  ;;  %s5379_s10 = sand.u32 (!%p5307_p8), 1, %s5219_s16  }
  0x2f   : > { %s4883_s11 = smul.u32 (!%p5307_p8), 24, %s5379_s10  ;;  %s222_s12 = scalar_lea.sflag (!%p5307_p8), [#allocation3], %s5379_s10 }
  0x31   : > { %s5383_s20 = scalar_lea.vmem (!%p5307_p8), [#allocation2], %s4883_s11 }
  0x33   : > { %5198 = dma.done.wait (%p5294_p4), %s222_s12, 384  }
  0x34   : > { %5200 = vsyncadd (%p5294_p4), %s222_s12, 4294966912 }
  0x35   : > { %5202 = dma.done.wait (%p43_p1), [#allocation6], 36864  }
  0x36   : > { %5204 = vsyncadd (%p43_p1), [#allocation6], 4294930432 }
  0x37   : > { %5206 = dma.done.wait (%p43_p1), [#allocation9], 48  }
  0x38   : > { %5208 = vsyncadd (%p43_p1), [#allocation9], 4294967248  ;;  %v3677_v0 = vld [vmem:[#allocation5 + $0x1f8] sm:$0xf]  ;;  %v4660_v1 = vld [vmem:[#allocation5 + $0x218] sm:$0xf0] }
  0x39   : > { %v3965_v2 = vld [vmem:[#allocation5 + $0x438] sm:$0xf]  ;;  %v3678_v3 = vor.u32 %v4660_v1, %v3677_v0  ;;  %v4732_v4 = vld [vmem:[#allocation5 + $0x458] sm:$0xf0]  ;;  %v3679_v10 = vld [vmem:[#allocation5 + $0x21c] sm:$0xf0] }
  0x3a   : > { %v4253_v5 = vld [vmem:[#allocation5 + $0x678] sm:$0xf]  ;;  %v4804_v6 = vld [vmem:[#allocation5 + $0x698] sm:$0xf0]  ;;  %v3966_v7 = vor.u32 %v4732_v4, %v3965_v2  ;;  %v3641_v11 = vld [vmem:[#allocation5 + $0x1b0] sm:$0xf] }
  0x3b   : > { %v4254_v8 = vor.u32 %v4804_v6, %v4253_v5  ;;  %v4656_v9 = vld [vmem:[#allocation5 + $0x1fc] sm:$0xf]  ;;  %1631 = vmatpush.bf16.msra.mxu0 %v3678_v3  ;;  %v4651_v13 = vld [vmem:[#allocation5 + $0x1d0] sm:$0xf0]  ;;  %v3929_v14 = vld [vmem:[#allocation5 + $0x3f0] sm:$0xf] }
  0x3c   : > { %v3682_v12 = vor.u32 %v4656_v9, %v3679_v10  ;;  %v4723_v15 = vld [vmem:[#allocation5 + $0x410] sm:$0xf0]  ;;  %1645 = vmatpush.bf16.msra.mxu1 %v3966_v7  ;;  %v3642_v16 = vor.u32 %v4651_v13, %v3641_v11  ;;  %v4217_v18 = vld [vmem:[#allocation5 + $0x630] sm:$0xf]  ;;  %v3643_v22 = vld [vmem:[#allocation5 + $0x1d4] sm:$0xf0] }
  0x3d   : > { %1659 = vmatpush.bf16.msra.mxu2 %v4254_v8  ;;  %v3930_v17 = vor.u32 %v4723_v15, %v3929_v14  ;;  %v4795_v19 = vld [vmem:[#allocation5 + $0x650] sm:$0xf0]  ;;  %v3605_v23 = vld [vmem:[#allocation5 + $0x168] sm:$0xf]  ;;  %v4642_v24 = vld [vmem:[#allocation5 + $0x188] sm:$0xf0] }
  0x3e   : > { %v4647_v20 = vld [vmem:[#allocation5 + $0x1b4] sm:$0xf]  ;;  %1673 = vmatpush.bf16.msra.mxu3 %v3682_v12  ;;  %v4218_v21 = vor.u32 %v4795_v19, %v4217_v18  ;;  %v3893_v26 = vld [vmem:[#allocation5 + $0x3a8] sm:$0xf]  ;;  %v4714_v27 = vld [vmem:[#allocation5 + $0x3c8] sm:$0xf0]  ;;  %v3606_v29 = vor.u32 %v4642_v24, %v3605_v23 }
  0x3f   : > { %v3646_v25 = vor.u32 %v4647_v20, %v3643_v22  ;;  %v4181_v28 = vld [vmem:[#allocation5 + $0x5e8] sm:$0xf]  ;;  %1632 = vmatpush.bf16.msra.mxu0 %v3642_v16  ;;  %v4786_v30 = vld [vmem:[#allocation5 + $0x608] sm:$0xf0]  ;;  %v3607_v32 = vld [vmem:[#allocation5 + $0x18c] sm:$0xf0]  ;;  %v3894_v33 = vor.u32 %v4714_v27, %v3893_v26 }
  0x40   : > { %v4638_v31 = vld [vmem:[#allocation5 + $0x16c] sm:$0xf]  ;;  %1646 = vmatpush.bf16.msra.mxu1 %v3930_v17  ;;  %v4182_v34 = vor.u32 %v4786_v30, %v4181_v28  ;;  %v3569_v35 = vld [vmem:[#allocation5 + $0x120] sm:$0xf]  ;;  %v4633_v36 = vld [vmem:[#allocation5 + $0x140] sm:$0xf0] }
  0x41   : > { %1660 = vmatpush.bf16.msra.mxu2 %v4218_v21  ;;  %v3857_v37 = vld [vmem:[#allocation5 + $0x360] sm:$0xf]  ;;  %v3610_v38 = vor.u32 %v4638_v31, %v3607_v32  ;;  %v4705_v39 = vld [vmem:[#allocation5 + $0x380] sm:$0xf0]  ;;  %v3571_v43 = vld [vmem:[#allocation5 + $0x144] sm:$0xf0]  ;;  %v3570_v44 = vor.u32 %v4633_v36, %v3569_v35 }
  0x42   : > { %1674 = vmatpush.bf16.msra.mxu3 %v3646_v25  ;;  %v4145_v40 = vld [vmem:[#allocation5 + $0x5a0] sm:$0xf]  ;;  %v4777_v41 = vld [vmem:[#allocation5 + $0x5c0] sm:$0xf0]  ;;  %v3858_v45 = vor.u32 %v4705_v39, %v3857_v37  ;;  %v3533_v47 = vld [vmem:[#allocation5 + $0xd8] sm:$0xf] }
  0x43   : > { %v4629_v42 = vld [vmem:[#allocation5 + $0x124] sm:$0xf]  ;;  %1633 = vmatpush.bf16.msra.mxu0 %v3606_v29  ;;  %v4146_v46 = vor.u32 %v4777_v41, %v4145_v40  ;;  %v4624_v48 = vld [vmem:[#allocation5 + $0xf8] sm:$0xf0]  ;;  %v3821_v49 = vld [vmem:[#allocation5 + $0x318] sm:$0xf] }
  0x44   : > { %1647 = vmatpush.bf16.msra.mxu1 %v3894_v33  ;;  %v3574_v50 = vor.u32 %v4629_v42, %v3571_v43  ;;  %v4696_v51 = vld [vmem:[#allocation5 + $0x338] sm:$0xf0]  ;;  %v4109_v52 = vld [vmem:[#allocation5 + $0x558] sm:$0xf]  ;;  %v3535_v55 = vld [vmem:[#allocation5 + $0xfc] sm:$0xf0]  ;;  %v3534_v56 = vor.u32 %v4624_v48, %v3533_v47 }
  0x45   : > { %1661 = vmatpush.bf16.msra.mxu2 %v4182_v34  ;;  %v4768_v53 = vld [vmem:[#allocation5 + $0x578] sm:$0xf0]  ;;  %v3822_v57 = vor.u32 %v4696_v51, %v3821_v49  ;;  %v3497_v59 = vld [vmem:[#allocation5 + $0x90] sm:$0xf]  ;;  %v4615_v60 = vld [vmem:[#allocation5 + $0xb0] sm:$0xf0] }
  0x46   : > { %1675 = vmatpush.bf16.msra.mxu3 %v3610_v38  ;;  %v4620_v54 = vld [vmem:[#allocation5 + $0xdc] sm:$0xf]  ;;  %v4110_v58 = vor.u32 %v4768_v53, %v4109_v52  ;;  %v3785_v61 = vld [vmem:[#allocation5 + $0x2d0] sm:$0xf]  ;;  %v4687_v63 = vld [vmem:[#allocation5 + $0x2f0] sm:$0xf0]  ;;  %v3498_v4 = vor.u32 %v4615_v60, %v3497_v59 }
  0x47   : > { %1634 = vmatpush.bf16.msra.mxu0 %v3570_v44  ;;  %v3538_v62 = vor.u32 %v4620_v54, %v3535_v55  ;;  %v4073_v0 = vld [vmem:[#allocation5 + $0x510] sm:$0xf]  ;;  %v4759_v1 = vld [vmem:[#allocation5 + $0x530] sm:$0xf0]  ;;  %v3499_v3 = vld [vmem:[#allocation5 + $0xb4] sm:$0xf0]  ;;  %v3786_v5 = vor.u32 %v4687_v63, %v3785_v61 }
  0x48   : > { %1648 = vmatpush.bf16.msra.mxu1 %v3858_v45  ;;  %v4611_v2 = vld [vmem:[#allocation5 + $0x94] sm:$0xf]  ;;  %v4074_v6 = vor.u32 %v4759_v1, %v4073_v0  ;;  %v3461_v7 = vld [vmem:[#allocation5 + $0x48] sm:$0xf]  ;;  %v4606_v8 = vld [vmem:[#allocation5 + $0x68] sm:$0xf0] }
  0x49   : > { %1662 = vmatpush.bf16.msra.mxu2 %v4146_v46  ;;  %v3749_v9 = vld [vmem:[#allocation5 + $0x288] sm:$0xf]  ;;  %v3502_v10 = vor.u32 %v4611_v2, %v3499_v3  ;;  %v4678_v11 = vld [vmem:[#allocation5 + $0x2a8] sm:$0xf0]  ;;  %v3463_v15 = vld [vmem:[#allocation5 + $0x6c] sm:$0xf0]  ;;  %v3462_v16 = vor.u32 %v4606_v8, %v3461_v7 }
  0x4a   : > { %1676 = vmatpush.bf16.msra.mxu3 %v3574_v50  ;;  %v4037_v12 = vld [vmem:[#allocation5 + $0x4c8] sm:$0xf]  ;;  %v4750_v13 = vld [vmem:[#allocation5 + $0x4e8] sm:$0xf0]  ;;  %v3425_v17 = vld [vmem:[#allocation5] sm:$0xf]  ;;  %v3750_v19 = vor.u32 %v4678_v11, %v3749_v9 }
  0x4b   : > { %1635 = vmatpush.bf16.msra.mxu0 %v3534_v56  ;;  %v4602_v14 = vld [vmem:[#allocation5 + $0x4c] sm:$0xf]  ;;  %v4597_v18 = vld [vmem:[#allocation5 + $0x20] sm:$0xf0]  ;;  %v4038_v20 = vor.u32 %v4750_v13, %v4037_v12  ;;  %v3713_v21 = vld [vmem:[#allocation5 + $0x240] sm:$0xf] }
  0x4c   : > { %1649 = vmatpush.bf16.msra.mxu1 %v3822_v57  ;;  %v4669_v22 = vld [vmem:[#allocation5 + $0x260] sm:$0xf0]  ;;  %v4001_v23 = vld [vmem:[#allocation5 + $0x480] sm:$0xf]  ;;  %v3466_v24 = vor.u32 %v4602_v14, %v3463_v15  ;;  %v3427_v27 = vld [vmem:[#allocation5 + $0x24] sm:$0xf0]  ;;  %v3426_v31 = vor.u32 %v4597_v18, %v3425_v17 }
  0x4d   : > { %1663 = vmatpush.bf16.msra.mxu2 %v4110_v58  ;;  %v4741_v25 = vld [vmem:[#allocation5 + $0x4a0] sm:$0xf0]  ;;  %v4728_v28 = vld [vmem:[#allocation5 + $0x43c] sm:$0xf]  ;;  %v3967_v29 = vld [vmem:[#allocation5 + $0x45c] sm:$0xf0]  ;;  %v3714_v35 = vor.u32 %v4669_v22, %v3713_v21 }
  0x4e   : > { %1677 = vmatpush.bf16.msra.mxu3 %v3538_v62  ;;  %v4593_v26 = vld [vmem:[#allocation5 + $0x4] sm:$0xf]  ;;  %v4800_v30 = vld [vmem:[#allocation5 + $0x67c] sm:$0xf]  ;;  %v4255_v32 = vld [vmem:[#allocation5 + $0x69c] sm:$0xf0]  ;;  %v4002_v36 = vor.u32 %v4741_v25, %v4001_v23  ;;  %v3970_v40 = vor.u32 %v4728_v28, %v3967_v29 }
  0x4f   : > { %1636 = vmatpush.bf16.msra.mxu0 %v3498_v4  ;;  %v3685_v33 = vld [vmem:[#allocation5 + $0x200] sm:$0xf]  ;;  %v4661_v34 = vld [vmem:[#allocation5 + $0x220] sm:$0xf0]  ;;  %v3430_v39 = vor.u32 %v4593_v26, %v3427_v27  ;;  %v4719_v41 = vld [vmem:[#allocation5 + $0x3f4] sm:$0xf]  ;;  %v4258_v42 = vor.u32 %v4800_v30, %v4255_v32 }
  0x50   : > { %1650 = vmatpush.bf16.msra.mxu1 %v3786_v5  ;;  %v3973_v37 = vld [vmem:[#allocation5 + $0x440] sm:$0xf]  ;;  %v4733_v38 = vld [vmem:[#allocation5 + $0x460] sm:$0xf0]  ;;  %v3686_v43 = vor.u32 %v4661_v34, %v3685_v33  ;;  %v3931_v44 = vld [vmem:[#allocation5 + $0x414] sm:$0xf0] }
  0x51   : > { %1664 = vmatpush.bf16.msra.mxu2 %v4074_v6  ;;  %v4791_v45 = vld [vmem:[#allocation5 + $0x634] sm:$0xf]  ;;  %v4219_v46 = vld [vmem:[#allocation5 + $0x654] sm:$0xf0]  ;;  %v3974_v47 = vor.u32 %v4733_v38, %v3973_v37  ;;  %v4652_v49 = vld [vmem:[#allocation5 + $0x1d8] sm:$0xf0]  ;;  %v3934_v54 = vor.u32 %v4719_v41, %v3931_v44 }
  0x52   : > { %1678 = vmatpush.bf16.msra.mxu3 %v3502_v10  ;;  %v3649_v48 = vld [vmem:[#allocation5 + $0x1b8] sm:$0xf]  ;;  %v4724_v51 = vld [vmem:[#allocation5 + $0x418] sm:$0xf0]  ;;  %v3413_v52 = vld [vmem:[%s5383_s20] sm:$0xf]  ;;  %v4222_v59 = vor.u32 %v4791_v45, %v4219_v46 }
  0x53   : > { %1637 = vmatpush.bf16.msra.mxu0 %v3462_v16  ;;  %v3937_v50 = vld [vmem:[#allocation5 + $0x3f8] sm:$0xf]  ;;  %v4591_v53 = vld [vmem:[%s5383_s20 + $0x8] sm:$0xf0]  ;;  %v4710_v55 = vld [vmem:[#allocation5 + $0x3ac] sm:$0xf]  ;;  %v3650_v60 = vor.u32 %v4652_v49, %v3649_v48 }
  0x54   : > { %1651 = vmatpush.bf16.msra.mxu1 %v3750_v19  ;;  %v3895_v56 = vld [vmem:[#allocation5 + $0x3cc] sm:$0xf0]  ;;  %v4782_v57 = vld [vmem:[#allocation5 + $0x5ec] sm:$0xf]  ;;  %v5399_v58 = vor.u32 %v4591_v53, %v3413_v52  ;;  %v4643_v63 = vld [vmem:[#allocation5 + $0x190] sm:$0xf0]  ;;  %v3938_v0 = vor.u32 %v4724_v51, %v3937_v50 }
  0x55   : > { %1665 = vmatpush.bf16.msra.mxu2 %v4038_v20  ;;  %v4183_v61 = vld [vmem:[#allocation5 + $0x60c] sm:$0xf0]  ;;  %v4590_v2 = vld [vmem:[%s5383_s20 + $0x4] sm:$0xf]  ;;  %v3415_v3 = vld [vmem:[%s5383_s20 + $0xc] sm:$0xf0]  ;;  %v3898_v8 = vor.u32 %v4710_v55, %v3895_v56 }
  0x56   : > { %1679 = vmatpush.bf16.msra.mxu3 %v3466_v24  ;;  %v3613_v62 = vld [vmem:[#allocation5 + $0x170] sm:$0xf]  ;;  %v4715_v4 = vld [vmem:[#allocation5 + $0x3d0] sm:$0xf0]  ;;  %v5404_v5 = vor.u32 %v4590_v2, %v3415_v3  ;;  %v4592_v7 = vld [vmem:[%s5383_s20 + $0x10] sm:$0xf0]  ;;  %v4186_v10 = vor.u32 %v4782_v57, %v4183_v61 }
  0x57   : > { %1638 = vmatpush.bf16.msra.mxu0 %v3426_v31  ;;  %v3901_v1 = vld [vmem:[#allocation5 + $0x3b0] sm:$0xf]  ;;  %v3614_v11 = vor.u32 %v4643_v63, %v3613_v62  ;;  %v4701_v12 = vld [vmem:[#allocation5 + $0x364] sm:$0xf]  ;;  %v3859_v13 = vld [vmem:[#allocation5 + $0x384] sm:$0xf0] }
  0x58   : > { %1652 = vmatpush.bf16.msra.mxu1 %v3714_v35  ;;  %v3421_v6 = vld [vmem:[%s5383_s20 + $0x8] sm:$0xf]  ;;  %v4773_v14 = vld [vmem:[#allocation5 + $0x5a4] sm:$0xf]  ;;  %v3902_v15 = vor.u32 %v4715_v4, %v3901_v1  ;;  %v4147_v16 = vld [vmem:[#allocation5 + $0x5c4] sm:$0xf0]  ;;  %v3862_v21 = vor.u32 %v4701_v12, %v3859_v13 }
  0x59   : > { %1666 = vmatpush.bf16.msra.mxu2 %v4002_v36  ;;  %v5409_v9 = vor.u32 %v4592_v7, %v3421_v6  ;;  %v3577_v17 = vld [vmem:[#allocation5 + $0x128] sm:$0xf]  ;;  %v4634_v18 = vld [vmem:[#allocation5 + $0x148] sm:$0xf0]  ;;  %v4150_v22 = vor.u32 %v4773_v14, %v4147_v16  ;;  %v4692_v24 = vld [vmem:[#allocation5 + $0x31c] sm:$0xf] }
  0x5a   : > { %1680 = vmatpush.bf16.msra.mxu3 %v3430_v39  ;;  %1639 = vmatmul.bf16.vlgmr.msra.gmra.mxu0 %v5399_v58  ;;  %v3865_v19 = vld [vmem:[#allocation5 + $0x368] sm:$0xf]  ;;  %v4706_v20 = vld [vmem:[#allocation5 + $0x388] sm:$0xf0]  ;;  %v3578_v23 = vor.u32 %v4634_v18, %v3577_v17  ;;  %v3823_v25 = vld [vmem:[#allocation5 + $0x33c] sm:$0xf0] }
  0x5b   : > { %1687 = vmatpush.bf16.msrb.mxu0 %v3970_v40  ;;  %1653 = vmatmul.bf16.vlgmr.msra.gmra.mxu1 %v5404_v5  ;;  %v4764_v26 = vld [vmem:[#allocation5 + $0x55c] sm:$0xf]  ;;  %v3866_v27 = vor.u32 %v4706_v20, %v3865_v19  ;;  %v4111_v28 = vld [vmem:[#allocation5 + $0x57c] sm:$0xf0]  ;;  %v4625_v30 = vld [vmem:[#allocation5 + $0x100] sm:$0xf0]  ;;  %v3826_v33 = vor.u32 %v4692_v24, %v3823_v25 }
  0x5c   : > { %1701 = vmatpush.bf16.msrb.mxu1 %v4258_v42  ;;  %1667 = vmatmul.bf16.vlgmr.msra.gmra.mxu2 %v5409_v9  ;;  %v3541_v29 = vld [vmem:[#allocation5 + $0xe0] sm:$0xf]  ;;  %v4697_v32 = vld [vmem:[#allocation5 + $0x340] sm:$0xf0]  ;;  %v4114_v34 = vor.u32 %v4764_v26, %v4111_v28  ;;  %v4683_v36 = vld [vmem:[#allocation5 + $0x2d4] sm:$0xf] }
  0x5d   : > { %1715 = vmatpush.bf16.msrb.mxu2 %v3686_v43  ;;  %1681 = vmatmul.bf16.vlgmr.msra.gmra.mxu3 %v5399_v58  ;;  %v3829_v31 = vld [vmem:[#allocation5 + $0x320] sm:$0xf]  ;;  %v3542_v35 = vor.u32 %v4625_v30, %v3541_v29  ;;  %v3787_v37 = vld [vmem:[#allocation5 + $0x2f4] sm:$0xf0]  ;;  %v4755_v38 = vld [vmem:[#allocation5 + $0x514] sm:$0xf] }
  0x5e   : > { %1729 = vmatpush.bf16.msrb.mxu3 %v3974_v47  ;;  %v3830_v39 = vor.u32 %v4697_v32, %v3829_v31  ;;  %v4075_v40 = vld [vmem:[#allocation5 + $0x534] sm:$0xf0]  ;;  %v4616_v42 = vld [vmem:[#allocation5 + $0xb8] sm:$0xf0]  ;;  %v3790_v45 = vor.u32 %v4683_v36, %v3787_v37  ;;  %v4674_v48 = vld [vmem:[#allocation5 + $0x28c] sm:$0xf] }
  0x5f   : > { %1688 = vmatpush.bf16.msrb.mxu0 %v3934_v54  ;;  %v3505_v41 = vld [vmem:[#allocation5 + $0x98] sm:$0xf]  ;;  %v4688_v44 = vld [vmem:[#allocation5 + $0x2f8] sm:$0xf0]  ;;  %v4078_v46 = vor.u32 %v4755_v38, %v4075_v40  ;;  %v3751_v49 = vld [vmem:[#allocation5 + $0x2ac] sm:$0xf0] }
  0x60   : > { %1702 = vmatpush.bf16.msrb.mxu1 %v4222_v59  ;;  %v3793_v43 = vld [vmem:[#allocation5 + $0x2d8] sm:$0xf]  ;;  %v3506_v47 = vor.u32 %v4616_v42, %v3505_v41  ;;  %v4746_v50 = vld [vmem:[#allocation5 + $0x4cc] sm:$0xf]  ;;  %v4039_v52 = vld [vmem:[#allocation5 + $0x4ec] sm:$0xf0]  ;;  %v3754_v57 = vor.u32 %v4674_v48, %v3751_v49 }
  0x61   : > { %1716 = vmatpush.bf16.msrb.mxu2 %v3650_v60  ;;  %v3794_v51 = vor.u32 %v4688_v44, %v3793_v43  ;;  %v3469_v53 = vld [vmem:[#allocation5 + $0x50] sm:$0xf]  ;;  %v4607_v54 = vld [vmem:[#allocation5 + $0x70] sm:$0xf0]  ;;  %v4665_v59 = vld [vmem:[#allocation5 + $0x244] sm:$0xf]  ;;  %v4042_v61 = vor.u32 %v4746_v50, %v4039_v52 }
  0x62   : > { %1730 = vmatpush.bf16.msrb.mxu3 %v3938_v0  ;;  %v3757_v55 = vld [vmem:[#allocation5 + $0x290] sm:$0xf]  ;;  %v4679_v56 = vld [vmem:[#allocation5 + $0x2b0] sm:$0xf0]  ;;  %v3715_v60 = vld [vmem:[#allocation5 + $0x264] sm:$0xf0]  ;;  %v3470_v62 = vor.u32 %v4607_v54, %v3469_v53 }
  0x63   : > { %1689 = vmatpush.bf16.msrb.mxu0 %v3898_v8  ;;  %v4737_v63 = vld [vmem:[#allocation5 + $0x484] sm:$0xf]  ;;  %v4003_v0 = vld [vmem:[#allocation5 + $0x4a4] sm:$0xf0]  ;;  %v3758_v2 = vor.u32 %v4679_v56, %v3757_v55  ;;  %v4598_v3 = vld [vmem:[#allocation5 + $0x28] sm:$0xf0] }
  0x64   : > { %1703 = vmatpush.bf16.msrb.mxu1 %v4186_v10  ;;  %v3433_v1 = vld [vmem:[#allocation5 + $0x8] sm:$0xf]  ;;  %v4670_v6 = vld [vmem:[#allocation5 + $0x268] sm:$0xf0]  ;;  %v4261_v7 = vld [vmem:[#allocation5 + $0x680] sm:$0xf] }
  0x65   : > { %1717 = vmatpush.bf16.msrb.mxu2 %v3614_v11  ;;  %v3721_v4 = vld [vmem:[#allocation5 + $0x248] sm:$0xf]  ;;  %v4805_v8 = vld [vmem:[#allocation5 + $0x6a0] sm:$0xf0]  ;;  %v3718_v11 = vor.u32 %v4665_v59, %v3715_v60  ;;  %v3434_v16 = vor.u32 %v4598_v3, %v3433_v1  ;;  %v4796_v24 = vld [vmem:[#allocation5 + $0x658] sm:$0xf0] }
  0x66   : > { %1731 = vmatpush.bf16.msrb.mxu3 %v3902_v15  ;;  %v4657_v10 = vld [vmem:[#allocation5 + $0x204] sm:$0xf]  ;;  %v3687_v12 = vld [vmem:[#allocation5 + $0x224] sm:$0xf0]  ;;  %v4006_v15 = vor.u32 %v4737_v63, %v4003_v0  ;;  %v3722_v19 = vor.u32 %v4670_v6, %v3721_v4  ;;  %v4262_v20 = vor.u32 %v4805_v8, %v4261_v7  ;;  %v4648_v25 = vld [vmem:[#allocation5 + $0x1bc] sm:$0xf] }
  0x67   : > { %1690 = vmatpush.bf16.msrb.mxu0 %v3862_v21  ;;  %v4729_v13 = vld [vmem:[#allocation5 + $0x444] sm:$0xf]  ;;  %v3975_v14 = vld [vmem:[#allocation5 + $0x464] sm:$0xf0]  ;;  %v3690_v21 = vor.u32 %v4657_v10, %v3687_v12  ;;  %v4720_v28 = vld [vmem:[#allocation5 + $0x3fc] sm:$0xf] }
  0x68   : > { %1704 = vmatpush.bf16.msrb.mxu1 %v4150_v22  ;;  %v4801_v17 = vld [vmem:[#allocation5 + $0x684] sm:$0xf]  ;;  %v4263_v18 = vld [vmem:[#allocation5 + $0x6a4] sm:$0xf0]  ;;  %v3978_v22 = vor.u32 %v4729_v13, %v3975_v14  ;;  %v3939_v29 = vld [vmem:[#allocation5 + $0x41c] sm:$0xf0] }
  0x69   : > { %1718 = vmatpush.bf16.msrb.mxu2 %v3578_v23  ;;  %v4225_v23 = vld [vmem:[#allocation5 + $0x638] sm:$0xf]  ;;  %v4266_v26 = vor.u32 %v4801_v17, %v4263_v18  ;;  %v4792_v30 = vld [vmem:[#allocation5 + $0x63c] sm:$0xf]  ;;  %v4227_v31 = vld [vmem:[#allocation5 + $0x65c] sm:$0xf0] }
  0x6a   : > { %1732 = vmatpush.bf16.msrb.mxu3 %v3866_v27  ;;  %v3651_v27 = vld [vmem:[#allocation5 + $0x1dc] sm:$0xf0]  ;;  %v4226_v32 = vor.u32 %v4796_v24, %v4225_v23  ;;  %v4787_v36 = vld [vmem:[#allocation5 + $0x610] sm:$0xf0]  ;;  %v4230_v38 = vor.u32 %v4792_v30, %v4227_v31  ;;  %v3903_v41 = vld [vmem:[#allocation5 + $0x3d4] sm:$0xf0] }
  0x6b   : > { %1691 = vmatpush.bf16.msrb.mxu0 %v3826_v33  ;;  %v3654_v33 = vor.u32 %v4648_v25, %v3651_v27  ;;  %v4639_v37 = vld [vmem:[#allocation5 + $0x174] sm:$0xf]  ;;  %v4191_v43 = vld [vmem:[#allocation5 + $0x614] sm:$0xf0]  ;;  %v4778_v48 = vld [vmem:[#allocation5 + $0x5c8] sm:$0xf0] }
  0x6c   : > { %1705 = vmatpush.bf16.msrb.mxu1 %v4114_v34  ;;  %v3942_v34 = vor.u32 %v4720_v28, %v3939_v29  ;;  %v4711_v40 = vld [vmem:[#allocation5 + $0x3b4] sm:$0xf]  ;;  %v4630_v49 = vld [vmem:[#allocation5 + $0x12c] sm:$0xf]  ;;  %v3867_v53 = vld [vmem:[#allocation5 + $0x38c] sm:$0xf0] }
  0x6d   : > { %1719 = vmatpush.bf16.msrb.mxu2 %v3542_v35  ;;  %v4189_v35 = vld [vmem:[#allocation5 + $0x5f0] sm:$0xf]  ;;  %v4783_v42 = vld [vmem:[#allocation5 + $0x5f4] sm:$0xf]  ;;  %v4702_v52 = vld [vmem:[#allocation5 + $0x36c] sm:$0xf] }
  0x6e   : > { %1733 = vmatpush.bf16.msrb.mxu3 %v3830_v39  ;;  %v3615_v39 = vld [vmem:[#allocation5 + $0x194] sm:$0xf0]  ;;  %v4190_v44 = vor.u32 %v4787_v36, %v4189_v35  ;;  %v4194_v50 = vor.u32 %v4783_v42, %v4191_v43  ;;  %v4774_v54 = vld [vmem:[#allocation5 + $0x5ac] sm:$0xf]  ;;  %v4155_v55 = vld [vmem:[#allocation5 + $0x5cc] sm:$0xf0]  ;;  %v3870_v59 = vor.u32 %v4702_v52, %v3867_v53 }
  0x6f   : > { %1692 = vmatpush.bf16.msrb.mxu0 %v3790_v45  ;;  %v3618_v45 = vor.u32 %v4639_v37, %v3615_v39  ;;  %v4117_v60 = vld [vmem:[#allocation5 + $0x560] sm:$0xf]  ;;  %v4158_v63 = vor.u32 %v4774_v54, %v4155_v55  ;;  %v3543_v0 = vld [vmem:[#allocation5 + $0x104] sm:$0xf0]  ;;  %v4693_v1 = vld [vmem:[#allocation5 + $0x324] sm:$0xf] }
  0x70   : > { %1706 = vmatpush.bf16.msrb.mxu1 %v4078_v46  ;;  %v3906_v46 = vor.u32 %v4711_v40, %v3903_v41  ;;  %v4765_v3 = vld [vmem:[#allocation5 + $0x564] sm:$0xf]  ;;  %v4119_v4 = vld [vmem:[#allocation5 + $0x584] sm:$0xf0]  ;;  %v4081_v10 = vld [vmem:[#allocation5 + $0x518] sm:$0xf] }
  0x71   : > { %1720 = vmatpush.bf16.msrb.mxu2 %v3506_v47  ;;  %v4153_v47 = vld [vmem:[#allocation5 + $0x5a8] sm:$0xf]  ;;  %v4612_v12 = vld [vmem:[#allocation5 + $0x9c] sm:$0xf]  ;;  %v4122_v13 = vor.u32 %v4765_v3, %v4119_v4  ;;  %v3507_v14 = vld [vmem:[#allocation5 + $0xbc] sm:$0xf0] }
  0x72   : > { %1734 = vmatpush.bf16.msrb.mxu3 %v3794_v51  ;;  %v3579_v51 = vld [vmem:[#allocation5 + $0x14c] sm:$0xf0]  ;;  %v4154_v56 = vor.u32 %v4778_v48, %v4153_v47  ;;  %v4756_v17 = vld [vmem:[#allocation5 + $0x51c] sm:$0xf]  ;;  %v4083_v18 = vld [vmem:[#allocation5 + $0x53c] sm:$0xf0] }
  0x73   : > { %1693 = vmatpush.bf16.msrb.mxu0 %v3754_v57  ;;  %v3582_v57 = vor.u32 %v4630_v49, %v3579_v51  ;;  %v4751_v23 = vld [vmem:[#allocation5 + $0x4f0] sm:$0xf0]  ;;  %v4086_v25 = vor.u32 %v4756_v17, %v4083_v18  ;;  %v3759_v28 = vld [vmem:[#allocation5 + $0x2b4] sm:$0xf0]  ;;  %v4742_v35 = vld [vmem:[#allocation5 + $0x4a8] sm:$0xf0] }
  0x74   : > { %1707 = vmatpush.bf16.msrb.mxu1 %v4042_v61  ;;  %v4769_v61 = vld [vmem:[#allocation5 + $0x580] sm:$0xf0]  ;;  %v4603_v24 = vld [vmem:[#allocation5 + $0x54] sm:$0xf]  ;;  %v4047_v30 = vld [vmem:[#allocation5 + $0x4f4] sm:$0xf0] }
  0x75   : > { %1721 = vmatpush.bf16.msrb.mxu2 %v3470_v62  ;;  %v4621_v62 = vld [vmem:[#allocation5 + $0xe4] sm:$0xf]  ;;  %v4118_v6 = vor.u32 %v4769_v61, %v4117_v60  ;;  %v4675_v27 = vld [vmem:[#allocation5 + $0x294] sm:$0xf]  ;;  %v4594_v36 = vld [vmem:[#allocation5 + $0xc] sm:$0xf] }
  0x76   : > { %1735 = vmatpush.bf16.msrb.mxu3 %v3758_v2  ;;  %v3831_v2 = vld [vmem:[#allocation5 + $0x344] sm:$0xf0]  ;;  %v3546_v7 = vor.u32 %v4621_v62, %v3543_v0  ;;  %v4747_v29 = vld [vmem:[#allocation5 + $0x4d4] sm:$0xf]  ;;  %v3435_v37 = vld [vmem:[#allocation5 + $0x2c] sm:$0xf0] }
  0x77   : > { %1694 = vmatpush.bf16.msrb.mxu0 %v3718_v11  ;;  %v3834_v8 = vor.u32 %v4693_v1, %v3831_v2  ;;  %v4760_v11 = vld [vmem:[#allocation5 + $0x538] sm:$0xf0]  ;;  %v4666_v39 = vld [vmem:[#allocation5 + $0x24c] sm:$0xf]  ;;  %v3723_v40 = vld [vmem:[#allocation5 + $0x26c] sm:$0xf0]  ;;  %v3438_v48 = vor.u32 %v4594_v36, %v3435_v37 }
  0x78   : > { %1708 = vmatpush.bf16.msrb.mxu1 %v4006_v15  ;;  %v4684_v15 = vld [vmem:[#allocation5 + $0x2dc] sm:$0xf]  ;;  %v4738_v41 = vld [vmem:[#allocation5 + $0x48c] sm:$0xf]  ;;  %v4011_v42 = vld [vmem:[#allocation5 + $0x4ac] sm:$0xf0]  ;;  %v3726_v49 = vor.u32 %v4666_v39, %v3723_v40 }
  0x79   : > { %1722 = vmatpush.bf16.msrb.mxu2 %v3434_v16  ;;  %v3795_v16 = vld [vmem:[#allocation5 + $0x2fc] sm:$0xf0]  ;;  %v3693_v43 = vld [vmem:[#allocation5 + $0x208] sm:$0xf]  ;;  %v4734_v47 = vld [vmem:[#allocation5 + $0x468] sm:$0xf0] }
  0x7a   : > { %1736 = vmatpush.bf16.msrb.mxu3 %v3722_v19  ;;  %1695 = vmatmul.bf16.vlgmr.msrb.gmra.mxu0 %v5404_v5  ;;  %v4082_v19 = vor.u32 %v4760_v11, %v4081_v10  ;;  %v3657_v52 = vld [vmem:[#allocation5 + $0x1c0] sm:$0xf]  ;;  %v4269_v53 = vld [vmem:[#allocation5 + $0x688] sm:$0xf]  ;;  %v4806_v54 = vld [vmem:[#allocation5 + $0x6a8] sm:$0xf0] }
  0x7b   : > { %1743 = vmatpush.bf16.msra.mxu0 %v4262_v20  ;;  %1709 = vmatmul.bf16.vlgmr.msrb.gmra.mxu1 %v5409_v9  ;;  %v3510_v20 = vor.u32 %v4612_v12, %v3507_v14  ;;  %v3945_v60 = vld [vmem:[#allocation5 + $0x400] sm:$0xf]  ;;  %v4725_v61 = vld [vmem:[#allocation5 + $0x420] sm:$0xf0]  ;;  %v4270_v62 = vor.u32 %v4806_v54, %v4269_v53  ;;  %v3621_v0 = vld [vmem:[#allocation5 + $0x178] sm:$0xf] }
  0x7c   : > { %1757 = vmatpush.bf16.msra.mxu1 %v3690_v21  ;;  %1723 = vmatmul.bf16.vlgmr.msrb.gmra.mxu2 %v5399_v58  ;;  %v3798_v21 = vor.u32 %v4684_v15, %v3795_v16  ;;  %v4233_v2 = vld [vmem:[#allocation5 + $0x640] sm:$0xf]  ;;  %v4797_v3 = vld [vmem:[#allocation5 + $0x660] sm:$0xf0]  ;;  %v3946_v4 = vor.u32 %v4725_v61, %v3945_v60  ;;  %v3909_v10 = vld [vmem:[#allocation5 + $0x3b8] sm:$0xf] }
  0x7d   : > { %1771 = vmatpush.bf16.msra.mxu2 %v3978_v22  ;;  %1737 = vmatmul.bf16.vlgmr.msrb.gmra.mxu3 %v5404_v5  ;;  %v4045_v22 = vld [vmem:[#allocation5 + $0x4d0] sm:$0xf]  ;;  %v4716_v11 = vld [vmem:[#allocation5 + $0x3d8] sm:$0xf0]  ;;  %v4234_v12 = vor.u32 %v4797_v3, %v4233_v2  ;;  %v4197_v16 = vld [vmem:[#allocation5 + $0x5f8] sm:$0xf] }
  0x7e   : > { %1785 = vmatpush.bf16.msra.mxu3 %v4266_v26  ;;  %v3471_v26 = vld [vmem:[#allocation5 + $0x74] sm:$0xf0]  ;;  %v4046_v31 = vor.u32 %v4751_v23, %v4045_v22  ;;  %v3585_v14 = vld [vmem:[#allocation5 + $0x130] sm:$0xf]  ;;  %v4788_v17 = vld [vmem:[#allocation5 + $0x618] sm:$0xf0]  ;;  %v3910_v18 = vor.u32 %v4716_v11, %v3909_v10 }
  0x7f   : > { %1744 = vmatpush.bf16.msra.mxu0 %v4226_v32  ;;  %v4009_v32 = vld [vmem:[#allocation5 + $0x488] sm:$0xf]  ;;  %v3873_v22 = vld [vmem:[#allocation5 + $0x370] sm:$0xf]  ;;  %v4707_v23 = vld [vmem:[#allocation5 + $0x390] sm:$0xf0] }
  0x80   : > { %1758 = vmatpush.bf16.msra.mxu1 %v3654_v33  ;;  %v3474_v33 = vor.u32 %v4603_v24, %v3471_v26  ;;  %v4198_v24 = vor.u32 %v4788_v17, %v4197_v16  ;;  %v3549_v26 = vld [vmem:[#allocation5 + $0xe8] sm:$0xf]  ;;  %v4761_v53 = vld [vmem:[#allocation5 + $0x540] sm:$0xf0]  ;;  %v4680_v60 = vld [vmem:[#allocation5 + $0x2b8] sm:$0xf0] }
  0x81   : > { %1772 = vmatpush.bf16.msra.mxu2 %v3942_v34  ;;  %v3762_v34 = vor.u32 %v4675_v27, %v3759_v28  ;;  %v4161_v28 = vld [vmem:[#allocation5 + $0x5b0] sm:$0xf]  ;;  %v4125_v40 = vld [vmem:[#allocation5 + $0x568] sm:$0xf]  ;;  %v4053_v2 = vld [vmem:[#allocation5 + $0x4d8] sm:$0xf] }
  0x82   : > { %1786 = vmatpush.bf16.msra.mxu3 %v4230_v38  ;;  %v4050_v38 = vor.u32 %v4747_v29, %v4047_v30  ;;  %v4779_v29 = vld [vmem:[#allocation5 + $0x5d0] sm:$0xf0]  ;;  %v3874_v30 = vor.u32 %v4707_v23, %v3873_v22  ;;  %v3441_v61 = vld [vmem:[#allocation5 + $0x10] sm:$0xf]  ;;  %v4752_v3 = vld [vmem:[#allocation5 + $0x4f8] sm:$0xf0] }
  0x83   : > { %1745 = vmatpush.bf16.msra.mxu0 %v4190_v44  ;;  %v4662_v44 = vld [vmem:[#allocation5 + $0x228] sm:$0xf0]  ;;  %v4162_v36 = vor.u32 %v4779_v29, %v4161_v28  ;;  %v3983_v10 = vld [vmem:[#allocation5 + $0x46c] sm:$0xf0]  ;;  %v4663_v23 = vld [vmem:[#allocation5 + $0x230] sm:$0xf0] }
  0x84   : > { %1759 = vmatpush.bf16.msra.mxu1 %v3618_v45  ;;  %v4010_v45 = vor.u32 %v4742_v35, %v4009_v32  ;;  %v3694_v51 = vor.u32 %v4662_v44, %v3693_v43  ;;  %v4631_v32 = vld [vmem:[#allocation5 + $0x134] sm:$0xf]  ;;  %v4698_v35 = vld [vmem:[#allocation5 + $0x348] sm:$0xf0]  ;;  %v4617_v43 = vld [vmem:[#allocation5 + $0xc0] sm:$0xf0] }
  0x85   : > { %1773 = vmatpush.bf16.msra.mxu2 %v3906_v46  ;;  %v3981_v46 = vld [vmem:[#allocation5 + $0x448] sm:$0xf]  ;;  %v4622_v44 = vld [vmem:[#allocation5 + $0xec] sm:$0xf]  ;;  %v3729_v11 = vld [vmem:[#allocation5 + $0x250] sm:$0xf] }
  0x86   : > { %1787 = vmatpush.bf16.msra.mxu3 %v4194_v50  ;;  %v4014_v50 = vor.u32 %v4738_v41, %v4011_v42  ;;  %v3982_v55 = vor.u32 %v4734_v47, %v3981_v46  ;;  %v4770_v41 = vld [vmem:[#allocation5 + $0x588] sm:$0xf0]  ;;  %v3801_v46 = vld [vmem:[#allocation5 + $0x2e0] sm:$0xf]  ;;  %v4689_v47 = vld [vmem:[#allocation5 + $0x300] sm:$0xf0] }
  0x87   : > { %1746 = vmatpush.bf16.msra.mxu0 %v4154_v56  ;;  %v4653_v56 = vld [vmem:[#allocation5 + $0x1e0] sm:$0xf0]  ;;  %v3802_v54 = vor.u32 %v4689_v47, %v3801_v46  ;;  %v3947_v28 = vld [vmem:[#allocation5 + $0x424] sm:$0xf0]  ;;  %v4726_v46 = vld [vmem:[#allocation5 + $0x428] sm:$0xf0] }
  0x88   : > { %1760 = vmatpush.bf16.msra.mxu1 %v3582_v57  ;;  %v4658_v57 = vld [vmem:[#allocation5 + $0x20c] sm:$0xf]  ;;  %v4793_v29 = vld [vmem:[#allocation5 + $0x644] sm:$0xf]  ;;  %vm2036_vm0 = vcmask 523264   ;;  %s5236_s21 = smov 64  }
  0x89   : > { %1774 = vmatpush.bf16.msra.mxu2 %v3870_v59  ;;  %v3695_v59 = vld [vmem:[#allocation5 + $0x22c] sm:$0xf0]  ;;  %vm2061_vm2 = vcmask 130048   ;;  %s4884_s26 = smul.u32 48, %s5379_s10  ;;  %s3283_s8 = scalar_lea.sflag [#allocation4], %s5379_s10 }
  0x8a   : > { %1788 = vmatpush.bf16.msra.mxu3 %v4158_v63  ;;  %v3658_v63 = vor.u32 %v4653_v56, %v3657_v52  ;;  %v3698_v1 = vor.u32 %v4658_v57, %v3695_v59  ;;  %v4089_v52 = vld [vmem:[#allocation5 + $0x520] sm:$0xf]  ;;  %v4613_v56 = vld [vmem:[#allocation5 + $0xa4] sm:$0xf]  ;;  %v3515_v57 = vld [vmem:[#allocation5 + $0xc4] sm:$0xf0] }
  0x8b   : > { %1747 = vmatpush.bf16.msra.mxu0 %v4118_v6  ;;  %v4644_v6 = vld [vmem:[#allocation5 + $0x198] sm:$0xf0]  ;;  %v3765_v59 = vld [vmem:[#allocation5 + $0x298] sm:$0xf]  ;;  %s5653_s13 = scalar_lea.vmem [#allocation10], %s4884_s26  ;;  %s4885_s14 = smul.u32 48, %s5285_s19 }
  0x8c   : > { %1761 = vmatpush.bf16.msra.mxu1 %v3546_v7  ;;  %v4649_v7 = vld [vmem:[#allocation5 + $0x1c4] sm:$0xf]  ;;  %s3295_s28 = sshll.u32 %s5653_s13, 4  ;;  %s5173_s11 = scalar_lea.hbm %s5699_s4, 96  ;;  %s3296_s28 = int_to_ptr.vmem [resolvable:$true] %s3295_s28 }
  0x8d   : > { %1775 = vmatpush.bf16.msra.mxu2 %v3834_v8  ;;  %v3659_v8 = vld [vmem:[#allocation5 + $0x1e4] sm:$0xf0]  ;;  %s3294_s27 = scalar_lea.hbm %s5699_s4, %s4885_s14 }
  0x8e   : > { %1789 = vmatpush.bf16.msra.mxu3 %v4122_v13  ;;  %v3622_v13 = vor.u32 %v4644_v6, %v3621_v0  ;;  %v3662_v15 = vor.u32 %v4649_v7, %v3659_v8  ;;  %v4599_v0 = vld [vmem:[#allocation5 + $0x30] sm:$0xf0]  ;;  %v4730_v6 = vld [vmem:[#allocation5 + $0x44c] sm:$0xf]  ;;  %v4604_v7 = vld [vmem:[#allocation5 + $0x5c] sm:$0xf] }
  0x8f   : > { %1748 = vmatpush.bf16.msra.mxu0 %v4082_v19  ;;  %v4635_v19 = vld [vmem:[#allocation5 + $0x150] sm:$0xf0]  ;;  %v3479_v8 = vld [vmem:[#allocation5 + $0x7c] sm:$0xf0]  ;;  %v3442_v16 = vor.u32 %v4599_v0, %v3441_v61  ;;  %s3297_s29 = sshll.u32 %s3294_s27, 4  ;;  %s3298_s29 = int_to_ptr.hbm [resolvable:$true] %s3297_s29 }
  0x90   : > { %1762 = vmatpush.bf16.msra.mxu1 %v3510_v20  ;;  %v4640_v20 = vld [vmem:[#allocation5 + $0x17c] sm:$0xf]  ;;  %v3482_v17 = vor.u32 %v4604_v7, %v3479_v8  ;;  %v3881_v7 = vld [vmem:[#allocation5 + $0x378] sm:$0xf]  ;;  %s5167_s19 = sshra.s32 %s3298_s29, 4  ;;  %s5168_s19 = int_to_ptr.hbm [resolvable:$true] %s5167_s19 }
  0x91   : > { %1776 = vmatpush.bf16.msra.mxu2 %v3798_v21  ;;  %v3623_v21 = vld [vmem:[#allocation5 + $0x19c] sm:$0xf0]  ;;  %v4708_v8 = vld [vmem:[#allocation5 + $0x398] sm:$0xf0]  ;;  %s5169_s9 = scalar_lea.hbm %s5168_s19, 48  ;;  %p5174_p11 = scmp.lt.s32.totalorder %s5168_s19, %s5699_s4 }
  0x92   : > { %1790 = vmatpush.bf16.msra.mxu3 %v4086_v25  ;;  %v3586_v25 = vor.u32 %v4635_v19, %v3585_v14  ;;  %v3626_v27 = vor.u32 %v4640_v20, %v3623_v21  ;;  %v4271_v14 = vld [vmem:[#allocation5 + $0x6ac] sm:$0xf0]  ;;  %v4743_v19 = vld [vmem:[#allocation5 + $0x4b0] sm:$0xf0]  ;;  %v3986_v21 = vor.u32 %v4730_v6, %v3983_v10  ;;  %p5170_p1 = scmp.ne.s32.totalorder %s5168_s19, %s5169_s9  ;;  %p5175_p9 = scmp.lt.s32.totalorder %s5173_s11, %s5169_s9 }
  0x93   : > { %1749 = vmatpush.bf16.msra.mxu0 %v4046_v31  ;;  %v4626_v31 = vld [vmem:[#allocation5 + $0x108] sm:$0xf0]  ;;  %v3701_v20 = vld [vmem:[#allocation5 + $0x210] sm:$0xf] }
  0x94   : > { %1763 = vmatpush.bf16.msra.mxu1 %v3474_v33  ;;  %v3587_v33 = vld [vmem:[#allocation5 + $0x154] sm:$0xf0]  ;;  %v3550_v37 = vor.u32 %v4626_v31, %v3549_v26  ;;  %v4127_v6 = vld [vmem:[#allocation5 + $0x58c] sm:$0xf0]  ;;  %p5171_p4 = pnand %p5170_p1, %p5350_p7  ;;  %p5176_p2 = por %p5175_p9, %p5174_p11 }
  0x95   : > { %1777 = vmatpush.bf16.msra.mxu2 %v3762_v34  ;;  %v3837_v34 = vld [vmem:[#allocation5 + $0x328] sm:$0xf]  ;;  %v3590_v39 = vor.u32 %v4631_v32, %v3587_v33  ;;  %v3989_v32 = vld [vmem:[#allocation5 + $0x450] sm:$0xf]  ;;  %v4735_v33 = vld [vmem:[#allocation5 + $0x470] sm:$0xf0] }
  0x96   : > { %1791 = vmatpush.bf16.msra.mxu3 %v4050_v38  ;;  %v3513_v38 = vld [vmem:[#allocation5 + $0xa0] sm:$0xf]  ;;  %v3838_v42 = vor.u32 %v4698_v35, %v3837_v34  ;;  %v3702_v34 = vor.u32 %v4663_v23, %v3701_v20  ;;  %v3845_v20 = vld [vmem:[#allocation5 + $0x330] sm:$0xf]  ;;  %p5172_p8 = pneg %p5171_p4 }
  0x97   : > { %1750 = vmatpush.bf16.msra.mxu0 %v4010_v45  ;;  %v3551_v45 = vld [vmem:[#allocation5 + $0x10c] sm:$0xf0] }
  0x98   : > { %1764 = vmatpush.bf16.msra.mxu1 %v3438_v48  ;;  %v4126_v48 = vor.u32 %v4770_v41, %v4125_v40  ;;  %v4712_v40 = vld [vmem:[#allocation5 + $0x3bc] sm:$0xf]  ;;  %v3911_v41 = vld [vmem:[#allocation5 + $0x3dc] sm:$0xf0]  ;;  %p5177_p10 = pnand %p5176_p2, %p5172_p8 }
  0x99   : > { %1778 = vmatpush.bf16.msra.mxu2 %v3726_v49  ;;  %v3514_v49 = vor.u32 %v4617_v43, %v3513_v38  ;;  %v4654_v38 = vld [vmem:[#allocation5 + $0x1e8] sm:$0xf0]  ;;  %v3990_v43 = vor.u32 %v4735_v33, %v3989_v32  ;;  %v3809_v32 = vld [vmem:[#allocation5 + $0x2e8] sm:$0xf] }
  0x9a   : > { %1792 = vmatpush.bf16.msra.mxu3 %v4014_v50  ;;  %1751 = vmatmul.bf16.vlgmr.msra.gmra.mxu0 %v5409_v9  ;;  %v3477_v50 = vld [vmem:[#allocation5 + $0x58] sm:$0xf]  ;;  %v4690_v33 = vld [vmem:[#allocation5 + $0x308] sm:$0xf0] }
  0x9b   : > { %1799 = vmatpush.bf16.msrb.mxu0 %v3694_v51  ;;  %1765 = vmatmul.bf16.vlgmr.msra.gmra.mxu1 %v5399_v58  ;;  %v3554_v51 = vor.u32 %v4622_v44, %v3551_v45  ;;  %v4199_v44 = vld [vmem:[#allocation5 + $0x61c] sm:$0xf0]  ;;  %v3953_v45 = vld [vmem:[#allocation5 + $0x408] sm:$0xf] }
  0x9c   : > { %1813 = vmatpush.bf16.msrb.mxu1 %v3982_v55  ;;  %1779 = vmatmul.bf16.vlgmr.msra.gmra.mxu2 %v5404_v5  ;;  %v4608_v55 = vld [vmem:[#allocation5 + $0x78] sm:$0xf0] }
  0x9d   : > { %1793 = vmatmul.bf16.vlgmr.msra.gmra.mxu3 %v5409_v9  ;;  %1827 = vmatpush.bf16.msrb.mxu2 %v4270_v62  ;;  %v4090_v62 = vor.u32 %v4761_v53, %v4089_v52  ;;  %v4703_v52 = vld [vmem:[#allocation5 + $0x374] sm:$0xf]  ;;  %v3875_v53 = vld [vmem:[#allocation5 + $0x394] sm:$0xf0] }
  0x9e   : > { %1841 = vmatpush.bf16.msrb.mxu3 %v3698_v1  ;;  %v3518_v1 = vor.u32 %v4613_v56, %v3515_v57  ;;  %v4163_v56 = vld [vmem:[#allocation5 + $0x5d4] sm:$0xf0]  ;;  %v3917_v57 = vld [vmem:[#allocation5 + $0x3c0] sm:$0xf]  ;;  %v3878_v61 = vor.u32 %v4703_v52, %v3875_v53  ;;  %v4600_v53 = vld [vmem:[#allocation5 + $0x38] sm:$0xf0] }
  0x9f   : > { %1800 = vmatpush.bf16.msrb.mxu0 %v3658_v63  ;;  %v3478_v63 = vor.u32 %v4608_v55, %v3477_v50  ;;  %v4645_v50 = vld [vmem:[#allocation5 + $0x1a0] sm:$0xf0]  ;;  %v3954_v55 = vor.u32 %v4726_v46, %v3953_v45  ;;  %v4659_v46 = vld [vmem:[#allocation5 + $0x214] sm:$0xf]  ;;  %v3449_v52 = vld [vmem:[#allocation5 + $0x18] sm:$0xf] }
  0xa0   : > { %1814 = vmatpush.bf16.msrb.mxu1 %v3946_v4  ;;  %v3766_v4 = vor.u32 %v4680_v60, %v3765_v59  ;;  %v4717_v59 = vld [vmem:[#allocation5 + $0x3e0] sm:$0xf0] }
  0xa1   : > { %1828 = vmatpush.bf16.msrb.mxu2 %v4234_v12  ;;  %v4671_v12 = vld [vmem:[#allocation5 + $0x270] sm:$0xf0]  ;;  %v4681_v45 = vld [vmem:[#allocation5 + $0x2c0] sm:$0xf0] }
  0xa2   : > { %1842 = vmatpush.bf16.msrb.mxu3 %v3662_v15  ;;  %v4054_v15 = vor.u32 %v4752_v3, %v4053_v2  ;;  %v3730_v22 = vor.u32 %v4671_v12, %v3729_v11  ;;  %v3839_v2 = vld [vmem:[#allocation5 + $0x34c] sm:$0xf0]  ;;  %v4766_v3 = vld [vmem:[#allocation5 + $0x56c] sm:$0xf] }
  0xa3   : > { %1801 = vmatpush.bf16.msrb.mxu0 %v3622_v13  ;;  %v4802_v13 = vld [vmem:[#allocation5 + $0x68c] sm:$0xf]  ;;  %v3557_v12 = vld [vmem:[#allocation5 + $0xf0] sm:$0xf] }
  0xa4   : > { %1815 = vmatpush.bf16.msrb.mxu1 %v3910_v18  ;;  %v4017_v18 = vld [vmem:[#allocation5 + $0x490] sm:$0xf]  ;;  %v4274_v26 = vor.u32 %v4802_v13, %v4271_v14  ;;  %v4627_v13 = vld [vmem:[#allocation5 + $0x110] sm:$0xf0]  ;;  %v4130_v14 = vor.u32 %v4766_v3, %v4127_v6  ;;  %v4241_v6 = vld [vmem:[#allocation5 + $0x648] sm:$0xf] }
  0xa5   : > { %1829 = vmatpush.bf16.msrb.mxu2 %v4198_v24  ;;  %v4595_v24 = vld [vmem:[#allocation5 + $0x14] sm:$0xf]  ;;  %v4018_v31 = vor.u32 %v4743_v19, %v4017_v18  ;;  %v3882_v18 = vor.u32 %v4708_v8, %v3881_v7  ;;  %v4091_v19 = vld [vmem:[#allocation5 + $0x544] sm:$0xf0]  ;;  %v3667_v3 = vld [vmem:[#allocation5 + $0x1ec] sm:$0xf0] }
  0xa6   : > { %1843 = vmatpush.bf16.msrb.mxu3 %v3626_v27  ;;  %v4721_v27 = vld [vmem:[#allocation5 + $0x404] sm:$0xf]  ;;  %v4798_v7 = vld [vmem:[#allocation5 + $0x668] sm:$0xf0] }
  0xa7   : > { %1802 = vmatpush.bf16.msrb.mxu0 %v3586_v25  ;;  %v3443_v25 = vld [vmem:[#allocation5 + $0x34] sm:$0xf0] }
  0xa8   : > { %1816 = vmatpush.bf16.msrb.mxu1 %v3874_v30  ;;  %v4235_v30 = vld [vmem:[#allocation5 + $0x664] sm:$0xf0]  ;;  %v3446_v35 = vor.u32 %v4595_v24, %v3443_v25  ;;  %v4618_v25 = vld [vmem:[#allocation5 + $0xc8] sm:$0xf0] }
  0xa9   : > { %1830 = vmatpush.bf16.msrb.mxu2 %v4162_v36  ;;  %v3950_v36 = vor.u32 %v4721_v27, %v3947_v28  ;;  %v3521_v24 = vld [vmem:[#allocation5 + $0xa8] sm:$0xf]  ;;  %v4676_v27 = vld [vmem:[#allocation5 + $0x29c] sm:$0xf]  ;;  %v3767_v28 = vld [vmem:[#allocation5 + $0x2bc] sm:$0xf0] }
  0xaa   : > { %1844 = vmatpush.bf16.msrb.mxu3 %v3590_v39  ;;  %v4238_v39 = vor.u32 %v4793_v29, %v4235_v30  ;;  %v4748_v29 = vld [vmem:[#allocation5 + $0x4dc] sm:$0xf] }
  0xab   : > { %1803 = vmatpush.bf16.msrb.mxu0 %v3550_v37  ;;  %v3665_v37 = vld [vmem:[#allocation5 + $0x1c8] sm:$0xf] }
  0xac   : > { %1817 = vmatpush.bf16.msrb.mxu1 %v3838_v42  ;;  %v4784_v42 = vld [vmem:[#allocation5 + $0x5fc] sm:$0xf]  ;;  %v3666_v47 = vor.u32 %v4654_v38, %v3665_v37  ;;  %v3485_v37 = vld [vmem:[#allocation5 + $0x60] sm:$0xf]  ;;  %v4609_v38 = vld [vmem:[#allocation5 + $0x80] sm:$0xf0] }
  0xad   : > { %1831 = vmatpush.bf16.msrb.mxu2 %v4126_v48  ;;  %v3914_v48 = vor.u32 %v4712_v40, %v3911_v41  ;;  %v3731_v40 = vld [vmem:[#allocation5 + $0x274] sm:$0xf0]  ;;  %v4739_v41 = vld [vmem:[#allocation5 + $0x494] sm:$0xf] }
  0xae   : > { %1845 = vmatpush.bf16.msrb.mxu3 %v3554_v51  ;;  %v4202_v51 = vor.u32 %v4784_v42, %v4199_v44  ;;  %v4019_v42 = vld [vmem:[#allocation5 + $0x4b4] sm:$0xf0]  ;;  %v3773_v44 = vld [vmem:[#allocation5 + $0x2a0] sm:$0xf] }
  0xaf   : > { %1804 = vmatpush.bf16.msrb.mxu0 %v3514_v49  ;;  %v3629_v49 = vld [vmem:[#allocation5 + $0x180] sm:$0xf] }
  0xb0   : > { %1818 = vmatpush.bf16.msrb.mxu1 %v3802_v54  ;;  %v4775_v54 = vld [vmem:[#allocation5 + $0x5b4] sm:$0xf]  ;;  %v3630_v60 = vor.u32 %v4645_v50, %v3629_v49  ;;  %v4277_v49 = vld [vmem:[#allocation5 + $0x690] sm:$0xf] }
  0xb1   : > { %1832 = vmatpush.bf16.msrb.mxu2 %v4090_v62  ;;  %v3593_v62 = vld [vmem:[#allocation5 + $0x138] sm:$0xf]  ;;  %v4166_v0 = vor.u32 %v4775_v54, %v4163_v56  ;;  %v4807_v50 = vld [vmem:[#allocation5 + $0x6b0] sm:$0xf0]  ;;  %v4022_v54 = vor.u32 %v4739_v41, %v4019_v42 }
  0xb2   : > { %1846 = vmatpush.bf16.msrb.mxu3 %v3518_v1  ;;  %v4694_v1 = vld [vmem:[#allocation5 + $0x32c] sm:$0xf]  ;;  %v4731_v56 = vld [vmem:[#allocation5 + $0x454] sm:$0xf]  ;;  %v3559_v42 = vld [vmem:[#allocation5 + $0x114] sm:$0xf0] }
  0xb3   : > { %1805 = vmatpush.bf16.msrb.mxu0 %v3478_v63  ;;  %v4636_v63 = vld [vmem:[#allocation5 + $0x158] sm:$0xf0]  ;;  %v3842_v11 = vor.u32 %v4694_v1, %v3839_v2  ;;  %v4279_v1 = vld [vmem:[#allocation5 + $0x6b4] sm:$0xf0]  ;;  %v4650_v2 = vld [vmem:[#allocation5 + $0x1cc] sm:$0xf] }
  0xb4   : > { %1819 = vmatpush.bf16.msrb.mxu1 %v3766_v4  ;;  %v3918_v4 = vor.u32 %v4717_v59, %v3917_v57  ;;  %v3594_v10 = vor.u32 %v4636_v63, %v3593_v62  ;;  %v3991_v57 = vld [vmem:[#allocation5 + $0x474] sm:$0xf0]  ;;  %v4278_v63 = vor.u32 %v4807_v50, %v4277_v49  ;;  %v4623_v41 = vld [vmem:[#allocation5 + $0xf4] sm:$0xf] }
  0xb5   : > { %1833 = vmatpush.bf16.msrb.mxu2 %v4054_v15  ;;  %v4685_v15 = vld [vmem:[#allocation5 + $0x2e4] sm:$0xf]  ;;  %v3737_v59 = vld [vmem:[#allocation5 + $0x258] sm:$0xf]  ;;  %v4767_v49 = vld [vmem:[#allocation5 + $0x574] sm:$0xf]  ;;  %v3562_v50 = vor.u32 %v4623_v41, %v3559_v42 }
  0xb6   : > { %1847 = vmatpush.bf16.msrb.mxu3 %v3482_v17  ;;  %v4757_v17 = vld [vmem:[#allocation5 + $0x524] sm:$0xf] }
  0xb7   : > { %1806 = vmatpush.bf16.msrb.mxu0 %v3442_v16  ;;  %v3803_v16 = vld [vmem:[#allocation5 + $0x304] sm:$0xf0] }
  0xb8   : > { %1820 = vmatpush.bf16.msrb.mxu1 %v3730_v22  ;;  %v3558_v22 = vor.u32 %v4627_v13, %v3557_v12  ;;  %v3806_v23 = vor.u32 %v4685_v15, %v3803_v16  ;;  %v4794_v13 = vld [vmem:[#allocation5 + $0x64c] sm:$0xf]  ;;  %v4243_v15 = vld [vmem:[#allocation5 + $0x66c] sm:$0xf0]  ;;  %v4242_v16 = vor.u32 %v4798_v7, %v4241_v6  ;;  %v4061_v6 = vld [vmem:[#allocation5 + $0x4e0] sm:$0xf] }
  0xb9   : > { %1834 = vmatpush.bf16.msrb.mxu2 %v4018_v31  ;;  %v4055_v31 = vld [vmem:[#allocation5 + $0x4fc] sm:$0xf0]  ;;  %v4753_v7 = vld [vmem:[#allocation5 + $0x500] sm:$0xf0] }
  0xba   : > { %1807 = vmatmul.bf16.vlgmr.msrb.gmra.mxu0 %v5399_v58  ;;  %1848 = vmatpush.bf16.msrb.mxu3 %v3446_v35  ;;  %v3770_v35 = vor.u32 %v4676_v27, %v3767_v28  ;;  %v4207_v27 = vld [vmem:[#allocation5 + $0x624] sm:$0xf0] }
  0xbb   : > { %1855 = vmatpush.bf16.msra.mxu0 %v3986_v21  ;;  %1821 = vmatmul.bf16.vlgmr.msrb.gmra.mxu1 %v5404_v5  ;;  %v4699_v21 = vld [vmem:[#allocation5 + $0x350] sm:$0xf0] }
  0xbc   : > { %1869 = vmatpush.bf16.msra.mxu1 %v4274_v26  ;;  %1835 = vmatmul.bf16.vlgmr.msrb.gmra.mxu2 %v5409_v9  ;;  %v4094_v26 = vor.u32 %v4757_v17, %v4091_v19  ;;  %v3846_v30 = vor.u32 %v4699_v21, %v3845_v20  ;;  %v4641_v17 = vld [vmem:[#allocation5 + $0x184] sm:$0xf]  ;;  %v4205_v20 = vld [vmem:[#allocation5 + $0x600] sm:$0xf] }
  0xbd   : > { %1883 = vmatpush.bf16.msra.mxu2 %v3702_v34  ;;  %1849 = vmatmul.bf16.vlgmr.msrb.gmra.mxu3 %v5399_v58  ;;  %v3522_v34 = vor.u32 %v4618_v25, %v3521_v24  ;;  %v4789_v21 = vld [vmem:[#allocation5 + $0x620] sm:$0xf0]  ;;  %v4246_v24 = vor.u32 %v4794_v13, %v4243_v15  ;;  %v4062_v15 = vor.u32 %v4753_v7, %v4061_v6 }
  0xbe   : > { %1897 = vmatpush.bf16.msra.mxu3 %v3990_v43  ;;  %v3810_v43 = vor.u32 %v4690_v33, %v3809_v32  ;;  %v4785_v25 = vld [vmem:[#allocation5 + $0x604] sm:$0xf]  ;;  %v4206_v28 = vor.u32 %v4789_v21, %v4205_v20  ;;  %v4169_v32 = vld [vmem:[#allocation5 + $0x5b8] sm:$0xf]  ;;  %v4780_v33 = vld [vmem:[#allocation5 + $0x5d8] sm:$0xf0] }
  0xbf   : > { %1856 = vmatpush.bf16.msra.mxu0 %v3950_v36  ;;  %v4667_v36 = vld [vmem:[#allocation5 + $0x254] sm:$0xf]  ;;  %v4744_v20 = vld [vmem:[#allocation5 + $0x4b8] sm:$0xf0] }
  0xc0   : > { %1870 = vmatpush.bf16.msra.mxu1 %v4238_v39  ;;  %v4058_v39 = vor.u32 %v4748_v29, %v4055_v31  ;;  %v4632_v29 = vld [vmem:[#allocation5 + $0x13c] sm:$0xf] }
  0xc1   : > { %1884 = vmatpush.bf16.msra.mxu2 %v3666_v47  ;;  %v3486_v47 = vor.u32 %v4609_v38, %v3485_v37  ;;  %v4776_v37 = vld [vmem:[#allocation5 + $0x5bc] sm:$0xf] }
  0xc2   : > { %1898 = vmatpush.bf16.msra.mxu3 %v3954_v55  ;;  %v3774_v55 = vor.u32 %v4681_v45, %v3773_v44  ;;  %v4133_v44 = vld [vmem:[#allocation5 + $0x570] sm:$0xf]  ;;  %v4771_v45 = vld [vmem:[#allocation5 + $0x590] sm:$0xf0]  ;;  %v4668_v21 = vld [vmem:[#allocation5 + $0x25c] sm:$0xf] }
  0xc3   : > { %1857 = vmatpush.bf16.msra.mxu0 %v3914_v48  ;;  %v3703_v48 = vld [vmem:[#allocation5 + $0x234] sm:$0xf0] }
  0xc4   : > { %1871 = vmatpush.bf16.msra.mxu1 %v4202_v51  ;;  %v3734_v51 = vor.u32 %v4667_v36, %v3731_v40  ;;  %v3706_v62 = vor.u32 %v4659_v46, %v3703_v48  ;;  %v4210_v36 = vor.u32 %v4785_v25, %v4207_v27  ;;  %v4170_v40 = vor.u32 %v4780_v33, %v4169_v32  ;;  %v4695_v46 = vld [vmem:[#allocation5 + $0x334] sm:$0xf]  ;;  %v4740_v25 = vld [vmem:[#allocation5 + $0x49c] sm:$0xf] }
  0xc5   : > { %1885 = vmatpush.bf16.msra.mxu2 %v3630_v60  ;;  %v4672_v60 = vld [vmem:[#allocation5 + $0x278] sm:$0xf0] }
  0xc6   : > { %1899 = vmatpush.bf16.msra.mxu3 %v3918_v4  ;;  %v3994_v4 = vor.u32 %v4731_v56, %v3991_v57  ;;  %v3738_v8 = vor.u32 %v4672_v60, %v3737_v59  ;;  %v4097_v56 = vld [vmem:[#allocation5 + $0x528] sm:$0xf]  ;;  %v4762_v57 = vld [vmem:[#allocation5 + $0x548] sm:$0xf0]  ;;  %v3811_v60 = vld [vmem:[#allocation5 + $0x30c] sm:$0xf0] }
  0xc7   : > { %1858 = vmatpush.bf16.msra.mxu0 %v3878_v61  ;;  %v4803_v61 = vld [vmem:[#allocation5 + $0x694] sm:$0xf]  ;;  %v4686_v59 = vld [vmem:[#allocation5 + $0x2ec] sm:$0xf] }
  0xc8   : > { %1872 = vmatpush.bf16.msra.mxu1 %v4166_v0  ;;  %v3450_v0 = vor.u32 %v4600_v53, %v3449_v52  ;;  %v4282_v12 = vor.u32 %v4803_v61, %v4279_v1  ;;  %v4134_v52 = vor.u32 %v4771_v45, %v4133_v44  ;;  %v4614_v53 = vld [vmem:[#allocation5 + $0xac] sm:$0xf]  ;;  %v4098_v1 = vor.u32 %v4762_v57, %v4097_v56  ;;  %v4213_v57 = vld [vmem:[#allocation5 + $0x608] sm:$0xf] }
  0xc9   : > { %1886 = vmatpush.bf16.msra.mxu2 %v3594_v10  ;;  %v4722_v10 = vld [vmem:[#allocation5 + $0x40c] sm:$0xf] }
  0xca   : > { %1900 = vmatpush.bf16.msra.mxu3 %v3882_v18  ;;  %v3631_v18 = vld [vmem:[#allocation5 + $0x1a4] sm:$0xf0] }
  0xcb   : > { %1859 = vmatpush.bf16.msra.mxu0 %v3842_v11  ;;  %v3955_v11 = vld [vmem:[#allocation5 + $0x42c] sm:$0xf0] }
  0xcc   : > { %1873 = vmatpush.bf16.msra.mxu1 %v4130_v14  ;;  %v3670_v14 = vor.u32 %v4650_v2, %v3667_v3  ;;  %v3958_v19 = vor.u32 %v4722_v10, %v3955_v11  ;;  %v4605_v2 = vld [vmem:[#allocation5 + $0x64] sm:$0xf]  ;;  %v3487_v3 = vld [vmem:[#allocation5 + $0x84] sm:$0xf0] }
  0xcd   : > { %1887 = vmatpush.bf16.msra.mxu2 %v3558_v22  ;;  %v4713_v22 = vld [vmem:[#allocation5 + $0x3c4] sm:$0xf]  ;;  %v3775_v10 = vld [vmem:[#allocation5 + $0x2c4] sm:$0xf0]  ;;  %v3490_v13 = vor.u32 %v4605_v2, %v3487_v3 }
  0xce   : > { %1901 = vmatpush.bf16.msra.mxu3 %v3846_v30  ;;  %v3595_v30 = vld [vmem:[#allocation5 + $0x15c] sm:$0xf0] }
  0xcf   : > { %1860 = vmatpush.bf16.msra.mxu0 %v3806_v23  ;;  %v3919_v23 = vld [vmem:[#allocation5 + $0x3e4] sm:$0xf0]  ;;  %v3598_v38 = vor.u32 %v4632_v29, %v3595_v30 }
  0xd0   : > { %1874 = vmatpush.bf16.msra.mxu1 %v4094_v26  ;;  %v3634_v26 = vor.u32 %v4641_v17, %v3631_v18  ;;  %v3922_v31 = vor.u32 %v4713_v22, %v3919_v23  ;;  %v3451_v17 = vld [vmem:[#allocation5 + $0x3c] sm:$0xf0] }
  0xd1   : > { %1888 = vmatpush.bf16.msra.mxu2 %v3522_v34  ;;  %v4704_v34 = vld [vmem:[#allocation5 + $0x37c] sm:$0xf]  ;;  %v3739_v22 = vld [vmem:[#allocation5 + $0x27c] sm:$0xf0] }
  0xd2   : > { %1902 = vmatpush.bf16.msra.mxu3 %v3810_v43 }
  0xd3   : > { %1861 = vmatpush.bf16.msra.mxu0 %v3770_v35  ;;  %v3883_v35 = vld [vmem:[#allocation5 + $0x39c] sm:$0xf0] }
  0xd4   : > { %1875 = vmatpush.bf16.msra.mxu1 %v4058_v39  ;;  %v4171_v39 = vld [vmem:[#allocation5 + $0x5dc] sm:$0xf0]  ;;  %v3886_v43 = vor.u32 %v4704_v34, %v3883_v35 }
  0xd5   : > { %1889 = vmatpush.bf16.msra.mxu2 %v3486_v47  ;;  %v3847_v47 = vld [vmem:[#allocation5 + $0x354] sm:$0xf0]  ;;  %v4174_v48 = vor.u32 %v4776_v37, %v4171_v39 }
  0xd6   : > { %1903 = vmatpush.bf16.msra.mxu3 %v3774_v55  ;;  %v3850_v55 = vor.u32 %v4695_v46, %v3847_v47  ;;  %v4285_v46 = vld [vmem:[#allocation5 + $0x698] sm:$0xf]  ;;  %v4808_v47 = vld [vmem:[#allocation5 + $0x6b8] sm:$0xf0] }
  0xd7   : > { %1862 = vmatpush.bf16.msra.mxu0 %v3734_v51  ;;  %v4135_v51 = vld [vmem:[#allocation5 + $0x594] sm:$0xf0]  ;;  %v1640_v30 = vpop.f32.mrf.mxu0 }
  0xd8   : > { %1876 = vmatpush.bf16.msra.mxu1 %v4022_v54  ;;  %v3523_v54 = vld [vmem:[#allocation5 + $0xcc] sm:$0xf0]  ;;  %v4138_v61 = vor.u32 %v4767_v49, %v4135_v51 }
  0xd9   : > { %1890 = vmatpush.bf16.msra.mxu2 %v3450_v0  ;;  %v4099_v0 = vld [vmem:[#allocation5 + $0x54c] sm:$0xf0] }
  0xda   : > { %1863 = vmatmul.bf16.vlgmr.msra.gmra.mxu0 %v5404_v5  ;;  %1904 = vmatpush.bf16.msra.mxu3 %v3738_v8  ;;  %v4677_v8 = vld [vmem:[#allocation5 + $0x2a4] sm:$0xf] }
  0xdb   : > { %1911 = vmatpush.bf16.msrb.mxu0 %v4278_v63  ;;  %1877 = vmatmul.bf16.vlgmr.msra.gmra.mxu1 %v5409_v9  ;;  %v3526_v63 = vor.u32 %v4614_v53, %v3523_v54  ;;  %v3778_v18 = vor.u32 %v4677_v8, %v3775_v10  ;;  %v4249_v53 = vld [vmem:[#allocation5 + $0x650] sm:$0xf]  ;;  %v4799_v54 = vld [vmem:[#allocation5 + $0x670] sm:$0xf0] }
  0xdc   : > { %1925 = vmatpush.bf16.msrb.mxu1 %v3706_v62  ;;  %1891 = vmatmul.bf16.vlgmr.msra.gmra.mxu2 %v5399_v58  ;;  %v4758_v62 = vld [vmem:[#allocation5 + $0x52c] sm:$0xf]  ;;  %v4250_v56 = vor.u32 %v4799_v54, %v4249_v53  ;;  %v3709_v54 = vld [vmem:[#allocation5 + $0x218] sm:$0xf] }
  0xdd   : > { %1939 = vmatpush.bf16.msrb.mxu2 %v3994_v4  ;;  %1905 = vmatmul.bf16.vlgmr.msra.gmra.mxu3 %v5404_v5  ;;  %v3814_v4 = vor.u32 %v4686_v59, %v3811_v60  ;;  %v4102_v11 = vor.u32 %v4758_v62, %v4099_v0  ;;  %v4790_v59 = vld [vmem:[#allocation5 + $0x628] sm:$0xf0] }
  0xde   : > { %1953 = vmatpush.bf16.msrb.mxu3 %v4282_v12  ;;  %v4749_v12 = vld [vmem:[#allocation5 + $0x4e4] sm:$0xf]  ;;  %v4214_v60 = vor.u32 %v4790_v59, %v4213_v57 }
  0xdf   : > { %1912 = vmatpush.bf16.msrb.mxu0 %v4242_v16  ;;  %v4596_v16 = vld [vmem:[#allocation5 + $0x1c] sm:$0xf]  ;;  %v1668_v32 = vpop.f32.mrf.mxu2  ;;  %v1642_v34 = vpop.f32.mrf.mxu0 }
  0xe0   : > { %1926 = vmatpush.bf16.msrb.mxu1 %v3670_v14  ;;  %v4063_v14 = vld [vmem:[#allocation5 + $0x504] sm:$0xf0]  ;;  %v1682_v33 = vpop.f32.mrf.mxu3 }
  0xe1   : > { %1940 = vmatpush.bf16.msrb.mxu2 %v3958_v19  ;;  %v4025_v19 = vld [vmem:[#allocation5 + $0x498] sm:$0xf]  ;;  %v4066_v23 = vor.u32 %v4749_v12, %v4063_v14  ;;  %v4177_v12 = vld [vmem:[#allocation5 + $0x5c0] sm:$0xf] }
  0xe2   : > { %1954 = vmatpush.bf16.msrb.mxu3 %v4246_v24  ;;  %v3454_v24 = vor.u32 %v4596_v16, %v3451_v17  ;;  %v4026_v27 = vor.u32 %v4744_v20, %v4025_v19  ;;  %v4772_v19 = vld [vmem:[#allocation5 + $0x598] sm:$0xf0] }
  0xe3   : > { %1913 = vmatpush.bf16.msrb.mxu0 %v4206_v28  ;;  %v3742_v28 = vor.u32 %v4668_v21, %v3739_v22 }
  0xe4   : > { %1927 = vmatpush.bf16.msrb.mxu1 %v3634_v26  ;;  %v4027_v26 = vld [vmem:[#allocation5 + $0x4bc] sm:$0xf0] }
  0xe5   : > { %1941 = vmatpush.bf16.msrb.mxu2 %v3922_v31  ;;  %v4030_v29 = vor.u32 %v4740_v25, %v4027_v26  ;;  %v1654_v31 = vpop.f32.mrf.mxu1 }
  0xe6   : > { %1955 = vmatpush.bf16.msrb.mxu3 %v4210_v36  ;;  %v1655_v7 = vadd.f32 %v1654_v31, %v1640_v30  ;;  %v4105_v30 = vld [vmem:[#allocation5 + $0x530] sm:$0xf]  ;;  %v4763_v31 = vld [vmem:[#allocation5 + $0x550] sm:$0xf0] }
  0xe7   : > { %1914 = vmatpush.bf16.msrb.mxu0 %v4170_v40  ;;  %v1670_v36 = vpop.f32.mrf.mxu2 }
  0xe8   : > { %1928 = vmatpush.bf16.msrb.mxu1 %v3598_v38  ;;  %v1684_v37 = vpop.f32.mrf.mxu3 }
  0xe9   : > { %1942 = vmatpush.bf16.msrb.mxu2 %v3886_v43 }
  0xea   : > { %1956 = vmatpush.bf16.msrb.mxu3 %v4174_v48  ;;  %v4286_v48 = vor.u32 %v4808_v47, %v4285_v46 }
  0xeb   : > { %1915 = vmatpush.bf16.msrb.mxu0 %v4134_v52 }
  0xec   : > { %1929 = vmatpush.bf16.msrb.mxu1 %v3562_v50 }
  0xed   : > { %1943 = vmatpush.bf16.msrb.mxu2 %v3850_v55  ;;  %v1656_v35 = vpop.f32.mrf.mxu1 }
  0xee   : > { %1957 = vmatpush.bf16.msrb.mxu3 %v4138_v61  ;;  %v1657_v8 = vadd.f32 %v1656_v35, %v1642_v34  ;;  %v4106_v35 = vor.u32 %v4763_v31, %v4105_v30  ;;  %v3529_v31 = vld [vmem:[#allocation5 + $0xb0] sm:$0xf] }
  0xef   : > { %1916 = vmatpush.bf16.msrb.mxu0 %v4098_v1 }
  0xf0   : > { %1930 = vmatpush.bf16.msrb.mxu1 %v3526_v63  ;;  %v1671_v25 = vadd.f32 %v1670_v36, %v1657_v8  ;;  %v4754_v36 = vld [vmem:[#allocation5 + $0x508] sm:$0xf0]  ;;  %v3637_v8 = vld [vmem:[#allocation5 + $0x188] sm:$0xf] }
  0xf1   : > { %1944 = vmatpush.bf16.msrb.mxu2 %v3814_v4 }
  0xf2   : > { %1958 = vmatpush.bf16.msrb.mxu3 %v4102_v11 }
  0xf3   : > { %1917 = vmatpush.bf16.msrb.mxu0 %v4062_v15 }
  0xf4   : > { %1931 = vmatpush.bf16.msrb.mxu1 %v3490_v13  ;;  %v4781_v13 = vld [vmem:[#allocation5 + $0x5e0] sm:$0xf0] }
  0xf5   : > { %1945 = vmatpush.bf16.msrb.mxu2 %v3778_v18  ;;  %v4178_v17 = vor.u32 %v4781_v13, %v4177_v12  ;;  %v4141_v18 = vld [vmem:[#allocation5 + $0x578] sm:$0xf] }
  0xf6   : > { %1959 = vmatpush.bf16.msrb.mxu3 %v4066_v23  ;;  %v4142_v22 = vor.u32 %v4772_v19, %v4141_v18  ;;  %v1669_v23 = vadd.f32 %v1668_v32, %v1655_v7  ;;  %v4069_v32 = vld [vmem:[#allocation5 + $0x4e8] sm:$0xf] }
  0xf7   : > { %1918 = vmatpush.bf16.msrb.mxu0 %v4026_v27  ;;  %v1696_v38 = vpop.f32.mrf.mxu0 }
  0xf8   : > { %1932 = vmatpush.bf16.msrb.mxu1 %v3454_v24  ;;  %v1710_v39 = vpop.f32.mrf.mxu1  ;;  %v1697_v10 = vadd.f32 %v1696_v38, %v1682_v33 }
  0xf9   : > { %1946 = vmatpush.bf16.msrb.mxu2 %v3742_v28 }
  0xfa   : > { %1960 = vmatpush.bf16.msrb.mxu3 %v4030_v29  ;;  %1919 = vmatmul.bf16.vlgmr.msrb.gmra.mxu0 %v5409_v9  ;;  %v1711_v24 = vadd.f32 %v1710_v39, %v1697_v10  ;;  %v4070_v39 = vor.u32 %v4754_v36, %v4069_v32  ;;  %v4646_v10 = vld [vmem:[#allocation5 + $0x1a8] sm:$0xf0]  ;;  %v3457_v36 = vld [vmem:[#allocation5 + $0x20] sm:$0xf] }
  0xfb   : > { %1933 = vmatmul.bf16.vlgmr.msrb.gmra.mxu1 %v5399_v58  ;;  %v3638_v12 = vor.u32 %v4646_v10, %v3637_v8 }
  0xfc   : > { %1947 = vmatmul.bf16.vlgmr.msrb.gmra.mxu2 %v5404_v5  ;;  %v2009_v33 = vpack.c.bf16 %v1711_v24, %v1669_v23  ;;  %v3565_v24 = vld [vmem:[#allocation5 + $0xf8] sm:$0xf] }
  0xfd   : > { %1961 = vmatmul.bf16.vlgmr.msrb.gmra.mxu3 %v5409_v9  ;;  %1995 = vmatpush.bf16.msra.mxu2 %v4286_v48 }
  0xfe   : > { %v2028_v38 = vunpack.c.l.b16 %v2009_v33 }
  0xff   : > { %v1724_v40 = vpop.f32.mrf.mxu2  ;;  %v1698_v42 = vpop.f32.mrf.mxu0 }
 0x100   : > { %v1738_v41 = vpop.f32.mrf.mxu3  ;;  %v1712_v43 = vpop.f32.mrf.mxu1  ;;  %v1699_v2 = vadd.f32 %v1698_v42, %v1684_v37  ;;  %v4745_v42 = vld [vmem:[#allocation5 + $0x4c0] sm:$0xf0] }
 0x101   : > { %1996 = vmatpush.bf16.msra.mxu2 %v4250_v56  ;;  %v1739_v61 = vadd.f32 %v1738_v41, %v1724_v40  ;;  %v4033_v41 = vld [vmem:[#allocation5 + $0x4a0] sm:$0xf]  ;;  %v3673_v56 = vld [vmem:[#allocation5 + $0x1d0] sm:$0xf] }
 0x102   : > { %v1713_v20 = vadd.f32 %v1712_v43, %v1699_v2  ;;  %v4034_v43 = vor.u32 %v4745_v42, %v4033_v41 }
 0x104   : > { %v2014_v28 = vpack.c.bf16 %v1713_v20, %v1671_v25  ;;  %v3601_v20 = vld [vmem:[#allocation5 + $0x140] sm:$0xf]  ;;  %v4628_v25 = vld [vmem:[#allocation5 + $0x118] sm:$0xf0] }
 0x105   : > { %1997 = vmatpush.bf16.msra.mxu2 %v4214_v60 }
 0x106   : > { %v2029_v37 = vunpack.c.l.b16 %v2014_v28 }
 0x107   : > { %v1726_v44 = vpop.f32.mrf.mxu2 }
 0x108   : > { %v1740_v45 = vpop.f32.mrf.mxu3  ;;  %v2030_v40 = vpack.c.b16 %v2029_v37, %v2028_v38  ;;  %v4610_v37 = vld [vmem:[#allocation5 + $0x88] sm:$0xf0]  ;;  %v4601_v38 = vld [vmem:[#allocation5 + $0x40] sm:$0xf0] }
 0x109   : > { %v1741_v3 = vadd.f32 %v1740_v45, %v1726_v44  ;;  %1998 = vmatpush.bf16.msra.mxu2 %v4178_v17  ;;  %v2232_v44 = vunpack.c.h.b16 %v2014_v28  ;;  %v2231_v45 = vunpack.c.h.b16 %v2009_v33  ;;  %v4619_v33 = vld [vmem:[#allocation5 + $0xd0] sm:$0xf0]  ;;  %v3458_v41 = vor.u32 %v4601_v38, %v3457_v36 }
 0x10b   : > { %v5438_v47 = vpack.c.b16 %v2232_v44, %v2231_v45 }
 0x10d   : > { %1999 = vmatpush.bf16.msra.mxu2 %v4142_v22 }
 0x111   : > { %2000 = vmatpush.bf16.msra.mxu2 %v4106_v35  ;;  %v3530_v35 = vor.u32 %v4619_v33, %v3529_v31 }
 0x115   : > { %2001 = vmatpush.bf16.msra.mxu2 %v4070_v39 }
 0x117   : > { %v1752_v49 = vpop.f32.mrf.mxu0 }
 0x118   : > { %v1766_v50 = vpop.f32.mrf.mxu1  ;;  %v1753_v4 = vadd.f32 %v1752_v49, %v1739_v61 }
 0x119   : > { %2002 = vmatpush.bf16.msra.mxu2 %v4034_v43 }
 0x11c   : > { %2003 = vmatmul.bf16.vlgmr.msra.gmra.mxu2 %v5409_v9  ;;  %v4655_v9 = vld [vmem:[#allocation5 + $0x1f0] sm:$0xf0] }
 0x11d   : > { %v3674_v61 = vor.u32 %v4655_v9, %v3673_v56 }
 0x11f   : > { %v1780_v51 = vpop.f32.mrf.mxu2  ;;  %v1754_v63 = vpop.f32.mrf.mxu0 }
 0x120   : > { %v1794_v52 = vpop.f32.mrf.mxu3  ;;  %v1781_v55 = vadd.f32 %v1780_v51, %v1766_v50  ;;  %v1768_v0 = vpop.f32.mrf.mxu1  ;;  %v1755_v15 = vadd.f32 %v1754_v63, %v1741_v3 }
 0x122   : > { %v1795_v62 = vadd.f32 %v1794_v52, %v1781_v55  ;;  %v4664_v55 = vld [vmem:[#allocation5 + $0x238] sm:$0xf0] }
 0x123   : > { %v3710_v60 = vor.u32 %v4664_v55, %v3709_v54 }
 0x124   : > { %v2010_v14 = vpack.c.bf16 %v1795_v62, %v1753_v4 }
 0x125   : > { %1967 = vmatpush.bf16.msra.mxu0 %v3710_v60 }
 0x126   : > { %v2033_v26 = vunpack.c.h.b16 %v2010_v14  ;;  %v2430_v50 = vunpack.c.l.b16 %v2010_v14 }
 0x127   : > { %v1782_v1 = vpop.f32.mrf.mxu2 }
 0x128   : > { %v1783_v6 = vadd.f32 %v1782_v1, %v1768_v0  ;;  %v1796_v11 = vpop.f32.mrf.mxu3 }
 0x129   : > { %1968 = vmatpush.bf16.msra.mxu0 %v3674_v61 }
 0x12a   : > { %v1797_v16 = vadd.f32 %v1796_v11, %v1783_v6 }
 0x12c   : > { %v2015_v21 = vpack.c.bf16 %v1797_v16, %v1755_v15 }
 0x12d   : > { %1969 = vmatpush.bf16.msra.mxu0 %v3638_v12 }
 0x12e   : > { %v2034_v27 = vunpack.c.h.b16 %v2015_v21  ;;  %v2431_v49 = vunpack.c.l.b16 %v2015_v21  ;;  %v4637_v21 = vld [vmem:[#allocation5 + $0x160] sm:$0xf0] }
 0x12f   : > { %v3602_v22 = vor.u32 %v4637_v21, %v3601_v20 }
 0x130   : > { %v2035_v29 = vpack.c.b16 %v2034_v27, %v2033_v26  ;;  %v2432_v51 = vpack.c.b16 %v2431_v49, %v2430_v50  ;;  %v3566_v26 = vor.u32 %v4628_v25, %v3565_v24 }
 0x131   : > { %1970 = vmatpush.bf16.msra.mxu0 %v3602_v22 }
 0x132   : > { %2136 = vrot.lane.b32.xlu1 %v2035_v29, %s5236_s21  ;;  %v2041_v34 = vsel %vm2036_vm0, %v2035_v29, 0 }
 0x133   : > { %2050 = vmatpush.bf16.xpose.msra.mxu3 %v2041_v34  ;;  %v3493_v34 = vld [vmem:[#allocation5 + $0x68] sm:$0xf] }
 0x134   : > { %v3494_v32 = vor.u32 %v4610_v37, %v3493_v34 }
 0x135   : > { %1971 = vmatpush.bf16.msra.mxu0 %v3566_v26 }
 0x137   : > { %v1808_v46 = vpop.f32.mrf.mxu0 }
 0x138   : > { %v1822_v48 = vpop.f32.mrf.mxu1 }
 0x139   : > { %v1823_v63 = vadd.f32 %v1822_v48, %v1808_v46  ;;  %1972 = vmatpush.bf16.msra.mxu0 %v3530_v35 }
 0x13a   : > { %2134 = vrot.lane.b32.xlu1 %v2030_v40, %s5236_s21  ;;  %4287 = vmatmul.msk.bf16.vlgmr.msra.gmra.mxu3 %vm2036_vm0, %v2030_v40 }
 0x13d   : > { %1973 = vmatpush.bf16.msra.mxu0 %v3494_v32 }
 0x13f   : > { %v1810_v52 = vpop.f32.mrf.mxu0  ;;  %v1836_v59 = vpop.f32.mrf.mxu2 }
 0x140   : > { %v1824_v53 = vpop.f32.mrf.mxu1  ;;  %v1850_v57 = vpop.f32.mrf.mxu3  ;;  %v1837_v3 = vadd.f32 %v1836_v59, %v1823_v63 }
 0x141   : > { %v1825_v2 = vadd.f32 %v1824_v53, %v1810_v52  ;;  %1974 = vmatpush.bf16.msra.mxu0 %v3458_v41 }
 0x142   : > { %2333 = vrot.lane.b32.xlu1 %v5438_v47, %s5236_s21 }
 0x144   : > { %1975 = vmatmul.bf16.vlgmr.msra.gmra.mxu0 %v5399_v58 }
 0x147   : > { %v1838_v7 = vpop.f32.mrf.mxu2 }
 0x148   : > { %v1852_v6 = vpop.f32.mrf.mxu3  ;;  %v1839_v15 = vadd.f32 %v1838_v7, %v1825_v2 }
 0x14a   : > { %2532 = vrot.lane.b32.xlu1 %v2432_v51, %s5236_s21 }
 0x157   : > { %v1864_v62 = vpop.f32.mrf.mxu0 }
 0x158   : > { %v1865_v0 = vadd.f32 %v1864_v62, %v1850_v57  ;;  %v1878_v1 = vpop.f32.mrf.mxu1 }
 0x15a   : > { %v1879_v4 = vadd.f32 %v1878_v1, %v1865_v0 }
 0x15c   : > { %v2011_v13 = vpack.c.bf16 %v1879_v4, %v1837_v3 }
 0x15e   : > { %v2433_v18 = vunpack.c.h.b16 %v2011_v13  ;;  %v2236_v54 = vunpack.c.l.b16 %v2011_v13 }
 0x15f   : > { %v1866_v11 = vpop.f32.mrf.mxu0  ;;  %v1892_v28 = vpop.f32.mrf.mxu2 }
 0x160   : > { %v1867_v14 = vadd.f32 %v1866_v11, %v1852_v6  ;;  %v1880_v16 = vpop.f32.mrf.mxu1  ;;  %v1906_v30 = vpop.f32.mrf.mxu3  ;;  %v2019_v11 = vlaneseq }
 0x161   : > { %v1907_v45 = vadd.f32 %v1906_v30, %v1892_v28 }
 0x162   : > { %v1881_v17 = vadd.f32 %v1880_v16, %v1867_v14  ;;  %v2020_v12 = vshrl.u32 %v2019_v11, 7  ;;  %v2023_v13 = vand.u32 127, %v2019_v11  ;;  %v4673_v11 = vld [vmem:[#allocation5 + $0x280] sm:$0xf0] }
 0x164   : > { %v2016_v19 = vpack.c.bf16 %v1881_v17, %v1839_v15  ;;  %vm5457_vm1 = vcmp.le.s32.totalorder %v2023_v13, %v2020_v12 }
 0x166   : > { %v2434_v23 = vunpack.c.h.b16 %v2016_v19  ;;  %v2237_v56 = vunpack.c.l.b16 %v2016_v19  ;;  %v2021_v19 = vadd.s32 8, %v2020_v12 }
 0x167   : > { %v1894_v39 = vpop.f32.mrf.mxu2 }
 0x168   : > { %v5443_v27 = vpack.c.b16 %v2434_v23, %v2433_v18  ;;  %v1908_v40 = vpop.f32.mrf.mxu3  ;;  %v2238_v0 = vpack.c.b16 %v2237_v56, %v2236_v54  ;;  %vm5464_vm3 = vcmp.le.s32.totalorder %v2023_v13, %v2021_v19  ;;  %v3889_v56 = vld [vmem:[#allocation5 + $0x380] sm:$0xf] }
 0x169   : > { %v1909_v49 = vadd.f32 %v1908_v40, %v1894_v39 }
 0x16a   : > { %v2440_v29 = vsel %vm2036_vm0, %v5443_v27, 0  ;;  %v2243_v6 = vsel %vm2036_vm0, %v2238_v0, 0 }
 0x16b   : > { %2449 = vmatpush.bf16.xpose.msrb.mxu2 %v2440_v29 }
 0x172   : > { %4295 = vmatmul.msk.bf16.vlgmr.msrb.gmra.mxu2 %vm2036_vm0, %v2432_v51 }
 0x177   : > { %v1920_v43 = vpop.f32.mrf.mxu0 }
 0x178   : > { %v1934_v42 = vpop.f32.mrf.mxu1  ;;  %v1921_v50 = vadd.f32 %v1920_v43, %v1907_v45  ;;  %v4736_v45 = vld [vmem:[#allocation5 + $0x478] sm:$0xf0] }
 0x17f   : > { %v1948_v44 = vpop.f32.mrf.mxu2  ;;  %v1922_v51 = vpop.f32.mrf.mxu0 }
 0x180   : > { %v1949_v46 = vadd.f32 %v1948_v44, %v1934_v42  ;;  %v1962_v48 = vpop.f32.mrf.mxu3  ;;  %v1936_v53 = vpop.f32.mrf.mxu1  ;;  %v1923_v60 = vadd.f32 %v1922_v51, %v1909_v49  ;;  %v3997_v44 = vld [vmem:[#allocation5 + $0x458] sm:$0xf]  ;;  %v4727_v49 = vld [vmem:[#allocation5 + $0x430] sm:$0xf0] }
 0x182   : > { %v1963_v52 = vadd.f32 %v1962_v48, %v1949_v46  ;;  %v3961_v46 = vld [vmem:[#allocation5 + $0x410] sm:$0xf]  ;;  %v3998_v48 = vor.u32 %v4736_v45, %v3997_v44 }
 0x184   : > { %v2012_v57 = vpack.c.bf16 %v1963_v52, %v1921_v50  ;;  %1981 = vmatpush.bf16.msra.mxu1 %v3998_v48  ;;  %v3962_v50 = vor.u32 %v4727_v49, %v3961_v46  ;;  %v3925_v52 = vld [vmem:[#allocation5 + $0x3c8] sm:$0xf] }
 0x186   : > { %v2113_v62 = vunpack.c.l.b16 %v2012_v57  ;;  %v2312_v63 = vunpack.c.h.b16 %v2012_v57  ;;  %v4709_v57 = vld [vmem:[#allocation5 + $0x3a0] sm:$0xf0] }
 0x187   : > { %v1950_v55 = vpop.f32.mrf.mxu2 }
 0x188   : > { %v1951_v59 = vadd.f32 %v1950_v55, %v1936_v53  ;;  %v1964_v9 = vpop.f32.mrf.mxu3  ;;  %v4718_v53 = vld [vmem:[#allocation5 + $0x3e8] sm:$0xf0]  ;;  %1982 = vmatpush.bf16.msra.mxu1 %v3962_v50 }
 0x189   : > { %v3926_v55 = vor.u32 %v4718_v53, %v3925_v52 }
 0x18a   : > { %v1965_v61 = vadd.f32 %v1964_v9, %v1951_v59  ;;  %v3890_v59 = vor.u32 %v4709_v57, %v3889_v56  ;;  %v4700_v9 = vld [vmem:[#allocation5 + $0x358] sm:$0xf0] }
 0x18c   : > { %v2017_v58 = vpack.c.bf16 %v1965_v61, %v1923_v60  ;;  %1983 = vmatpush.bf16.msra.mxu1 %v3926_v55  ;;  %v3853_v60 = vld [vmem:[#allocation5 + $0x338] sm:$0xf] }
 0x18e   : > { %v2114_v1 = vunpack.c.l.b16 %v2017_v58  ;;  %v2313_v2 = vunpack.c.h.b16 %v2017_v58  ;;  %v3817_v58 = vld [vmem:[#allocation5 + $0x2f0] sm:$0xf] }
 0x190   : > { %v5449_v3 = vpack.c.b16 %v2114_v1, %v2113_v62  ;;  %v5451_v4 = vpack.c.b16 %v2313_v2, %v2312_v63  ;;  %1984 = vmatpush.bf16.msra.mxu1 %v3890_v59  ;;  %v3854_v63 = vor.u32 %v4700_v9, %v3853_v60  ;;  %v3781_v2 = vld [vmem:[#allocation5 + $0x2a8] sm:$0xf] }
 0x192   : > { %2127 = vmatpush.bf16.msrb.mxu3 %v5449_v3 }
 0x194   : > { %1985 = vmatpush.bf16.msra.mxu1 %v3854_v63 }
 0x196   : > { %2252 = vmatpush.bf16.xpose.msra.mxu3 %v2243_v6  ;;  %v4682_v6 = vld [vmem:[#allocation5 + $0x2c8] sm:$0xf0] }
 0x19f   : > { %v2004_v55 = vpop.f32.mrf.mxu2 }
 0x1a4   : > { %v2137_v7 = vpop.permute.xlu1 %2136 }
 0x1a5   : > { %v2142_v8 = vsel %vm2036_vm0, %v2137_v7, 0 }
 0x1a6   : > { %2151 = vmatpush.bf16.xpose.msrb.mxu0 %v2142_v8  ;;  %v3782_v8 = vor.u32 %v4682_v6, %v3781_v2 }
 0x1ac   : > { %v2135_v10 = vpop.permute.xlu1 %2134 }
 0x1ad   : > { %4289 = vmatmul.msk.bf16.vlgmr.msrb.gmra.mxu0 %vm2036_vm0, %v2135_v10  ;;  %v3745_v10 = vld [vmem:[#allocation5 + $0x260] sm:$0xf] }
 0x1ae   : > { %v3746_v12 = vor.u32 %v4673_v11, %v3745_v10 }
 0x1b4   : > { %v2334_v7 = vpop.permute.xlu1 %2333 }
 0x1bd   : > { %v2052_v14 = vpop.f32.mrf.mxu3 }
 0x1be   : > { %v2057_v16 = vmul.f32 0.125, %v2052_v14 }
 0x1c0   : > { %v2059_v17 = vsel %vm5457_vm1, %v2057_v16, -inf }
 0x1c1   : > { %v2062_v18 = vsel %vm2061_vm2, %v2059_v17, -inf  ;;  %v5472_v25 = vpop.f32.mrf.mxu0 }
 0x1c2   : > { %2063 = vmax.xlane.f32.xlu0 %v2062_v18 }
 0x1c5   : > { %v2054_v20 = vpop.f32.mrf.mxu3 }
 0x1c6   : > { %v2058_v22 = vmul.f32 0.125, %v2054_v20 }
 0x1c8   : > { %v2060_v23 = vsel %vm5464_vm3, %v2058_v22, -inf }
 0x1c9   : > { %v2065_v24 = vsel %vm2061_vm2, %v2060_v23, -inf  ;;  %v5474_v26 = vpop.f32.mrf.mxu0 }
 0x1ca   : > { %2066 = vmax.xlane.f32.xlu0 %v2065_v24 }
 0x1de   : > { %2335 = vrot.lane.b32.xlu0 %v2238_v0, %s5236_s21  ;;  %v4691_v0 = vld [vmem:[#allocation5 + $0x310] sm:$0xf0] }
 0x1df   : > { %v3818_v1 = vor.u32 %v4691_v0, %v3817_v58 }
 0x1e1   : > { %1986 = vmatpush.bf16.msra.mxu1 %v3818_v1 }
 0x1e5   : > { %1987 = vmatpush.bf16.msra.mxu1 %v3782_v8 }
 0x1e9   : > { %1988 = vmatpush.bf16.msra.mxu1 %v3746_v12 }
 0x1ec   : > { %1989 = vmatmul.bf16.vlgmr.msra.gmra.mxu1 %v5404_v5 }
 0x22a   : > { %v2153_v28 = vpop.f32.mrf.mxu0 }
 0x22b   : > { %v2158_v29 = vmul.f32 0.125, %v2153_v28 }
 0x22d   : > { %v5478_v30 = vsel %vm5457_vm1, %v2158_v29, -inf }
 0x22e   : > { %v2162_v31 = vsel %vm2061_vm2, %v5478_v30, -inf }
 0x22f   : > { %2163 = vmax.xlane.f32.xlu1 %v2162_v31 }
 0x232   : > { %v2155_v33 = vpop.f32.mrf.mxu0 }
 0x233   : > { %v2159_v34 = vmul.f32 0.125, %v2155_v33 }
 0x235   : > { %v2064_v35 = vpop.xlane.xlu0 %2063  ;;  %v5484_v37 = vsel %vm5464_vm3, %v2159_v34, -inf }
 0x236   : > { %v2068_v32 = vsub.f32 %v2059_v17, %v2064_v35  ;;  %v2165_v36 = vsel %vm2061_vm2, %v5484_v37, -inf }
 0x237   : > { %2166 = vmax.xlane.f32.xlu0 %v2165_v36 }
 0x238   : > { %v2070_v38 = vmul.f32 1.442695, %v2068_v32 }
 0x23a   : > { %4985 = vpow2.f32 %v2070_v38 }
 0x23d   : > { %v2067_v39 = vpop.xlane.xlu0 %2066 }
 0x23e   : > { %v2069_v40 = vsub.f32 %v2060_v23, %v2067_v39 }
 0x240   : > { %v5488_v41 = vpop.eup %4985  ;;  %v2072_v42 = vmul.f32 1.442695, %v2069_v40  ;;  %v2533_v40 = vpop.permute.xlu1 %2532 }
 0x241   : > { %v2074_v43 = vsel %vm2061_vm2, %v5488_v41, 0.0 }
 0x242   : > { %4987 = vpow2.f32 %v2072_v42  ;;  %2075 = vadd.xlane.f32.xlu2 %v2074_v43 }
 0x248   : > { %v5492_v51 = vpop.eup %4987 }
 0x249   : > { %v2077_v54 = vsel %vm2061_vm2, %v5492_v51, 0.0 }
 0x24a   : > { %2078 = vadd.xlane.f32.xlu2 %v2077_v54 }
 0x250   : > { %v2336_v61 = vpop.permute.xlu0 %2335 }
 0x251   : > { %v2341_v62 = vsel %vm2036_vm0, %v2336_v61, 0 }
 0x252   : > { %2350 = vmatpush.bf16.xpose.msra.mxu0 %v2341_v62  ;;  %v2006_v62 = vpop.f32.mrf.mxu2 }
 0x259   : > { %4293 = vmatmul.msk.bf16.vlgmr.msra.gmra.mxu0 %vm2036_vm0, %v2334_v7 }
 0x262   : > { %2534 = vrot.lane.b32.xlu2 %v5443_v27, %s5236_s21 }
 0x2a2   : > { %v2164_v6 = vpop.xlane.xlu1 %2163 }
 0x2b5   : > { %v2076_v13 = vpop.xlane.xlu2 %2075 }
 0x2b6   : > { %4989 = vrcp.f32 %v2076_v13  ;;  %v2091_v28 = vand.u32 2147483648, %v2076_v13  ;;  %vm2085_vm5 = vweird.f32 %v2076_v13  ;;  %v2089_v27 = vand.u32 2147483647, %v2076_v13 }
 0x2b8   : > { %v2092_v32 = vor.u32 1.1754944e-38, %v2091_v28  ;;  %vm2090_vm8 = vcmp.eq.f32.partialorder %v2089_v27, 8.507059e+37 }
 0x2bc   : > { %v4990_v14 = vpop.eup %4989 }
 0x2bd   : > { %v2081_v16 = vmul.f32 %v4990_v14, %v2076_v13  ;;  %v2079_v17 = vpop.xlane.xlu2 %2078  ;;  %vm2086_vm4 = vweird.f32 %v4990_v14 }
 0x2be   : > { %4991 = vrcp.f32 %v2079_v17  ;;  %vm2087_vm6 = vmor %vm2085_vm5, %vm2086_vm4  ;;  %v2105_v5 = vand.u32 2147483648, %v2079_v17  ;;  %v2103_v35 = vand.u32 2147483647, %v2079_v17  ;;  %vm2099_vm9 = vweird.f32 %v2079_v17 }
 0x2bf   : > { %v2082_v18 = vsub.f32 1.0, %v2081_v16 }
 0x2c0   : > { %v2106_v39 = vor.u32 1.1754944e-38, %v2105_v5  ;;  %vm2104_vm11 = vcmp.eq.f32.partialorder %v2103_v35, 8.507059e+37 }
 0x2c1   : > { %v2083_v19 = vmul.f32 %v4990_v14, %v2082_v18 }
 0x2c3   : > { %v2084_v22 = vadd.f32 %v4990_v14, %v2083_v19  ;;  %v2167_v19 = vpop.xlane.xlu0 %2166 }
 0x2c4   : > { %v4992_v20 = vpop.eup %4991 }
 0x2c5   : > { %v2095_v23 = vmul.f32 %v4992_v20, %v2079_v17  ;;  %v2535_v24 = vpop.permute.xlu2 %2534  ;;  %v2088_v33 = vsel %vm2087_vm6, %v4990_v14, %v2084_v22  ;;  %vm2100_vm7 = vweird.f32 %v4992_v20 }
 0x2c6   : > { %v2540_v29 = vsel %vm2036_vm0, %v2535_v24, 0  ;;  %v2093_v38 = vsel %vm2090_vm8, %v2092_v32, %v2088_v33  ;;  %vm2101_vm10 = vmor %vm2099_vm9, %vm2100_vm7  ;;  %v2169_v24 = vsub.f32 %v5484_v37, %v2167_v19 }
 0x2c7   : > { %v2096_v31 = vsub.f32 1.0, %v2095_v23  ;;  %2549 = vmatpush.bf16.xpose.msrb.mxu0 %v2540_v29  ;;  %v2108_v44 = vmul.f32 %v5488_v41, %v2093_v38 }
 0x2c8   : > { %v2172_v29 = vmul.f32 1.442695, %v2169_v24 }
 0x2c9   : > { %v2097_v34 = vmul.f32 %v4992_v20, %v2096_v31 }
 0x2cb   : > { %v2098_v36 = vadd.f32 %v4992_v20, %v2097_v34 }
 0x2cd   : > { %v2102_v42 = vsel %vm2101_vm10, %v4992_v20, %v2098_v36 }
 0x2ce   : > { %v2107_v43 = vsel %vm2104_vm11, %v2106_v39, %v2102_v42  ;;  %4297 = vmatmul.msk.bf16.vlgmr.msrb.gmra.mxu0 %vm2036_vm0, %v2533_v40 }
 0x2cf   : > { %v2109_v45 = vmul.f32 %v5492_v51, %v2107_v43  ;;  %v1990_v51 = vpop.f32.mrf.mxu1 }
 0x2d0   : > { %v1991_v57 = vadd.f32 %v1990_v51, %v5472_v25  ;;  %v2168_v25 = vsub.f32 %v5478_v30, %v2164_v6 }
 0x2d1   : > { %v2110_v46 = vpack.c.bf16 %v2109_v45, %v2108_v44 }
 0x2d2   : > { %v2005_v59 = vadd.f32 %v2004_v55, %v1991_v57  ;;  %v2170_v11 = vmul.f32 1.442695, %v2168_v25 }
 0x2d3   : > { %4288 = vmatmul.msk.bf16.vlgmr.msrb.gmra.mxu3 %vm2061_vm2, %v2110_v46 }
 0x2d4   : > { %2326 = vmatpush.bf16.msrb.mxu3 %v5451_v4  ;;  %v2013_v9 = vpack.c.bf16 %v2005_v59, %v2005_v59  ;;  %4993 = vpow2.f32 %v2170_v11 }
 0x2d5   : > { %4995 = vpow2.f32 %v2172_v29 }
 0x2d6   : > { %v2352_v48 = vpop.f32.mrf.mxu0  ;;  %v2511_v58 = vunpack.c.l.b16 %v2013_v9 }
 0x2d7   : > { %v2357_v49 = vmul.f32 0.125, %v2352_v48  ;;  %v1992_v60 = vpop.f32.mrf.mxu1 }
 0x2d8   : > { %v1993_v61 = vadd.f32 %v1992_v60, %v5474_v26  ;;  %v2451_v26 = vpop.f32.mrf.mxu2 }
 0x2d9   : > { %v2359_v50 = vsel %vm5457_vm1, %v2357_v49, -inf  ;;  %v2456_v46 = vmul.f32 0.125, %v2451_v26 }
 0x2da   : > { %v2361_v52 = vsel %vm2061_vm2, %v2359_v50, -inf  ;;  %v2007_v63 = vadd.f32 %v2006_v62, %v1993_v61  ;;  %v5529_v30 = vpop.eup %4993 }
 0x2db   : > { %2362 = vmax.xlane.f32.xlu2 %v2361_v52  ;;  %v2174_v22 = vsel %vm2061_vm2, %v5529_v30, 0.0  ;;  %v5542_v39 = vpop.eup %4995 }
 0x2dc   : > { %v2018_v0 = vpack.c.bf16 %v2007_v63, %v2007_v63  ;;  %v2177_v45 = vsel %vm2061_vm2, %v5542_v39, 0.0 }
 0x2de   : > { %v2354_v53 = vpop.f32.mrf.mxu0  ;;  %v2512_v1 = vunpack.c.l.b16 %v2018_v0 }
 0x2df   : > { %v2358_v54 = vmul.f32 0.125, %v2354_v53 }
 0x2e0   : > { %v2513_v2 = vpack.c.b16 %v2512_v1, %v2511_v58  ;;  %v2453_v18 = vpop.f32.mrf.mxu2 }
 0x2e1   : > { %v5512_v41 = vsel %vm5464_vm3, %v2358_v54, -inf  ;;  %v2457_v23 = vmul.f32 0.125, %v2453_v18 }
 0x2e2   : > { %v2364_v56 = vsel %vm2061_vm2, %v5512_v41, -inf }
 0x2e3   : > { %4291 = vmatmul.msk.bf16.vlgmr.msra.gmra.mxu3 %vm2036_vm0, %v5438_v47  ;;  %2365 = vmax.xlane.f32.xlu1 %v2364_v56  ;;  %v2459_v28 = vsel %vm5464_vm3, %v2457_v23, -inf }
 0x2e4   : > { %2525 = vmatpush.bf16.msra.mxu3 %v2513_v2  ;;  %v2463_v33 = vsel %vm2061_vm2, %v2459_v28, -inf }
 0x34b   : > { %v2551_v7 = vpop.f32.mrf.mxu0 }
 0x34c   : > { %v2556_v8 = vmul.f32 0.125, %v2551_v7 }
 0x34e   : > { %v2558_v47 = vsel %vm5457_vm1, %v2556_v8, -inf  ;;  %v2363_v27 = vpop.xlane.xlu2 %2362 }
 0x34f   : > { %v2560_v10 = vsel %vm2061_vm2, %v2558_v47, -inf  ;;  %v2367_v34 = vsub.f32 %v2359_v50, %v2363_v27  ;;  %v5554_v50 = vsel %vm5457_vm1, %v2456_v46, -inf }
 0x350   : > { %2561 = vmax.xlane.f32.xlu0 %v2560_v10  ;;  %v2460_v21 = vsel %vm2061_vm2, %v5554_v50, -inf }
 0x351   : > { %v2369_v36 = vmul.f32 1.442695, %v2367_v34 }
 0x353   : > { %v2553_v12 = vpop.f32.mrf.mxu0  ;;  %4997 = vpow2.f32 %v2369_v36 }
 0x354   : > { %v2557_v13 = vmul.f32 0.125, %v2553_v12 }
 0x356   : > { %v5524_v14 = vpop.f32.mrf.mxu3  ;;  %v2559_v16 = vsel %vm5464_vm3, %v2557_v13, -inf  ;;  %v2366_v37 = vpop.xlane.xlu1 %2365 }
 0x357   : > { %v2563_v17 = vsel %vm2061_vm2, %v2559_v16, -inf  ;;  %v2368_v42 = vsub.f32 %v5512_v41, %v2366_v37 }
 0x358   : > { %2564 = vmax.xlane.f32.xlu2 %v2563_v17 }
 0x359   : > { %v2371_v48 = vmul.f32 1.442695, %v2368_v42  ;;  %v5550_v49 = vpop.eup %4997 }
 0x35a   : > { %v2373_v52 = vsel %vm2061_vm2, %v5550_v49, 0.0 }
 0x35b   : > { %4999 = vpow2.f32 %v2371_v48 }
 0x35e   : > { %v5531_v20 = vpop.f32.mrf.mxu3 }
 0x360   : > { %2175 = vadd.xlane.f32.xlu2 %v2174_v22 }
 0x361   : > { %v5560_v53 = vpop.eup %4999 }
 0x362   : > { %v2376_v54 = vsel %vm2061_vm2, %v5560_v53, 0.0 }
 0x366   : > { %v2254_v31 = vpop.f32.mrf.mxu3 }
 0x367   : > { %v2259_v5 = vmul.f32 0.125, %v2254_v31 }
 0x368   : > { %2464 = vmax.xlane.f32.xlu2 %v2463_v33 }
 0x369   : > { %v2261_v35 = vsel %vm5457_vm1, %v2259_v5, -inf }
 0x36a   : > { %v2263_v32 = vsel %vm2061_vm2, %v2261_v35, -inf }
 0x36b   : > { %2264 = vmax.xlane.f32.xlu1 %v2263_v32 }
 0x36e   : > { %v2256_v38 = vpop.f32.mrf.mxu3 }
 0x36f   : > { %v2260_v40 = vmul.f32 0.125, %v2256_v38 }
 0x371   : > { %v2262_v43 = vsel %vm5464_vm3, %v2260_v40, -inf }
 0x372   : > { %v2266_v44 = vsel %vm2061_vm2, %v2262_v43, -inf }
 0x373   : > { %2267 = vmax.xlane.f32.xlu0 %v2266_v44  ;;  %2178 = vadd.xlane.f32.xlu1 %v2177_v45 }
 0x37b   : > { %2461 = vmax.xlane.f32.xlu0 %v2460_v21  ;;  %2374 = vadd.xlane.f32.xlu1 %v2373_v52 }
 0x380   : > { %2211 = vrot.lane.b32.xlu2 %v5449_v3, %s5236_s21 }
 0x383   : > { %2377 = vadd.xlane.f32.xlu0 %v2376_v54 }
 0x388   : > { %2609 = vrot.lane.b32.xlu2 %v2513_v2, %s5236_s21 }
 0x3c3   : > { %v2562_v15 = vpop.xlane.xlu0 %2561 }
 0x3c4   : > { %v2566_v55 = vsub.f32 %v2558_v47, %v2562_v15 }
 0x3c6   : > { %v2568_v41 = vmul.f32 1.442695, %v2566_v55 }
 0x3c8   : > { %5001 = vpow2.f32 %v2568_v41 }
 0x3cb   : > { %v2565_v51 = vpop.xlane.xlu2 %2564 }
 0x3cc   : > { %v2567_v56 = vsub.f32 %v2559_v16, %v2565_v51 }
 0x3ce   : > { %v5567_v57 = vpop.eup %5001  ;;  %v2570_v59 = vmul.f32 1.442695, %v2567_v56 }
 0x3cf   : > { %v2572_v60 = vsel %vm2061_vm2, %v5567_v57, 0.0 }
 0x3d0   : > { %5003 = vpow2.f32 %v2570_v59  ;;  %2573 = vadd.xlane.f32.xlu1 %v2572_v60 }
 0x3d3   : > { %v2176_v3 = vpop.xlane.xlu2 %2175 }
 0x3d4   : > { %5005 = vrcp.f32 %v2176_v3  ;;  %vm2185_vm13 = vweird.f32 %v2176_v3  ;;  %v2189_v27 = vand.u32 2147483647, %v2176_v3 }
 0x3d6   : > { %v5571_v9 = vpop.eup %5003  ;;  %vm2190_vm1 = vcmp.eq.f32.partialorder %v2189_v27, 8.507059e+37 }
 0x3d7   : > { %v2575_v61 = vsel %vm2061_vm2, %v5571_v9, 0.0 }
 0x3d8   : > { %2576 = vadd.xlane.f32.xlu0 %v2575_v61 }
 0x3da   : > { %v5006_v58 = vpop.eup %5005 }
 0x3db   : > { %v2465_v62 = vpop.xlane.xlu2 %2464  ;;  %v2181_v6 = vmul.f32 %v5006_v58, %v2176_v3  ;;  %vm2186_vm12 = vweird.f32 %v5006_v58 }
 0x3dc   : > { %v2467_v63 = vsub.f32 %v2459_v28, %v2465_v62  ;;  %v2191_v28 = vand.u32 2147483648, %v2176_v3  ;;  %vm5585_vm14 = vmor %vm2185_vm13, %vm2186_vm12 }
 0x3dd   : > { %v2182_v25 = vsub.f32 1.0, %v2181_v6 }
 0x3de   : > { %v2470_v0 = vmul.f32 1.442695, %v2467_v63  ;;  %v2265_v1 = vpop.xlane.xlu1 %2264  ;;  %v2192_v37 = vor.u32 1.1754944e-38, %v2191_v28 }
 0x3df   : > { %v2269_v2 = vsub.f32 %v2261_v35, %v2265_v1  ;;  %v2183_v16 = vmul.f32 %v5006_v58, %v2182_v25 }
 0x3e0   : > { %5007 = vpow2.f32 %v2470_v0 }
 0x3e1   : > { %v2271_v7 = vmul.f32 1.442695, %v2269_v2  ;;  %v2184_v22 = vadd.f32 %v5006_v58, %v2183_v16 }
 0x3e3   : > { %5009 = vpow2.f32 %v2271_v7  ;;  %v2212_v8 = vpop.permute.xlu2 %2211  ;;  %v2188_v5 = vsel %vm5585_vm14, %v5006_v58, %v2184_v22 }
 0x3e4   : > { %2224 = vmatpush.bf16.msrb.mxu1 %v2212_v8  ;;  %v2193_v42 = vsel %vm2190_vm1, %v2192_v37, %v2188_v5 }
 0x3e5   : > { %v2208_v46 = vmul.f32 %v5529_v30, %v2193_v42 }
 0x3e6   : > { %v5575_v47 = vpop.eup %5007  ;;  %v2179_v10 = vpop.xlane.xlu1 %2178 }
 0x3e7   : > { %v2268_v11 = vpop.xlane.xlu0 %2267  ;;  %5011 = vrcp.f32 %v2179_v10  ;;  %v2475_v12 = vsel %vm2061_vm2, %v5575_v47, 0.0  ;;  %v2205_v33 = vand.u32 2147483648, %v2179_v10  ;;  %v2203_v32 = vand.u32 2147483647, %v2179_v10 }
 0x3e8   : > { %v2270_v26 = vsub.f32 %v2262_v43, %v2268_v11  ;;  %2476 = vadd.xlane.f32.xlu2 %v2475_v12  ;;  %vm2199_vm3 = vweird.f32 %v2179_v10 }
 0x3e9   : > { %v5579_v13 = vpop.eup %5009  ;;  %2410 = vrot.lane.b32.xlu1 %v5451_v4, %s5236_s21  ;;  %v2206_v43 = vor.u32 1.1754944e-38, %v2205_v33  ;;  %vm2204_vm5 = vcmp.eq.f32.partialorder %v2203_v32, 8.507059e+37 }
 0x3ea   : > { %v2273_v17 = vmul.f32 1.442695, %v2270_v26  ;;  %v2275_v18 = vsel %vm2061_vm2, %v5579_v13, 0.0 }
 0x3eb   : > { %2276 = vadd.xlane.f32.xlu0 %v2275_v18  ;;  %v2610_v29 = vpop.permute.xlu2 %2609 }
 0x3ec   : > { %5013 = vpow2.f32 %v2273_v17 }
 0x3ed   : > { %v5012_v19 = vpop.eup %5011 }
 0x3ee   : > { %v2195_v23 = vmul.f32 %v5012_v19, %v2179_v10  ;;  %vm2200_vm15 = vweird.f32 %v5012_v19  ;;  %v2375_v15 = vpop.xlane.xlu1 %2374 }
 0x3ef   : > { %v2462_v24 = vpop.xlane.xlu0 %2461  ;;  %vm2201_vm4 = vmor %vm2199_vm3, %vm2200_vm15  ;;  %v2390_v6 = vand.u32 2147483648, %v2375_v15  ;;  %vm2384_vm10 = vweird.f32 %v2375_v15  ;;  %v2388_v7 = vand.u32 2147483647, %v2375_v15 }
 0x3f0   : > { %v2196_v31 = vsub.f32 1.0, %v2195_v23  ;;  %v2466_v4 = vsub.f32 %v5554_v50, %v2462_v24 }
 0x3f1   : > { %v2391_v12 = vor.u32 1.1754944e-38, %v2390_v6  ;;  %vm2389_vm13 = vcmp.eq.f32.partialorder %v2388_v7, 8.507059e+37 }
 0x3f2   : > { %v5592_v34 = vpop.eup %5013  ;;  %v2197_v35 = vmul.f32 %v5012_v19, %v2196_v31  ;;  %v2468_v36 = vmul.f32 1.442695, %v2466_v4 }
 0x3f3   : > { %v2278_v38 = vsel %vm2061_vm2, %v5592_v34, 0.0 }
 0x3f4   : > { %v2198_v40 = vadd.f32 %v5012_v19, %v2197_v35  ;;  %5015 = vpow2.f32 %v2468_v36  ;;  %2279 = vadd.xlane.f32.xlu0 %v2278_v38 }
 0x3f6   : > { %v2202_v44 = vsel %vm2201_vm4, %v5012_v19, %v2198_v40 }
 0x3f7   : > { %v2207_v45 = vsel %vm2204_vm5, %v2206_v43, %v2202_v44  ;;  %v2378_v54 = vpop.xlane.xlu0 %2377 }
 0x3f8   : > { %v2209_v48 = vmul.f32 %v5542_v39, %v2207_v45  ;;  %5017 = vrcp.f32 %v2378_v54  ;;  %v2404_v63 = vand.u32 2147483648, %v2378_v54  ;;  %vm2398_vm8 = vweird.f32 %v2378_v54 }
 0x3f9   : > { %5019 = vrcp.f32 %v2375_v15  ;;  %v2402_v1 = vand.u32 2147483647, %v2378_v54 }
 0x3fa   : > { %v5598_v50 = vpop.eup %5015  ;;  %v2210_v21 = vpack.c.bf16 %v2209_v48, %v2208_v46  ;;  %v2405_v10 = vor.u32 1.1754944e-38, %v2404_v63 }
 0x3fb   : > { %v2472_v52 = vsel %vm2061_vm2, %v5598_v50, 0.0  ;;  %vm2403_vm12 = vcmp.eq.f32.partialorder %v2402_v1, 8.507059e+37 }
 0x3fc   : > { %2473 = vadd.xlane.f32.xlu0 %v2472_v52  ;;  %4290 = vmatmul.msk.bf16.vlgmr.msrb.gmra.mxu1 %vm2061_vm2, %v2210_v21 }
 0x3fe   : > { %v5018_v55 = vpop.eup %5017 }
 0x3ff   : > { %v5020_v41 = vpop.eup %5019  ;;  %v2394_v51 = vmul.f32 %v5018_v55, %v2378_v54  ;;  %vm2399_vm6 = vweird.f32 %v5018_v55 }
 0x400   : > { %v2380_v56 = vmul.f32 %v5020_v41, %v2375_v15  ;;  %vm2385_vm7 = vweird.f32 %v5020_v41  ;;  %vm2400_vm9 = vmor %vm2398_vm8, %vm2399_vm6 }
 0x401   : > { %v2395_v30 = vsub.f32 1.0, %v2394_v51  ;;  %vm2386_vm11 = vmor %vm2384_vm10, %vm2385_vm7 }
 0x402   : > { %v2381_v39 = vsub.f32 1.0, %v2380_v56 }
 0x403   : > { %v2396_v60 = vmul.f32 %v5018_v55, %v2395_v30 }
 0x404   : > { %v2382_v61 = vmul.f32 %v5020_v41, %v2381_v39 }
 0x405   : > { %v2397_v62 = vadd.f32 %v5018_v55, %v2396_v60 }
 0x406   : > { %v2383_v0 = vadd.f32 %v5020_v41, %v2382_v61 }
 0x407   : > { %v2401_v8 = vsel %vm2400_vm9, %v5018_v55, %v2397_v62 }
 0x408   : > { %v2387_v11 = vsel %vm2386_vm11, %v5020_v41, %v2383_v0  ;;  %v2406_v16 = vsel %vm2403_vm12, %v2405_v10, %v2401_v8 }
 0x409   : > { %v2392_v18 = vsel %vm2389_vm13, %v2391_v12, %v2387_v11  ;;  %v2408_v19 = vmul.f32 %v5560_v53, %v2406_v16 }
 0x40a   : > { %v2407_v23 = vmul.f32 %v5550_v49, %v2392_v18 }
 0x40c   : > { %v2409_v31 = vpack.c.bf16 %v2408_v19, %v2407_v23 }
 0x443   : > { %v5603_v59 = vpop.xlane.xlu1 %2573 }
 0x444   : > { %5021 = vrcp.f32 %v5603_v59  ;;  %v2589_v49 = vand.u32 2147483648, %v5603_v59  ;;  %vm2583_vm4 = vweird.f32 %v5603_v59  ;;  %v2587_v32 = vand.u32 2147483647, %v5603_v59 }
 0x446   : > { %v2590_v42 = vor.u32 1.1754944e-38, %v2589_v49  ;;  %vm2588_vm7 = vcmp.eq.f32.partialorder %v2587_v32, 8.507059e+37 }
 0x44a   : > { %v5022_v58 = vpop.eup %5021 }
 0x44b   : > { %v2577_v3 = vpop.xlane.xlu0 %2576  ;;  %v2579_v26 = vmul.f32 %v5022_v58, %v5603_v59  ;;  %vm2584_vm15 = vweird.f32 %v5022_v58 }
 0x44c   : > { %5023 = vrcp.f32 %v2577_v3  ;;  %v2603_v33 = vand.u32 2147483648, %v2577_v3  ;;  %vm2597_vm1 = vweird.f32 %v2577_v3  ;;  %v2601_v53 = vand.u32 2147483647, %v2577_v3  ;;  %vm2585_vm5 = vmor %vm2583_vm4, %vm2584_vm15 }
 0x44d   : > { %v2580_v22 = vsub.f32 1.0, %v2579_v26 }
 0x44e   : > { %v2604_v37 = vor.u32 1.1754944e-38, %v2603_v33  ;;  %vm2602_vm6 = vcmp.eq.f32.partialorder %v2601_v53, 8.507059e+37 }
 0x44f   : > { %v2581_v27 = vmul.f32 %v5022_v58, %v2580_v22 }
 0x451   : > { %v2582_v35 = vadd.f32 %v5022_v58, %v2581_v27 }
 0x452   : > { %v5024_v2 = vpop.eup %5023 }
 0x453   : > { %v2593_v25 = vmul.f32 %v5024_v2, %v2577_v3  ;;  %vm2598_vm14 = vweird.f32 %v5024_v2  ;;  %v2586_v40 = vsel %vm2585_vm5, %v5022_v58, %v2582_v35 }
 0x454   : > { %vm2599_vm3 = vmor %vm2597_vm1, %vm2598_vm14  ;;  %v2591_v48 = vsel %vm2588_vm7, %v2590_v42, %v2586_v40  ;;  %v4830_v40 = vld [vmem:[#allocation7 + $0xac] sm:$0xf] }
 0x455   : > { %v2594_v17 = vsub.f32 1.0, %v2593_v25  ;;  %v2606_v54 = vmul.f32 %v5567_v57, %v2591_v48  ;;  %v4827_v48 = vld [vmem:[#allocation7 + $0x94] sm:$0xf] }
 0x457   : > { %v2595_v24 = vmul.f32 %v5024_v2, %v2594_v17 }
 0x459   : > { %v2596_v5 = vadd.f32 %v5024_v2, %v2595_v24 }
 0x45b   : > { %v2411_v28 = vpop.permute.xlu1 %2410  ;;  %v2600_v36 = vsel %vm2599_vm3, %v5024_v2, %v2596_v5  ;;  %v5613_v44 = vpop.xlane.xlu2 %2476 }
 0x45c   : > { %2423 = vmatpush.bf16.msra.mxu1 %v2411_v28  ;;  %v2605_v43 = vsel %vm2602_vm6, %v2604_v37, %v2600_v36  ;;  %vm2497_vm6 = vweird.f32 %v5613_v44  ;;  %v4385_v37 = vld [vmem:[#allocation7 + $0xa8] sm:$0xf] }
 0x45d   : > { %v2607_v52 = vmul.f32 %v5571_v9, %v2605_v43  ;;  %v4387_v43 = vld [vmem:[#allocation7 + $0xb4] sm:$0xf0] }
 0x45e   : > { %v2277_v4 = vpop.xlane.xlu0 %2276 }
 0x45f   : > { %5025 = vrcp.f32 %v2277_v4  ;;  %4294 = vmatmul.msk.bf16.vlgmr.msra.gmra.mxu1 %vm2061_vm2, %v2409_v31  ;;  %v2608_v55 = vpack.c.bf16 %v2607_v52, %v2606_v54  ;;  %v2292_v39 = vand.u32 2147483648, %v2277_v4  ;;  %vm2286_vm9 = vweird.f32 %v2277_v4 }
 0x460   : > { %2622 = vmatpush.bf16.msrb.mxu1 %v2610_v29  ;;  %v2290_v60 = vand.u32 2147483647, %v2277_v4 }
 0x461   : > { %v2293_v58 = vor.u32 1.1754944e-38, %v2292_v39 }
 0x462   : > { %vm2291_vm12 = vcmp.eq.f32.partialorder %v2290_v60, 8.507059e+37  ;;  %v4351_v60 = vld [vmem:[#allocation7 + $0x6c] sm:$0xf0] }
 0x465   : > { %v5026_v38 = vpop.eup %5025 }
 0x466   : > { %v2282_v45 = vmul.f32 %v5026_v38, %v2277_v4  ;;  %vm2287_vm8 = vweird.f32 %v5026_v38 }
 0x467   : > { %v2280_v46 = vpop.xlane.xlu0 %2279  ;;  %vm2288_vm10 = vmor %vm2286_vm9, %vm2287_vm8 }
 0x468   : > { %v2283_v21 = vsub.f32 1.0, %v2282_v45  ;;  %5027 = vrcp.f32 %v2280_v46  ;;  %v2306_v57 = vand.u32 2147483648, %v2280_v46  ;;  %v2304_v63 = vand.u32 2147483647, %v2280_v46  ;;  %v4828_v45 = vld [vmem:[#allocation7 + $0x98] sm:$0xf0] }
 0x469   : > { %5029 = vrcp.f32 %v5613_v44  ;;  %vm2300_vm13 = vweird.f32 %v2280_v46 }
 0x46a   : > { %v2284_v15 = vmul.f32 %v5026_v38, %v2283_v21  ;;  %v2307_v6 = vor.u32 1.1754944e-38, %v2306_v57  ;;  %vm2305_vm15 = vcmp.eq.f32.partialorder %v2304_v63, 8.507059e+37  ;;  %v4375_v21 = vld [vmem:[#allocation7 + $0x9c] sm:$0xf0]  ;;  %v4819_v57 = vld [vmem:[#allocation7 + $0x50] sm:$0xf0] }
 0x46b   : > { %v4378_v54 = vor.u32 %v4827_v48, %v4375_v21  ;;  %v4339_v63 = vld [vmem:[#allocation7 + $0x54] sm:$0xf0] }
 0x46c   : > { %v2285_v56 = vadd.f32 %v5026_v38, %v2284_v15  ;;  %v4824_v15 = vld [vmem:[#allocation7 + $0x7c] sm:$0xf]  ;;  %v4457_v21 = vld [vmem:[#allocation7 + $0x138] sm:$0xf] }
 0x46e   : > { %v5028_v41 = vpop.eup %5027  ;;  %v2289_v61 = vsel %vm2288_vm10, %v5026_v38, %v2285_v56  ;;  %v4831_v38 = vld [vmem:[#allocation7 + $0xb0] sm:$0xf0]  ;;  %v4349_v56 = vld [vmem:[#allocation7 + $0x60] sm:$0xf] }
 0x46f   : > { %v5618_v51 = vpop.eup %5029  ;;  %v2296_v30 = vmul.f32 %v5028_v41, %v2280_v46  ;;  %v2474_v59 = vpop.xlane.xlu0 %2473  ;;  %4298 = vmatmul.msk.bf16.vlgmr.msrb.gmra.mxu1 %vm2061_vm2, %v2608_v55  ;;  %vm2301_vm11 = vweird.f32 %v5028_v41  ;;  %v2294_v2 = vsel %vm2291_vm12, %v2293_v58, %v2289_v61  ;;  %v4386_v42 = vor.u32 %v4831_v38, %v4385_v37  ;;  %v4818_v61 = vld [vmem:[#allocation7 + $0x4c] sm:$0xf]  ;;  %v4325_v58 = vld [vmem:[#allocation7 + $0x30] sm:$0xf]  ;;  %v4483_v38 = vld [vmem:[#allocation7 + $0x174] sm:$0xf0] }
 0x470   : > { %5031 = vrcp.f32 %v2474_v59  ;;  %v2493_v3 = vmul.f32 %v5618_v51, %v5613_v44  ;;  %vm2302_vm14 = vmor %vm2300_vm13, %vm2301_vm11  ;;  %v2309_v11 = vmul.f32 %v5579_v13, %v2294_v2  ;;  %v2489_v23 = vand.u32 2147483648, %v2474_v59  ;;  %v4815_v2 = vld [vmem:[#allocation7 + $0x34] sm:$0xf] }
 0x471   : > { %v2297_v9 = vsub.f32 1.0, %v2296_v30  ;;  %vm2498_vm3 = vweird.f32 %v5618_v51  ;;  %vm2483_vm4 = vweird.f32 %v2474_v59  ;;  %v2487_v28 = vand.u32 2147483647, %v2474_v59  ;;  %3150 = vmatpush.bf16.msra.mxu2 %v4386_v42  ;;  %v4822_v30 = vld [vmem:[#allocation7 + $0x68] sm:$0xf0] }
 0x472   : > { %v2494_v7 = vsub.f32 1.0, %v2493_v3  ;;  %v2503_v13 = vand.u32 2147483648, %v5613_v44  ;;  %vm2499_vm7 = vmor %vm2497_vm6, %vm2498_vm3  ;;  %v2490_v31 = vor.u32 1.1754944e-38, %v2489_v23  ;;  %v4390_v46 = vor.u32 %v4830_v40, %v4387_v43  ;;  %v4337_v3 = vld [vmem:[#allocation7 + $0x48] sm:$0xf] }
 0x473   : > { %v2298_v62 = vmul.f32 %v5028_v41, %v2297_v9  ;;  %vm2488_vm8 = vcmp.eq.f32.partialorder %v2487_v28, 8.507059e+37  ;;  %v4350_v39 = vor.u32 %v4822_v30, %v4349_v56  ;;  %v4303_v23 = vld [vmem:[#allocation7 + $0xc] sm:$0xf0]  ;;  %v4852_v42 = vld [vmem:[#allocation7 + $0x158] sm:$0xf0] }
 0x474   : > { %v2495_v17 = vmul.f32 %v5618_v51, %v2494_v7  ;;  %v2504_v33 = vor.u32 1.1754944e-38, %v2503_v13  ;;  %3192 = vmatpush.bf16.msra.mxu1 %v4390_v46  ;;  %v4469_v40 = vld [vmem:[#allocation7 + $0x150] sm:$0xf]  ;;  %v4471_v46 = vld [vmem:[#allocation7 + $0x15c] sm:$0xf0] }
 0x475   : > { %v2299_v0 = vadd.f32 %v5028_v41, %v2298_v62  ;;  %v4338_v62 = vor.u32 %v4819_v57, %v4337_v3  ;;  %v4470_v48 = vor.u32 %v4852_v42, %v4469_v40  ;;  %v4879_v56 = vld [vmem:[#allocation7 + $0x230] sm:$0xf0]  ;;  %v4846_v30 = vld [vmem:[#allocation7 + $0x128] sm:$0xf0]  ;;  %v4565_v57 = vld [vmem:[#allocation7 + $0x210] sm:$0xf] }
 0x476   : > { %v5032_v1 = vpop.eup %5031  ;;  %v2496_v24 = vadd.f32 %v5618_v51, %v2495_v17  ;;  %v4301_v17 = vld [vmem:[#allocation7] sm:$0xf]  ;;  %v4841_v40 = vld [vmem:[#allocation7 + $0x100] sm:$0xf0]  ;;  %v4836_v42 = vld [vmem:[#allocation7 + $0xdc] sm:$0xf] }
 0x477   : > { %v2303_v8 = vsel %vm2302_vm14, %v5028_v41, %v2299_v0  ;;  %v2479_v25 = vmul.f32 %v5032_v1, %v2474_v59  ;;  %vm2484_vm1 = vweird.f32 %v5032_v1  ;;  %v4363_v41 = vld [vmem:[#allocation7 + $0x84] sm:$0xf0]  ;;  %v4821_v59 = vld [vmem:[#allocation7 + $0x64] sm:$0xf]  ;;  %v4816_v0 = vld [vmem:[#allocation7 + $0x38] sm:$0xf0] }
 0x478   : > { %v2308_v10 = vsel %vm2305_vm15, %v2307_v6, %v2303_v8  ;;  %vm2485_vm5 = vmor %vm2483_vm4, %vm2484_vm1  ;;  %v2500_v5 = vsel %vm2499_vm7, %v5618_v51, %v2496_v24  ;;  %3193 = vmatpush.bf16.msra.mxu1 %v4378_v54  ;;  %v4366_v51 = vor.u32 %v4824_v15, %v4363_v41  ;;  %v4354_v9 = vor.u32 %v4821_v59, %v4351_v60  ;;  %v4327_v6 = vld [vmem:[#allocation7 + $0x3c] sm:$0xf0]  ;;  %v4856_v54 = vld [vmem:[#allocation7 + $0x178] sm:$0xf0] }
 0x479   : > { %v2310_v26 = vmul.f32 %v5592_v34, %v2308_v10  ;;  %v2480_v12 = vsub.f32 1.0, %v2479_v25  ;;  %v2226_v16 = vpop.f32.mrf.mxu1  ;;  %v2501_v34 = vand.u32 2147483647, %v5613_v44  ;;  %v4373_v44 = vld [vmem:[#allocation7 + $0x90] sm:$0xf]  ;;  %v4326_v7 = vor.u32 %v4816_v0, %v4325_v58 }
 0x47a   : > { %v4374_v52 = vor.u32 %v4828_v45, %v4373_v44  ;;  %v4330_v8 = vor.u32 %v4815_v2, %v4327_v6  ;;  %v4313_v25 = vld [vmem:[#allocation7 + $0x18] sm:$0xf]  ;;  %v4813_v10 = vld [vmem:[#allocation7 + $0x20] sm:$0xf0]  ;;  %v4851_v45 = vld [vmem:[#allocation7 + $0x154] sm:$0xf] }
 0x47b   : > { %v2481_v18 = vmul.f32 %v5032_v1, %v2480_v12  ;;  %v2311_v19 = vpack.c.bf16 %v2310_v26, %v2309_v11  ;;  %vm2502_vm9 = vcmp.eq.f32.partialorder %v2501_v34, 8.507059e+37  ;;  %v4812_v11 = vld [vmem:[#allocation7 + $0x1c] sm:$0xf]  ;;  %v4314_v26 = vor.u32 %v4813_v10, %v4313_v25  ;;  %v4315_v12 = vld [vmem:[#allocation7 + $0x24] sm:$0xf0] }
 0x47c   : > { %v2505_v53 = vsel %vm2502_vm9, %v2504_v33, %v2500_v5  ;;  %3151 = vmatpush.bf16.msra.mxu2 %v4374_v52  ;;  %3194 = vmatpush.bf16.msra.mxu1 %v4366_v51  ;;  %v4474_v52 = vor.u32 %v4851_v45, %v4471_v46  ;;  %v4445_v51 = vld [vmem:[#allocation7 + $0x120] sm:$0xf]  ;;  %v4853_v60 = vld [vmem:[#allocation7 + $0x160] sm:$0xf0]  ;;  %v4433_v2 = vld [vmem:[#allocation7 + $0x108] sm:$0xf] }
 0x47d   : > { %v2482_v22 = vadd.f32 %v5032_v1, %v2481_v18  ;;  %4292 = vmatmul.msk.bf16.vlgmr.msrb.gmra.mxu3 %vm2061_vm2, %v2311_v19  ;;  %v2507_v32 = vmul.f32 %v5575_v47, %v2505_v53  ;;  %v4361_v47 = vld [vmem:[#allocation7 + $0x78] sm:$0xf]  ;;  %v4810_v18 = vld [vmem:[#allocation7 + $0x8] sm:$0xf0]  ;;  %v4809_v19 = vld [vmem:[#allocation7 + $0x4] sm:$0xf] }
 0x47e   : > { %v4306_v24 = vor.u32 %v4809_v19, %v4303_v23  ;;  %v4855_v53 = vld [vmem:[#allocation7 + $0x170] sm:$0xf0]  ;;  %v4465_v0 = vld [vmem:[#allocation7 + $0x140] sm:$0xf]  ;;  %v4850_v6 = vld [vmem:[#allocation7 + $0x148] sm:$0xf0] }
 0x47f   : > { %v2486_v29 = vsel %vm2485_vm5, %v5032_v1, %v2482_v22  ;;  %v4342_v1 = vor.u32 %v4818_v61, %v4339_v63  ;;  %v4302_v22 = vor.u32 %v4810_v18, %v4301_v17  ;;  %v4876_v61 = vld [vmem:[#allocation7 + $0x218] sm:$0xf0]  ;;  %v4447_v63 = vld [vmem:[#allocation7 + $0x12c] sm:$0xf0]  ;;  %v4553_v25 = vld [vmem:[#allocation7 + $0x1f8] sm:$0xf] }
 0x480   : > { %v2491_v35 = vsel %vm2488_vm8, %v2490_v31, %v2486_v29  ;;  %3195 = vmatpush.bf16.msra.mxu1 %v4354_v9  ;;  %v4566_v58 = vor.u32 %v4876_v61, %v4565_v57  ;;  %v4873_v10 = vld [vmem:[#allocation7 + $0x200] sm:$0xf0]  ;;  %v4435_v17 = vld [vmem:[#allocation7 + $0x114] sm:$0xf0]  ;;  %v4870_v23 = vld [vmem:[#allocation7 + $0x1e8] sm:$0xf0] }
 0x481   : > { %v2228_v27 = vpop.f32.mrf.mxu1  ;;  %v2506_v49 = vmul.f32 %v5598_v50, %v2491_v35  ;;  %v4825_v50 = vld [vmem:[#allocation7 + $0x80] sm:$0xf0]  ;;  %v4481_v35 = vld [vmem:[#allocation7 + $0x168] sm:$0xf]  ;;  %v4554_v18 = vor.u32 %v4873_v10, %v4553_v25  ;;  %v4875_v57 = vld [vmem:[#allocation7 + $0x214] sm:$0xf] }
 0x482   : > { %v4970_v4 = vpack.i.bf16 %v2228_v27, %v2226_v16  ;;  %v4362_v55 = vor.u32 %v4825_v50, %v4361_v47  ;;  %v4318_v16 = vor.u32 %v4812_v11, %v4315_v12  ;;  %v4482_v37 = vor.u32 %v4855_v53, %v4481_v35  ;;  %v4848_v47 = vld [vmem:[#allocation7 + $0x13c] sm:$0xf]  ;;  %v4459_v50 = vld [vmem:[#allocation7 + $0x144] sm:$0xf0]  ;;  %v4847_v12 = vld [vmem:[#allocation7 + $0x130] sm:$0xf0] }
 0x483   : > { %v2508_v36 = vpack.c.bf16 %v2507_v32, %v2506_v49  ;;  %v4854_v49 = vld [vmem:[#allocation7 + $0x16c] sm:$0xf]  ;;  %v4462_v9 = vor.u32 %v4848_v47, %v4459_v50  ;;  %v4529_v35 = vld [vmem:[#allocation7 + $0x1c8] sm:$0xf]  ;;  %v4867_v53 = vld [vmem:[#allocation7 + $0x1d0] sm:$0xf0] }
 0x484   : > { %4971 = vrot.lane.b32.xlu1 %v4970_v4, %s5236_s21  ;;  %3152 = vmatpush.bf16.msra.mxu2 %v4362_v55  ;;  %v4486_v44 = vor.u32 %v4854_v49, %v4483_v38  ;;  %v4577_v55 = vld [vmem:[#allocation7 + $0x228] sm:$0xf]  ;;  %v4409_v49 = vld [vmem:[#allocation7 + $0xd8] sm:$0xf]  ;;  %v4530_v45 = vor.u32 %v4867_v53, %v4529_v35  ;;  %v4567_v61 = vld [vmem:[#allocation7 + $0x21c] sm:$0xf0] }
 0x485   : > { %3196 = vmatpush.bf16.msra.mxu1 %v4342_v1  ;;  %3164 = vmatpush.bf16.msrb.mxu3 %v4482_v37  ;;  %v4578_v59 = vor.u32 %v4879_v56, %v4577_v55  ;;  %v4446_v1 = vor.u32 %v4846_v30, %v4445_v51  ;;  %v4429_v38 = vld [vmem:[#allocation7 + $0xf8] sm:$0xf]  ;;  %v4838_v55 = vld [vmem:[#allocation7 + $0xe8] sm:$0xf0]  ;;  %v4399_v51 = vld [vmem:[#allocation7 + $0xcc] sm:$0xf0] }
 0x486   : > { %v4579_v50 = vld [vmem:[#allocation7 + $0x234] sm:$0xf0]  ;;  %v4832_v35 = vld [vmem:[#allocation7 + $0xb8] sm:$0xf0]  ;;  %v4537_v53 = vld [vmem:[#allocation7 + $0x1d0] sm:$0xf] }
 0x487   : > { %3178 = vmatpush.bf16.msra.mxu0 %v4578_v59  ;;  %v4585_v59 = vld [vmem:[#allocation7 + $0x230] sm:$0xf] }
 0x488   : > { %3153 = vmatpush.bf16.msra.mxu2 %v4350_v39  ;;  %v4477_v39 = vld [vmem:[#allocation7 + $0x158] sm:$0xf] }
 0x489   : > { %3197 = vmatpush.bf16.msra.mxu1 %v4330_v8  ;;  %3165 = vmatpush.bf16.msrb.mxu3 %v4470_v48  ;;  %v4478_v3 = vor.u32 %v4853_v60, %v4477_v39  ;;  %v4466_v8 = vor.u32 %v4850_v6, %v4465_v0  ;;  %v4517_v48 = vld [vmem:[#allocation7 + $0x1b0] sm:$0xf]  ;;  %v4880_v39 = vld [vmem:[#allocation7 + $0x238] sm:$0xf0]  ;;  %v4570_v0 = vor.u32 %v4875_v57, %v4567_v61 }
 0x48b   : > { %3179 = vmatpush.bf16.msra.mxu0 %v4566_v58  ;;  %v4877_v58 = vld [vmem:[#allocation7 + $0x220] sm:$0xf0] }
 0x48c   : > { %3154 = vmatpush.bf16.msra.mxu2 %v4338_v62  ;;  %v4845_v62 = vld [vmem:[#allocation7 + $0x124] sm:$0xf] }
 0x48d   : > { %4296 = vmatmul.msk.bf16.vlgmr.msra.gmra.mxu3 %vm2061_vm2, %v2508_v36  ;;  %3198 = vmatpush.bf16.msra.mxu1 %v4318_v16  ;;  %v4450_v11 = vor.u32 %v4845_v62, %v4447_v63  ;;  %v4842_v16 = vld [vmem:[#allocation7 + $0x10c] sm:$0xf]  ;;  %v4586_v62 = vor.u32 %v4880_v39, %v4585_v59  ;;  %v4573_v63 = vld [vmem:[#allocation7 + $0x218] sm:$0xf]  ;;  %v4823_v39 = vld [vmem:[#allocation7 + $0x70] sm:$0xf0] }
 0x48e   : > { %v4574_v6 = vor.u32 %v4877_v58, %v4573_v63  ;;  %v4820_v63 = vld [vmem:[#allocation7 + $0x58] sm:$0xf0] }
 0x48f   : > { %3180 = vmatpush.bf16.msra.mxu0 %v4554_v18  ;;  %v4405_v18 = vld [vmem:[#allocation7 + $0xc8] sm:$0xf] }
 0x490   : > { %3155 = vmatpush.bf16.msra.mxu2 %v4326_v7  ;;  %v4843_v7 = vld [vmem:[#allocation7 + $0x110] sm:$0xf0] }
 0x491   : > { %3199 = vmatpush.bf16.msra.mxu1 %v4306_v24  ;;  %v4434_v19 = vor.u32 %v4843_v7, %v4433_v2  ;;  %v4421_v24 = vld [vmem:[#allocation7 + $0xf0] sm:$0xf]  ;;  %v4555_v2 = vld [vmem:[#allocation7 + $0x204] sm:$0xf0]  ;;  %v4561_v7 = vld [vmem:[#allocation7 + $0x200] sm:$0xf] }
 0x494   : > { %3156 = vmatpush.bf16.msra.mxu2 %v4314_v26  ;;  %v4453_v26 = vld [vmem:[#allocation7 + $0x128] sm:$0xf] }
 0x498   : > { %3157 = vmatpush.bf16.msra.mxu2 %v4302_v22  ;;  %v4541_v22 = vld [vmem:[#allocation7 + $0x1e0] sm:$0xf] }
 0x49c   : > { %3206 = vmatpush.bf16.msrb.mxu2 %v4486_v44  ;;  %v4411_v44 = vld [vmem:[#allocation7 + $0xe4] sm:$0xf0] }
 0x49d   : > { %v4414_v47 = vor.u32 %v4836_v42, %v4411_v44  ;;  %v4829_v44 = vld [vmem:[#allocation7 + $0xa0] sm:$0xf0] }
 0x4a0   : > { %3207 = vmatpush.bf16.msrb.mxu2 %v4474_v52  ;;  %v4834_v52 = vld [vmem:[#allocation7 + $0xc8] sm:$0xf0] }
 0x4a4   : > { %3208 = vmatpush.bf16.msrb.mxu2 %v4462_v9 }
 0x4a8   : > { %3209 = vmatpush.bf16.msrb.mxu2 %v4450_v11  ;;  %v4505_v11 = vld [vmem:[#allocation7 + $0x198] sm:$0xf] }
 0x4dc   : > { %v2425_v28 = vpop.f32.mrf.mxu1 }
 0x4e4   : > { %v2427_v13 = vpop.f32.mrf.mxu1 }
 0x4e5   : > { %v4975_v34 = vpack.i.bf16 %v2427_v13, %v2425_v28  ;;  %v4840_v28 = vld [vmem:[#allocation7 + $0xf8] sm:$0xf0]  ;;  %v4454_v13 = vor.u32 %v4847_v12, %v4453_v26  ;;  %v4861_v26 = vld [vmem:[#allocation7 + $0x1a0] sm:$0xf0] }
 0x4e6   : > { %v4506_v12 = vor.u32 %v4861_v26, %v4505_v11 }
 0x4e7   : > { %4976 = vrot.lane.b32.xlu0 %v4975_v34, %s5236_s21  ;;  %v4438_v34 = vor.u32 %v4842_v16, %v4435_v17  ;;  %v4869_v16 = vld [vmem:[#allocation7 + $0x1e4] sm:$0xf]  ;;  %v4543_v17 = vld [vmem:[#allocation7 + $0x1ec] sm:$0xf0] }
 0x4e9   : > { %3210 = vmatpush.bf16.msrb.mxu2 %v4438_v34  ;;  %v4493_v34 = vld [vmem:[#allocation7 + $0x180] sm:$0xf] }
 0x4ec   : > { %v2624_v29 = vpop.f32.mrf.mxu1 }
 0x4f4   : > { %v2626_v27 = vpop.f32.mrf.mxu1 }
 0x4f5   : > { %v4980_v31 = vpack.i.bf16 %v2626_v27, %v2624_v29  ;;  %v4441_v29 = vld [vmem:[#allocation7 + $0x110] sm:$0xf]  ;;  %v4844_v27 = vld [vmem:[#allocation7 + $0x118] sm:$0xf0] }
 0x4f6   : > { %v4972_v4 = vpop.permute.xlu1 %4971 }
 0x4f7   : > { %v4974_v5 = vunpack.i.h.bf16 %v4972_v4  ;;  %v4973_v33 = vunpack.i.l.bf16 %v4972_v4  ;;  %4981 = vrot.lane.b32.xlu1 %v4980_v31, %s5236_s21  ;;  %v4839_v31 = vld [vmem:[#allocation7 + $0xf4] sm:$0xf]  ;;  %v4423_v4 = vld [vmem:[#allocation7 + $0xfc] sm:$0xf0] }
 0x4f8   : > { %v4426_v37 = vor.u32 %v4839_v31, %v4423_v4  ;;  %v4866_v31 = vld [vmem:[#allocation7 + $0x1cc] sm:$0xf]  ;;  %v4531_v4 = vld [vmem:[#allocation7 + $0x1d4] sm:$0xf0] }
 0x4f9   : > { %v2654_v32 = vsel %vm2036_vm0, %v5531_v20, %v4974_v5  ;;  %v2653_v36 = vsel %vm2036_vm0, %v5524_v14, %v4973_v33  ;;  %v4849_v20 = vld [vmem:[#allocation7 + $0x140] sm:$0xf0]  ;;  %v4489_v14 = vld [vmem:[#allocation7 + $0x170] sm:$0xf]  ;;  %v4542_v5 = vor.u32 %v4870_v23, %v4541_v22  ;;  %v4422_v33 = vor.u32 %v4840_v28, %v4421_v24  ;;  %v4835_v22 = vld [vmem:[#allocation7 + $0xd0] sm:$0xf0] }
 0x4fa   : > { %v5643_v43 = vpack.c.bf16 %v2654_v32, %v2653_v36  ;;  %v4490_v15 = vor.u32 %v4856_v54, %v4489_v14  ;;  %v4458_v41 = vor.u32 %v4849_v20, %v4457_v21  ;;  %v4837_v32 = vld [vmem:[#allocation7 + $0xe0] sm:$0xf0]  ;;  %v4442_v36 = vor.u32 %v4844_v27, %v4441_v29  ;;  %v4864_v21 = vld [vmem:[#allocation7 + $0x1b8] sm:$0xf0]  ;;  %v4397_v20 = vld [vmem:[#allocation7 + $0xc0] sm:$0xf]  ;;  %3211 = vmatpush.bf16.msrb.mxu2 %v4426_v37 }
 0x4fb   : > { %3181 = vmatpush.bf16.msra.mxu0 %v4542_v5  ;;  %v4410_v46 = vor.u32 %v4837_v32, %v4409_v49  ;;  %v4878_v14 = vld [vmem:[#allocation7 + $0x22c] sm:$0xf]  ;;  %v4430_v54 = vor.u32 %v4841_v40, %v4429_v38  ;;  %v4518_v56 = vor.u32 %v4864_v21, %v4517_v48  ;;  %v4398_v30 = vor.u32 %v4834_v52, %v4397_v20  ;;  %v4549_v23 = vld [vmem:[#allocation7 + $0x1e8] sm:$0xf]  ;;  %v4871_v24 = vld [vmem:[#allocation7 + $0x1f0] sm:$0xf0] }
 0x4fc   : > { %3158 = vmatmul.bf16.vlgmr.msra.gmra.mxu2 %v5643_v43  ;;  %3200 = vmatmul.bf16.vlgmr.msra.gmra.mxu1 %v5643_v43  ;;  %v4582_v60 = vor.u32 %v4878_v14, %v4579_v50  ;;  %v4406_v28 = vor.u32 %v4835_v22, %v4405_v18  ;;  %v4858_v29 = vld [vmem:[#allocation7 + $0x188] sm:$0xf0]  ;;  %v4393_v5 = vld [vmem:[#allocation7 + $0xb0] sm:$0xf]  ;;  %v4868_v49 = vld [vmem:[#allocation7 + $0x1d8] sm:$0xf0] }
 0x4fd   : > { %3248 = vmatpush.bf16.msrb.mxu1 %v4490_v15  ;;  %3166 = vmatpush.bf16.msrb.mxu3 %v4458_v41  ;;  %v4417_v15 = vld [vmem:[#allocation7 + $0xe0] sm:$0xf]  ;;  %v4833_v41 = vld [vmem:[#allocation7 + $0xc4] sm:$0xf]  ;;  %v4494_v27 = vor.u32 %v4858_v29, %v4493_v34  ;;  %v4394_v32 = vor.u32 %v4832_v35, %v4393_v5  ;;  %v4863_v37 = vld [vmem:[#allocation7 + $0x1b4] sm:$0xf] }
 0x4fe   : > { %v4418_v9 = vor.u32 %v4838_v55, %v4417_v15  ;;  %3212 = vmatpush.bf16.msrb.mxu2 %v4414_v47  ;;  %v4519_v38 = vld [vmem:[#allocation7 + $0x1bc] sm:$0xf0]  ;;  %v4381_v40 = vld [vmem:[#allocation7 + $0x98] sm:$0xf]  ;;  %v4860_v20 = vld [vmem:[#allocation7 + $0x19c] sm:$0xf] }
 0x4ff   : > { %3182 = vmatpush.bf16.msra.mxu0 %v4530_v45  ;;  %v4522_v42 = vor.u32 %v4863_v37, %v4519_v38  ;;  %v4525_v45 = vld [vmem:[#allocation7 + $0x1b8] sm:$0xf]  ;;  %v4382_v48 = vor.u32 %v4829_v44, %v4381_v40  ;;  %v4507_v52 = vld [vmem:[#allocation7 + $0x1a4] sm:$0xf0]  ;;  %v4369_v14 = vld [vmem:[#allocation7 + $0x80] sm:$0xf] }
 0x500   : > { %v4513_v47 = vld [vmem:[#allocation7 + $0x1a0] sm:$0xf]  ;;  %v4862_v50 = vld [vmem:[#allocation7 + $0x1a8] sm:$0xf0]  ;;  %v4510_v15 = vor.u32 %v4860_v20, %v4507_v52 }
 0x501   : > { %3249 = vmatpush.bf16.msrb.mxu1 %v4478_v3  ;;  %3167 = vmatpush.bf16.msrb.mxu3 %v4446_v1  ;;  %v4402_v3 = vor.u32 %v4833_v41, %v4399_v51  ;;  %v4872_v1 = vld [vmem:[#allocation7 + $0x1fc] sm:$0xf]  ;;  %v4514_v41 = vor.u32 %v4862_v50, %v4513_v47  ;;  %v4857_v51 = vld [vmem:[#allocation7 + $0x184] sm:$0xf]  ;;  %v2758_v35 = vld [vmem:[#allocation8] sm:$0x7] }
 0x502   : > { %v4558_v25 = vor.u32 %v4872_v1, %v4555_v2  ;;  %v4817_v1 = vld [vmem:[#allocation7 + $0x40] sm:$0xf0]  ;;  %v2761_v38 = vperm.slane %v2758_v35, 1 }
 0x503   : > { %3183 = vmatpush.bf16.msra.mxu0 %v4518_v56  ;;  %3213 = vmatpush.bf16.msrb.mxu2 %v4402_v3  ;;  %v4495_v56 = vld [vmem:[#allocation7 + $0x18c] sm:$0xf0]  ;;  %v2328_v3 = vpop.f32.mrf.mxu3 }
 0x504   : > { %v4498_v59 = vor.u32 %v4857_v51, %v4495_v56 }
 0x505   : > { %3250 = vmatpush.bf16.msrb.mxu1 %v4466_v8  ;;  %3168 = vmatpush.bf16.msrb.mxu3 %v4434_v19  ;;  %v4874_v8 = vld [vmem:[#allocation7 + $0x208] sm:$0xf0]  ;;  %v4546_v19 = vor.u32 %v4869_v16, %v4543_v17  ;;  %v4811_v16 = vld [vmem:[#allocation7 + $0x10] sm:$0xf0] }
 0x506   : > { %v4562_v10 = vor.u32 %v4874_v8, %v4561_v7  ;;  %v4814_v7 = vld [vmem:[#allocation7 + $0x28] sm:$0xf0] }
 0x507   : > { %3262 = vmatpush.bf16.msra.mxu2 %v4586_v62  ;;  %3184 = vmatpush.bf16.msra.mxu0 %v4506_v12  ;;  %v4345_v62 = vld [vmem:[#allocation7 + $0x50] sm:$0xf]  ;;  %v4309_v12 = vld [vmem:[#allocation7 + $0x8] sm:$0xf] }
 0x508   : > { %v4346_v58 = vor.u32 %v4820_v63, %v4345_v62 }
 0x509   : > { %3251 = vmatpush.bf16.msrb.mxu1 %v4454_v13  ;;  %3169 = vmatpush.bf16.msrb.mxu3 %v4422_v33  ;;  %v4550_v13 = vor.u32 %v4871_v24, %v4549_v23  ;;  %v4534_v33 = vor.u32 %v4866_v31, %v4531_v4 }
 0x50b   : > { %3263 = vmatpush.bf16.msra.mxu2 %v4574_v6  ;;  %3185 = vmatpush.bf16.msra.mxu0 %v4494_v27  ;;  %v4321_v6 = vld [vmem:[#allocation7 + $0x20] sm:$0xf]  ;;  %v2330_v8 = vpop.f32.mrf.mxu3 }
 0x50d   : > { %3252 = vmatpush.bf16.msrb.mxu1 %v4442_v36  ;;  %3170 = vmatpush.bf16.msrb.mxu3 %v4410_v46  ;;  %v4538_v36 = vor.u32 %v4868_v49, %v4537_v53  ;;  %v4865_v46 = vld [vmem:[#allocation7 + $0x1c0] sm:$0xf0]  ;;  %v2760_v53 = vperm.slane %v2758_v35, 0 }
 0x50e   : > { %v4526_v21 = vor.u32 %v4865_v46, %v4525_v45 }
 0x50f   : > { %3264 = vmatpush.bf16.msra.mxu2 %v4562_v10  ;;  %3234 = vmatpush.bf16.msrb.mxu0 %v4394_v32 }
 0x511   : > { %3253 = vmatpush.bf16.msrb.mxu1 %v4430_v54  ;;  %3171 = vmatpush.bf16.msrb.mxu3 %v4398_v30  ;;  %v4826_v54 = vld [vmem:[#allocation7 + $0x88] sm:$0xf0]  ;;  %v4357_v30 = vld [vmem:[#allocation7 + $0x68] sm:$0xf] }
 0x512   : > { %v4370_v55 = vor.u32 %v4826_v54, %v4369_v14  ;;  %v4358_v57 = vor.u32 %v4823_v39, %v4357_v30 }
 0x513   : > { %3265 = vmatpush.bf16.msra.mxu2 %v4550_v13  ;;  %3235 = vmatpush.bf16.msrb.mxu0 %v4382_v48  ;;  %v2527_v23 = vpop.f32.mrf.mxu3 }
 0x515   : > { %3220 = vmatpush.bf16.msra.mxu3 %v4582_v60  ;;  %3254 = vmatpush.bf16.msrb.mxu1 %v4418_v9  ;;  %v4501_v60 = vld [vmem:[#allocation7 + $0x188] sm:$0xf]  ;;  %v4859_v9 = vld [vmem:[#allocation7 + $0x190] sm:$0xf0] }
 0x516   : > { %v4502_v61 = vor.u32 %v4859_v9, %v4501_v60 }
 0x517   : > { %3266 = vmatpush.bf16.msra.mxu2 %v4538_v36  ;;  %3236 = vmatpush.bf16.msrb.mxu0 %v4370_v55  ;;  %v2762_v55 = vperm.slane %v2758_v35, 2 }
 0x519   : > { %3221 = vmatpush.bf16.msra.mxu3 %v4570_v0  ;;  %3255 = vmatpush.bf16.msrb.mxu1 %v4406_v28  ;;  %v4333_v0 = vld [vmem:[#allocation7 + $0x38] sm:$0xf] }
 0x51a   : > { %v4334_v2 = vor.u32 %v4817_v1, %v4333_v0 }
 0x51b   : > { %3267 = vmatpush.bf16.msra.mxu2 %v4526_v21  ;;  %3237 = vmatpush.bf16.msrb.mxu0 %v4358_v57  ;;  %v2529_v34 = vpop.f32.mrf.mxu3 }
 0x51d   : > { %3222 = vmatpush.bf16.msra.mxu3 %v4558_v25  ;;  %v4322_v25 = vor.u32 %v4814_v7, %v4321_v6 }
 0x51f   : > { %3268 = vmatpush.bf16.msra.mxu2 %v4514_v41  ;;  %3238 = vmatpush.bf16.msrb.mxu0 %v4346_v58 }
 0x521   : > { %3223 = vmatpush.bf16.msra.mxu3 %v4546_v19  ;;  %v4310_v19 = vor.u32 %v4811_v16, %v4309_v12 }
 0x523   : > { %3269 = vmatpush.bf16.msra.mxu2 %v4502_v61  ;;  %3239 = vmatpush.bf16.msrb.mxu0 %v4334_v2 }
 0x525   : > { %3224 = vmatpush.bf16.msra.mxu3 %v4534_v33 }
 0x527   : > { %3240 = vmatpush.bf16.msrb.mxu0 %v4322_v25 }
 0x529   : > { %3225 = vmatpush.bf16.msra.mxu3 %v4522_v42 }
 0x52b   : > { %3241 = vmatpush.bf16.msrb.mxu0 %v4310_v19 }
 0x52d   : > { %3226 = vmatpush.bf16.msra.mxu3 %v4510_v15 }
 0x531   : > { %3227 = vmatpush.bf16.msra.mxu3 %v4498_v59 }
 0x559   : > { %v4977_v10 = vpop.permute.xlu0 %4976 }
 0x55a   : > { %v4979_v11 = vunpack.i.h.bf16 %v4977_v10  ;;  %v4978_v26 = vunpack.i.l.bf16 %v4977_v10 }
 0x55c   : > { %v2656_v17 = vsel %vm2036_vm0, %v2330_v8, %v4979_v11  ;;  %v2655_v18 = vsel %vm2036_vm0, %v2328_v3, %v4978_v26 }
 0x55d   : > { %v2660_v22 = vpack.c.bf16 %v2656_v17, %v2655_v18 }
 0x55f   : > { %3172 = vmatmul.bf16.vlgmr.msrb.gmra.mxu3 %v2660_v22  ;;  %3214 = vmatmul.bf16.vlgmr.msrb.gmra.mxu2 %v2660_v22 }
 0x560   : > { %3256 = vmatmul.bf16.vlgmr.msrb.gmra.mxu1 %v2660_v22 }
 0x569   : > { %v4982_v24 = vpop.permute.xlu1 %4981 }
 0x56a   : > { %v4984_v28 = vunpack.i.h.bf16 %v4982_v24  ;;  %v4983_v13 = vunpack.i.l.bf16 %v4982_v24 }
 0x56c   : > { %v2657_v29 = vsel %vm2036_vm0, %v2527_v23, %v4983_v13  ;;  %v2658_v27 = vsel %vm2036_vm0, %v2529_v34, %v4984_v28 }
 0x56d   : > { %v2661_v31 = vpack.c.bf16 %v2658_v27, %v2657_v29 }
 0x56f   : > { %3186 = vmatmul.bf16.vlgmr.msra.gmra.mxu0 %v2661_v31  ;;  %3228 = vmatmul.bf16.vlgmr.msra.gmra.mxu3 %v2661_v31 }
 0x570   : > { %3270 = vmatmul.bf16.vlgmr.msra.gmra.mxu2 %v2661_v31 }
 0x579   : > { %v3201_v49 = vpop.f32.mrf.mxu1 }
 0x57a   : > { %v3202_v45 = vadd.f32 %v3201_v49, %v2761_v38 }
 0x57f   : > { %3242 = vmatmul.bf16.vlgmr.msrb.gmra.mxu0 %v5643_v43  ;;  %v3159_v4 = vpop.f32.mrf.mxu2 }
 0x580   : > { %v3160_v32 = vadd.f32 %v3159_v4, %v2760_v53 }
 0x581   : > { %v3203_v21 = vpop.f32.mrf.mxu1 }
 0x582   : > { %v3204_v50 = vadd.f32 %v3203_v21, %v2761_v38 }
 0x587   : > { %v3161_v5 = vpop.f32.mrf.mxu2 }
 0x588   : > { %v3162_v43 = vadd.f32 %v3161_v5, %v2760_v53 }
 0x5dd   : > { %v3257_v56 = vpop.f32.mrf.mxu1 }
 0x5e2   : > { %v3173_v33 = vpop.f32.mrf.mxu3  ;;  %v3215_v36 = vpop.f32.mrf.mxu2 }
 0x5e3   : > { %v3174_v40 = vadd.f32 %v3173_v33, %v3160_v32  ;;  %v3216_v46 = vadd.f32 %v3215_v36, %v3202_v45 }
 0x5e5   : > { %v3259_v61 = vpop.f32.mrf.mxu1 }
 0x5ea   : > { %v3175_v37 = vpop.f32.mrf.mxu3  ;;  %v3217_v14 = vpop.f32.mrf.mxu2 }
 0x5eb   : > { %v3176_v20 = vadd.f32 %v3175_v37, %v3162_v43  ;;  %v3218_v15 = vadd.f32 %v3217_v14, %v3204_v50 }
 0x5ec   : > { %v3187_v42 = vpop.f32.mrf.mxu0 }
 0x5ed   : > { %v3188_v44 = vadd.f32 %v3187_v42, %v3174_v40 }
 0x5ef   : > { %3276 = vst [vmem:[%s5653_s13] sm:$0xff] %v3188_v44 }
 0x5f2   : > { %v3229_v48 = vpop.f32.mrf.mxu3 }
 0x5f3   : > { %v3230_v52 = vadd.f32 %v3229_v48, %v3216_v46  ;;  %v3271_v39 = vpop.f32.mrf.mxu2 }
 0x5f4   : > { %v3189_v54 = vpop.f32.mrf.mxu0 }
 0x5f5   : > { %3277 = vst [vmem:[%s5653_s13 + $0x8] sm:$0xff] %v3230_v52  ;;  %v3190_v47 = vadd.f32 %v3189_v54, %v3176_v20 }
 0x5f7   : > { %3279 = vst [vmem:[%s5653_s13 + $0x18] sm:$0xff] %v3190_v47 }
 0x5fa   : > { %v3231_v41 = vpop.f32.mrf.mxu3 }
 0x5fb   : > { %v3232_v51 = vadd.f32 %v3231_v41, %v3218_v15  ;;  %v3273_v63 = vpop.f32.mrf.mxu2 }
 0x5fc   : > { %v3243_v30 = vpop.f32.mrf.mxu0 }
 0x5fd   : > { %3280 = vst [vmem:[%s5653_s13 + $0x20] sm:$0xff] %v3232_v51  ;;  %v3244_v59 = vadd.f32 %v3243_v30, %v2762_v55 }
 0x5ff   : > { %v3258_v60 = vadd.f32 %v3257_v56, %v3244_v59 }
 0x601   : > { %v3272_v9 = vadd.f32 %v3271_v39, %v3258_v60 }
 0x603   : > { %3278 = vst [vmem:[%s5653_s13 + $0x10] sm:$0xff] %v3272_v9 }
 0x604   : > { %v3245_v3 = vpop.f32.mrf.mxu0 }
 0x605   : > { %v3246_v57 = vadd.f32 %v3245_v3, %v2762_v55 }
 0x607   : > { %v3260_v62 = vadd.f32 %v3259_v61, %v3246_v57 }
 0x609   : > { %v3274_v58 = vadd.f32 %v3273_v63, %v3260_v62 }
 0x60b   : > { %3281 = vst [vmem:[%s5653_s13 + $0x28] sm:$0xff] %v3274_v58 }
 0x60c   : > { %5180 = shalt.err (!%p5177_p10)
}
 0x60d   : > { %s5237_s10 = smov 384   ;;  %s5238_s21 = smov 24  }
 0x60e   : > { %4900 = dma.vmem_to_hbm [thread:$0]  (%p5350_p7), %s3296_s28, 768, %s3298_s29, %s3283_s8, %s5237_s10, %s5237_s10, %s5238_s21  }
 0x60f PF: > { %s3312_s26 = sand.u32 1, %s5215_s15   ;;  %p5716_p12 = scmp.ge.s32.totalorder %s5227_s18, 2 }
 0x610   : > { %s3313_s13 = scalar_lea.sflag [#allocation4], %s3312_s26 }
 0x611   : > { %p4917_p13 = pnand %p5716_p12, %p5299_p6 }
 0x613   : > { %p4918_p0 = pneg %p4917_p13 }
 0x615   : > { %5210 = dma.done.wait (%p4918_p0), %s3313_s13, 768  }
 0x616   : > { %5212 = vsyncadd (%p4918_p0), %s3313_s13, 4294966528  ;;  %p19_p3 = scmp.ge.s32.totalorder %s5336_s25, 4   ;;  %s5717_s15 = smov %s5219_s16 }
 0x617   : > { %s5718_s16 = smov %s5223_s17  ;;  %s5719_s17 = smov %s5346_s30 }
 0x618   : > { %s5720_s18 = smov %s5336_s25  ;;  %21 = sbr.rel (!%p19_p3) target bundleno = 7 (0x7), region = 93 }
 0x61d   :  { %3319 = vsyncpa [#allocation3], 1 }
 0x61e   :  { %3321 = vsyncpa [#allocation3 + $0x1], 1 }
 0x61f   :  { %3322 = vsyncpa [#allocation6], 1 }
 0x620   :  { %3323 = vsyncpa [#allocation9], 1 }
 0x621   :  { %3324 = vsyncpa [#allocation4], 1 }
 0x622   :  { %3326 = vsyncpa [#allocation4 + $0x1], 1 }

</bundles_post_ra>
